<compile_context>
chip_gen: v7x
topology: tpu7x:2x2x1
jax: 0.10.0
libtpu: 0.0.40
codegen_flags: <defaults>
</compile_context>

<pallas_src>
import functools

import jax
import jax.numpy as jnp
from jax.experimental import pallas as pl
from jax.experimental.pallas import tpu as pltpu


def _vmem_specs(n):
    return [pl.BlockSpec(memory_space=pltpu.MemorySpace.VMEM) for _ in range(n)]


# ----------------------------- Fused kernel ----------------------------------
def fused_policy_kernel(T, B, hidden,
                        x_ref, w1b_ref, sc2_ref, sh2_ref,
                        w2_ref, sc1_ref, sh1_ref,
                        wih_ref, bih_ref, whh_ref, bhh_ref,
                        wfc_ref, bfc_ref,
                        out_ref, hs_ref):
    # ---- Stage 1: 1x1 conv as hw-batched matmul + folded BN2d + tanh --------
    # x: (HW, T*B, C), w1b: (HW, C, 64)  ->  y3: (HW, T*B, 64)
    y3 = jnp.einsum('hnc,hco->hno', x_ref[...], w1b_ref[...],
                    preferred_element_type=jnp.float32)
    y3 = jnp.tanh(y3 * sc2_ref[...] + sh2_ref[...])

    # ---- Stage 2: fc1 as hw-batched matmul (bf16 operands, f32 accumulation),
    #      reduce over hw, folded (fc1 bias + BN1d), tanh ---------------------
    p = jnp.einsum('hno,hoj->hnj', y3.astype(jnp.bfloat16), w2_ref[...],
                   preferred_element_type=jnp.float32)          # (HW, T*B, h)
    feat = jnp.tanh(p.sum(axis=0) * sc1_ref[...] + sh1_ref[...])  # (T*B, h)

    # ---- Stage 3: GRU.  Input-side gates hoisted out of the time loop. ------
    gi = jnp.dot(feat, wih_ref[...],
                 preferred_element_type=jnp.float32) + bih_ref[...]  # (T*B, 3h)
    h = jnp.zeros((B, hidden), jnp.float32)                          # h0 = 0
    for t in range(T):                      # small static unroll (T == 4)
        gi_t = gi[t * B:(t + 1) * B, :]
        gh = jnp.dot(h, whh_ref[...],
                     preferred_element_type=jnp.float32) + bhh_ref[...]
        r = jax.nn.sigmoid(gi_t[:, :hidden] + gh[:, :hidden])
        z = jax.nn.sigmoid(gi_t[:, hidden:2 * hidden] + gh[:, hidden:2 * hidden])
        n = jnp.tanh(gi_t[:, 2 * hidden:] + r * gh[:, 2 * hidden:])
        h = (1.0 - z) * n + z * h
        hs_ref[t * B:(t + 1) * B, :] = h    # stage hidden state in VMEM scratch

    # ---- Stage 4: fc2 + sigmoid, one matmul + one store ---------------------
    out_ref[...] = jax.nn.sigmoid(
        jnp.dot(hs_ref[...], wfc_ref[...],
                preferred_element_type=jnp.float32) + bfc_ref[...])


# ----------------------------- Parameter folding (once, outside hot path) ----
def prepare_folded_params(params, *, H, W, hidden_dim, eps=1e-5):
    HW = H * W
    C = params['conv_w'].shape[1]
    h = hidden_dim

    w1 = params['conv_w'].reshape(64, C)                           # (64, C)
    w1b = jnp.broadcast_to(w1.T[None, :, :], (HW, C, 64))          # (HW, C, 64)
    sc2 = params['bn2_gamma'] / jnp.sqrt(params['bn2_var'] + eps)
    sh2 = params['bn2_beta'] - params['bn2_mean'] * sc2

    # fc1 weight -> (HW, 64, hidden) so the contraction is hw-batched; bf16.
    w2 = (params['fc1_w'].reshape(h, 64, HW)
          .transpose(2, 1, 0).astype(jnp.bfloat16))                # (HW, 64, h)
    sc1 = params['bn1_gamma'] / jnp.sqrt(params['bn1_var'] + eps)
    sh1 = (params['fc1_b'] - params['bn1_mean']) * sc1 + params['bn1_beta']

    return dict(
        w1b=w1b.astype(jnp.float32),
        sc2=sc2.reshape(1, 1, 64).astype(jnp.float32),
        sh2=sh2.reshape(1, 1, 64).astype(jnp.float32),
        w2=w2,
        sc1=sc1.reshape(1, h).astype(jnp.float32),
        sh1=sh1.reshape(1, h).astype(jnp.float32),
        wih=params['gru_wih'].T.astype(jnp.float32),               # (h, 3h)
        bih=params['gru_bih'].reshape(1, 3 * h).astype(jnp.float32),
        whh=params['gru_whh'].T.astype(jnp.float32),               # (h, 3h)
        bhh=params['gru_bhh'].reshape(1, 3 * h).astype(jnp.float32),
        wfc=params['fc2_w'].T.astype(jnp.float32),                 # (h, 2)
        bfc=params['fc2_b'].reshape(1, 2).astype(jnp.float32),
    )


# ----------------------------- Jitted forward --------------------------------
@functools.partial(jax.jit, static_argnames=('num_segments', 'hidden_dim'))
def policy_stn_forward(features, folded, *, num_segments, hidden_dim):
    N, C, H, W = features.shape
    T = num_segments
    B = N // T
    HW = H * W

    # Relayout NCHW -> (hw, (t, b), c); the only per-call glue op (tiny).
    x3 = (features.reshape(B, T, C, HW)
          .transpose(3, 1, 0, 2).reshape(HW, T * B, C))

    kernel = functools.partial(fused_policy_kernel, T, B, hidden_dim)
    acts_tb = pl.pallas_call(
        kernel,
        out_shape=jax.ShapeDtypeStruct((T * B, 2), jnp.float32),
        in_specs=_vmem_specs(13),
        out_specs=pl.BlockSpec(memory_space=pltpu.MemorySpace.VMEM),
        scratch_shapes=[pltpu.VMEM((T * B, hidden_dim), jnp.float32)],
    )(x3, folded['w1b'], folded['sc2'], folded['sh2'],
      folded['w2'], folded['sc1'], folded['sh1'],
      folded['wih'], folded['bih'], folded['whh'], folded['bhh'],
      folded['wfc'], folded['bfc'])

    # rows ordered (t, b) in-kernel -> PyTorch's (b, t) ordering.
    return acts_tb.reshape(T, B, 2).transpose(1, 0, 2).reshape(B * T, 2)


# ----------------------------- Pure-JAX reference (for verification) ---------
def policy_stn_reference(features, params, *, num_segments, hidden_dim):
    eps = 1e-5
    N, C, H, W = features.shape
    y = jnp.einsum('nchw,oc->nohw', features, params['conv_w'].reshape(64, C))
    y = (y - params['bn2_mean'][None, :, None, None]) \
        / jnp.sqrt(params['bn2_var'] + eps)[None, :, None, None]
    y = y * params['bn2_gamma'][None, :, None, None] + params['bn2_beta'][None, :, None, None]
    y = jnp.tanh(y).reshape(N, -1)
    f = y @ params['fc1_w'].T + params['fc1_b']
    f = (f - params['bn1_mean']) / jnp.sqrt(params['bn1_var'] + eps) \
        * params['bn1_gamma'] + params['bn1_beta']
    f = jnp.tanh(f)
    B = N // num_segments
    f = f.reshape(B, num_segments, hidden_dim)
    hd = hidden_dim
    hcur = jnp.zeros((B, hd), jnp.float32)
    wih, whh = params['gru_wih'], params['gru_whh']
    bih, bhh = params['gru_bih'], params['gru_bhh']
    outs = []
    for t in range(num_segments):
        x_t = f[:, t, :]
        gi = x_t @ wih.T + bih
        gh = hcur @ whh.T + bhh
        r = jax.nn.sigmoid(gi[:, :hd] + gh[:, :hd])
        z = jax.nn.sigmoid(gi[:, hd:2 * hd] + gh[:, hd:2 * hd])
        n = jnp.tanh(gi[:, 2 * hd:] + r * gh[:, 2 * hd:])
        hcur = (1.0 - z) * n + z * hcur
        outs.append(hcur)
    out = jnp.stack(outs, axis=1).reshape(B * num_segments, hd)
    return jax.nn.sigmoid(out @ params['fc2_w'].T + params['fc2_b'])


# ----------------------------- Parameter init --------------------------------
def init_params(key, stn_feature_dim, flat_dim, hidden_dim):
    ks = jax.random.split(key, 16)
    p = {}
    p['conv_w'] = 0.2 * jax.random.normal(ks[0], (64, stn_feature_dim, 1, 1), jnp.float32)
    p['bn2_gamma'] = 1.0 + 0.1 * jax.random.normal(ks[1], (64,), jnp.float32)
    p['bn2_beta'] = 0.1 * jax.random.normal(ks[2], (64,), jnp.float32)
    p['bn2_mean'] = 0.1 * jax.random.normal(ks[3], (64,), jnp.float32)
    p['bn2_var'] = 0.5 + jax.random.uniform(ks[4], (64,), jnp.float32)
    p['fc1_w'] = 0.02 * jax.random.normal(ks[5], (hidden_dim, flat_dim), jnp.float32)
    p['fc1_b'] = 0.1 * jax.random.normal(ks[6], (hidden_dim,), jnp.float32)
    p['bn1_gamma'] = 1.0 + 0.1 * jax.random.normal(ks[7], (hidden_dim,), jnp.float32)
    p['bn1_beta'] = 0.1 * jax.random.normal(ks[8], (hidden_dim,), jnp.float32)
    p['bn1_mean'] = 0.1 * jax.random.normal(ks[9], (hidden_dim,), jnp.float32)
    p['bn1_var'] = 0.5 + jax.random.uniform(ks[10], (hidden_dim,), jnp.float32)
    p['gru_wih'] = 0.1 * jax.random.normal(ks[11], (3 * hidden_dim, hidden_dim), jnp.float32)
    p['gru_whh'] = 0.1 * jax.random.normal(ks[12], (3 * hidden_dim, hidden_dim), jnp.float32)
    p['gru_bih'] = 0.1 * jax.random.normal(ks[13], (3 * hidden_dim,), jnp.float32)
    p['gru_bhh'] = 0.1 * jax.random.normal(ks[14], (3 * hidden_dim,), jnp.float32)
    p['fc2_w'] = 0.1 * jax.random.normal(ks[15], (2, hidden_dim), jnp.float32)
    p['fc2_b'] = jnp.zeros((2,), jnp.float32)
    return p


if __name__ == "__main__":
    # Small shapes consistent with the module:
    #   stn_feature_dim=4, H=W=8  =>  stn_state_dim = 4*8*8 = 256
    #   linear in-dim = stn_state_dim*64/stn_feature_dim = 64*H*W = 4096
    stn_feature_dim = 4
    H = W = 8
    hidden_dim = 32
    num_segments = 4
    batch = 2
    flat_dim = 64 * H * W

    key = jax.random.PRNGKey(0)
    kx, kp = jax.random.split(key)
    features = jax.random.normal(
        kx, (batch * num_segments, stn_feature_dim, H, W), jnp.float32)
    params = init_params(kp, stn_feature_dim, flat_dim, hidden_dim)

    # Weight folding / permutes happen once, outside the jitted per-call path.
    folded = prepare_folded_params(params, H=H, W=W, hidden_dim=hidden_dim)

    actions = policy_stn_forward(
        features, folded, num_segments=num_segments, hidden_dim=hidden_dim)
    actions = jax.block_until_ready(actions)

    ref = policy_stn_reference(
        features, params, num_segments=num_segments, hidden_dim=hidden_dim)

    assert actions.shape == (batch * num_segments, 2), actions.shape
    max_err = float(jnp.max(jnp.abs(actions - ref)))
    # bf16 fc1 operands (f32 accumulation) introduce ~1e-3-level deviation vs
    # the pure-f32 reference; the rest of the pipeline matches to f32 precision.
    assert max_err < 1e-2, f"mismatch vs reference, max_err={max_err}"
    print("KERNEL_OK")
</pallas_src>

<mosaic_0001>
module attributes {stable_mosaic.version = 11 : i64} {
  func.func @fused_policy_kernel(%arg0: memref<64x8x4xf32, #tpu.memory_space<vmem>>, %arg1: memref<64x4x64xf32, #tpu.memory_space<vmem>>, %arg2: memref<1x1x64xf32, #tpu.memory_space<vmem>>, %arg3: memref<1x1x64xf32, #tpu.memory_space<vmem>>, %arg4: memref<64x64x32xbf16, #tpu.memory_space<vmem>>, %arg5: memref<1x32xf32, #tpu.memory_space<vmem>>, %arg6: memref<1x32xf32, #tpu.memory_space<vmem>>, %arg7: memref<32x96xf32, #tpu.memory_space<vmem>>, %arg8: memref<1x96xf32, #tpu.memory_space<vmem>>, %arg9: memref<32x96xf32, #tpu.memory_space<vmem>>, %arg10: memref<1x96xf32, #tpu.memory_space<vmem>>, %arg11: memref<32x2xf32, #tpu.memory_space<vmem>>, %arg12: memref<1x2xf32, #tpu.memory_space<vmem>>, %arg13: memref<8x2xf32, #tpu.memory_space<vmem>>, %arg14: memref<8x32xf32, #tpu.memory_space<vmem>>) attributes {dimension_semantics = [], scalar_prefetch = 0 : i64, scratch_operands = 1 : i64, tpu.core_type = #tpu.core_type<tc>} {
    %c0 = arith.constant 0 : index
    %c0_0 = arith.constant 0 : index
    %c0_1 = arith.constant 0 : index
    %0 = vector.load %arg0[%c0, %c0_0, %c0_1] : memref<64x8x4xf32, #tpu.memory_space<vmem>>, vector<64x8x4xf32>
    %c0_2 = arith.constant 0 : index
    %c0_3 = arith.constant 0 : index
    %c0_4 = arith.constant 0 : index
    %1 = vector.load %arg1[%c0_2, %c0_3, %c0_4] : memref<64x4x64xf32, #tpu.memory_space<vmem>>, vector<64x4x64xf32>
    "tpu.trace_start"() <{level = 10 : i32, message = "hnc,hco->hno"}> : () -> ()
    %cst = arith.constant dense<0.000000e+00> : vector<64x8x64xf32>
    %2 = tpu.matmul %0, %1, %cst {dimension_numbers = #tpu.dot_dimension_numbers<[2], [1], [1], [2], [0, 0, 0, 1, 1, 2], [0], [0]>} : vector<64x8x4xf32>, vector<64x4x64xf32>, vector<64x8x64xf32> -> vector<64x8x64xf32>
    "tpu.trace_stop"() : () -> ()
    %c0_5 = arith.constant 0 : index
    %c0_6 = arith.constant 0 : index
    %c0_7 = arith.constant 0 : index
    %3 = vector.load %arg2[%c0_5, %c0_6, %c0_7] : memref<1x1x64xf32, #tpu.memory_space<vmem>>, vector<1x1x64xf32>
    %4 = vector.broadcast %3 : vector<1x1x64xf32> to vector<64x8x64xf32>
    %5 = arith.mulf %2, %4 : vector<64x8x64xf32>
    %c0_8 = arith.constant 0 : index
    %c0_9 = arith.constant 0 : index
    %c0_10 = arith.constant 0 : index
    %6 = vector.load %arg3[%c0_8, %c0_9, %c0_10] : memref<1x1x64xf32, #tpu.memory_space<vmem>>, vector<1x1x64xf32>
    %7 = vector.broadcast %6 : vector<1x1x64xf32> to vector<64x8x64xf32>
    %8 = arith.addf %5, %7 : vector<64x8x64xf32>
    %9 = math.tanh %8 : vector<64x8x64xf32>
    %10 = arith.truncf %9 : vector<64x8x64xf32> to vector<64x8x64xbf16>
    %c0_11 = arith.constant 0 : index
    %c0_12 = arith.constant 0 : index
    %c0_13 = arith.constant 0 : index
    %11 = vector.load %arg4[%c0_11, %c0_12, %c0_13] : memref<64x64x32xbf16, #tpu.memory_space<vmem>>, vector<64x64x32xbf16>
    "tpu.trace_start"() <{level = 10 : i32, message = "hno,hoj->hnj"}> : () -> ()
    %cst_14 = arith.constant dense<0.000000e+00> : vector<64x8x32xf32>
    %12 = tpu.matmul %10, %11, %cst_14 {dimension_numbers = #tpu.dot_dimension_numbers<[2], [1], [1], [2], [0, 0, 0, 1, 1, 2], [0], [0]>} : vector<64x8x64xbf16>, vector<64x64x32xbf16>, vector<64x8x32xf32> -> vector<64x8x32xf32>
    "tpu.trace_stop"() : () -> ()
    %cst_15 = arith.constant dense<0.000000e+00> : vector<8x32xf32>
    %13 = vector.multi_reduction <add>, %12, %cst_15 [0] : vector<64x8x32xf32> to vector<8x32xf32>
    %c0_16 = arith.constant 0 : index
    %c0_17 = arith.constant 0 : index
    %14 = vector.load %arg5[%c0_16, %c0_17] : memref<1x32xf32, #tpu.memory_space<vmem>>, vector<1x32xf32>
    %15 = vector.broadcast %14 : vector<1x32xf32> to vector<8x32xf32>
    %16 = arith.mulf %13, %15 : vector<8x32xf32>
    %c0_18 = arith.constant 0 : index
    %c0_19 = arith.constant 0 : index
    %17 = vector.load %arg6[%c0_18, %c0_19] : memref<1x32xf32, #tpu.memory_space<vmem>>, vector<1x32xf32>
    %18 = vector.broadcast %17 : vector<1x32xf32> to vector<8x32xf32>
    %19 = arith.addf %16, %18 : vector<8x32xf32>
    %20 = math.tanh %19 : vector<8x32xf32>
    %c0_20 = arith.constant 0 : index
    %c0_21 = arith.constant 0 : index
    %21 = vector.load %arg7[%c0_20, %c0_21] : memref<32x96xf32, #tpu.memory_space<vmem>>, vector<32x96xf32>
    %cst_22 = arith.constant dense<0.000000e+00> : vector<8x96xf32>
    %22 = tpu.matmul %20, %21, %cst_22 {dimension_numbers = #tpu.dot_dimension_numbers<[1], [0], [0], [1], [0, 0, 1, 1], [], []>} : vector<8x32xf32>, vector<32x96xf32>, vector<8x96xf32> -> vector<8x96xf32>
    %c0_23 = arith.constant 0 : index
    %c0_24 = arith.constant 0 : index
    %23 = vector.load %arg8[%c0_23, %c0_24] : memref<1x96xf32, #tpu.memory_space<vmem>>, vector<1x96xf32>
    %24 = vector.broadcast %23 : vector<1x96xf32> to vector<8x96xf32>
    %25 = arith.addf %22, %24 : vector<8x96xf32>
    %cst_25 = arith.constant 0.000000e+00 : f32
    %26 = vector.broadcast %cst_25 : f32 to vector<2x32xf32>
    %27 = vector.extract_strided_slice %25 {offsets = [0, 0], sizes = [2, 96], strides = [1, 1]} : vector<8x96xf32> to vector<2x96xf32>
    %c0_26 = arith.constant 0 : index
    %c0_27 = arith.constant 0 : index
    %28 = vector.load %arg9[%c0_26, %c0_27] : memref<32x96xf32, #tpu.memory_space<vmem>>, vector<32x96xf32>
    %cst_28 = arith.constant dense<0.000000e+00> : vector<2x96xf32>
    %29 = tpu.matmul %26, %28, %cst_28 {dimension_numbers = #tpu.dot_dimension_numbers<[1], [0], [0], [1], [0, 0, 1, 1], [], []>} : vector<2x32xf32>, vector<32x96xf32>, vector<2x96xf32> -> vector<2x96xf32>
    %c0_29 = arith.constant 0 : index
    %c0_30 = arith.constant 0 : index
    %30 = vector.load %arg10[%c0_29, %c0_30] : memref<1x96xf32, #tpu.memory_space<vmem>>, vector<1x96xf32>
    %31 = vector.broadcast %30 : vector<1x96xf32> to vector<2x96xf32>
    %32 = arith.addf %29, %31 : vector<2x96xf32>
    %33 = vector.extract_strided_slice %27 {offsets = [0, 0], sizes = [2, 32], strides = [1, 1]} : vector<2x96xf32> to vector<2x32xf32>
    %34 = vector.extract_strided_slice %32 {offsets = [0, 0], sizes = [2, 32], strides = [1, 1]} : vector<2x96xf32> to vector<2x32xf32>
    %35 = arith.addf %33, %34 : vector<2x32xf32>
    %36 = arith.negf %35 : vector<2x32xf32>
    %37 = math.exp %36 : vector<2x32xf32>
    %cst_31 = arith.constant 1.000000e+00 : f32
    %38 = vector.broadcast %cst_31 : f32 to vector<2x32xf32>
    %39 = arith.addf %38, %37 : vector<2x32xf32>
    %40 = arith.divf %38, %39 : vector<2x32xf32>
    %41 = vector.extract_strided_slice %27 {offsets = [0, 32], sizes = [2, 32], strides = [1, 1]} : vector<2x96xf32> to vector<2x32xf32>
    %42 = vector.extract_strided_slice %32 {offsets = [0, 32], sizes = [2, 32], strides = [1, 1]} : vector<2x96xf32> to vector<2x32xf32>
    %43 = arith.addf %41, %42 : vector<2x32xf32>
    %44 = arith.negf %43 : vector<2x32xf32>
    %45 = math.exp %44 : vector<2x32xf32>
    %cst_32 = arith.constant 1.000000e+00 : f32
    %46 = vector.broadcast %cst_32 : f32 to vector<2x32xf32>
    %47 = arith.addf %46, %45 : vector<2x32xf32>
    %48 = arith.divf %46, %47 : vector<2x32xf32>
    %49 = vector.extract_strided_slice %27 {offsets = [0, 64], sizes = [2, 32], strides = [1, 1]} : vector<2x96xf32> to vector<2x32xf32>
    %50 = vector.extract_strided_slice %32 {offsets = [0, 64], sizes = [2, 32], strides = [1, 1]} : vector<2x96xf32> to vector<2x32xf32>
    %51 = arith.mulf %40, %50 : vector<2x32xf32>
    %52 = arith.addf %49, %51 : vector<2x32xf32>
    %53 = math.tanh %52 : vector<2x32xf32>
    %cst_33 = arith.constant 1.000000e+00 : f32
    %54 = vector.broadcast %cst_33 : f32 to vector<2x32xf32>
    %55 = arith.subf %54, %48 : vector<2x32xf32>
    %56 = arith.mulf %55, %53 : vector<2x32xf32>
    %57 = arith.mulf %48, %26 : vector<2x32xf32>
    %58 = arith.addf %56, %57 : vector<2x32xf32>
    %c0_34 = arith.constant 0 : index
    %c0_35 = arith.constant 0 : index
    %59 = vector.load %arg14[%c0_34, %c0_35] : memref<8x32xf32, #tpu.memory_space<vmem>>, vector<2x32xf32>
    tpu.vector_store %arg14[%c0_34, %c0_35], %58 {strides = array<i32>} : memref<8x32xf32, #tpu.memory_space<vmem>>, vector<2x32xf32>,
    %60 = vector.extract_strided_slice %25 {offsets = [2, 0], sizes = [2, 96], strides = [1, 1]} : vector<8x96xf32> to vector<2x96xf32>
    %c0_36 = arith.constant 0 : index
    %c0_37 = arith.constant 0 : index
    %61 = vector.load %arg9[%c0_36, %c0_37] : memref<32x96xf32, #tpu.memory_space<vmem>>, vector<32x96xf32>
    %cst_38 = arith.constant dense<0.000000e+00> : vector<2x96xf32>
    %62 = tpu.matmul %58, %61, %cst_38 {dimension_numbers = #tpu.dot_dimension_numbers<[1], [0], [0], [1], [0, 0, 1, 1], [], []>} : vector<2x32xf32>, vector<32x96xf32>, vector<2x96xf32> -> vector<2x96xf32>
    %c0_39 = arith.constant 0 : index
    %c0_40 = arith.constant 0 : index
    %63 = vector.load %arg10[%c0_39, %c0_40] : memref<1x96xf32, #tpu.memory_space<vmem>>, vector<1x96xf32>
    %64 = vector.broadcast %63 : vector<1x96xf32> to vector<2x96xf32>
    %65 = arith.addf %62, %64 : vector<2x96xf32>
    %66 = vector.extract_strided_slice %60 {offsets = [0, 0], sizes = [2, 32], strides = [1, 1]} : vector<2x96xf32> to vector<2x32xf32>
    %67 = vector.extract_strided_slice %65 {offsets = [0, 0], sizes = [2, 32], strides = [1, 1]} : vector<2x96xf32> to vector<2x32xf32>
    %68 = arith.addf %66, %67 : vector<2x32xf32>
    %69 = arith.negf %68 : vector<2x32xf32>
    %70 = math.exp %69 : vector<2x32xf32>
    %cst_41 = arith.constant 1.000000e+00 : f32
    %71 = vector.broadcast %cst_41 : f32 to vector<2x32xf32>
    %72 = arith.addf %71, %70 : vector<2x32xf32>
    %73 = arith.divf %71, %72 : vector<2x32xf32>
    %74 = vector.extract_strided_slice %60 {offsets = [0, 32], sizes = [2, 32], strides = [1, 1]} : vector<2x96xf32> to vector<2x32xf32>
    %75 = vector.extract_strided_slice %65 {offsets = [0, 32], sizes = [2, 32], strides = [1, 1]} : vector<2x96xf32> to vector<2x32xf32>
    %76 = arith.addf %74, %75 : vector<2x32xf32>
    %77 = arith.negf %76 : vector<2x32xf32>
    %78 = math.exp %77 : vector<2x32xf32>
    %cst_42 = arith.constant 1.000000e+00 : f32
    %79 = vector.broadcast %cst_42 : f32 to vector<2x32xf32>
    %80 = arith.addf %79, %78 : vector<2x32xf32>
    %81 = arith.divf %79, %80 : vector<2x32xf32>
    %82 = vector.extract_strided_slice %60 {offsets = [0, 64], sizes = [2, 32], strides = [1, 1]} : vector<2x96xf32> to vector<2x32xf32>
    %83 = vector.extract_strided_slice %65 {offsets = [0, 64], sizes = [2, 32], strides = [1, 1]} : vector<2x96xf32> to vector<2x32xf32>
    %84 = arith.mulf %73, %83 : vector<2x32xf32>
    %85 = arith.addf %82, %84 : vector<2x32xf32>
    %86 = math.tanh %85 : vector<2x32xf32>
    %cst_43 = arith.constant 1.000000e+00 : f32
    %87 = vector.broadcast %cst_43 : f32 to vector<2x32xf32>
    %88 = arith.subf %87, %81 : vector<2x32xf32>
    %89 = arith.mulf %88, %86 : vector<2x32xf32>
    %90 = arith.mulf %81, %58 : vector<2x32xf32>
    %91 = arith.addf %89, %90 : vector<2x32xf32>
    %c2 = arith.constant 2 : index
    %c0_44 = arith.constant 0 : index
    %92 = vector.load %arg14[%c2, %c0_44] : memref<8x32xf32, #tpu.memory_space<vmem>>, vector<2x32xf32>
    tpu.vector_store %arg14[%c2, %c0_44], %91 {strides = array<i32>} : memref<8x32xf32, #tpu.memory_space<vmem>>, vector<2x32xf32>,
    %93 = vector.extract_strided_slice %25 {offsets = [4, 0], sizes = [2, 96], strides = [1, 1]} : vector<8x96xf32> to vector<2x96xf32>
    %c0_45 = arith.constant 0 : index
    %c0_46 = arith.constant 0 : index
    %94 = vector.load %arg9[%c0_45, %c0_46] : memref<32x96xf32, #tpu.memory_space<vmem>>, vector<32x96xf32>
    %cst_47 = arith.constant dense<0.000000e+00> : vector<2x96xf32>
    %95 = tpu.matmul %91, %94, %cst_47 {dimension_numbers = #tpu.dot_dimension_numbers<[1], [0], [0], [1], [0, 0, 1, 1], [], []>} : vector<2x32xf32>, vector<32x96xf32>, vector<2x96xf32> -> vector<2x96xf32>
    %c0_48 = arith.constant 0 : index
    %c0_49 = arith.constant 0 : index
    %96 = vector.load %arg10[%c0_48, %c0_49] : memref<1x96xf32, #tpu.memory_space<vmem>>, vector<1x96xf32>
    %97 = vector.broadcast %96 : vector<1x96xf32> to vector<2x96xf32>
    %98 = arith.addf %95, %97 : vector<2x96xf32>
    %99 = vector.extract_strided_slice %93 {offsets = [0, 0], sizes = [2, 32], strides = [1, 1]} : vector<2x96xf32> to vector<2x32xf32>
    %100 = vector.extract_strided_slice %98 {offsets = [0, 0], sizes = [2, 32], strides = [1, 1]} : vector<2x96xf32> to vector<2x32xf32>
    %101 = arith.addf %99, %100 : vector<2x32xf32>
    %102 = arith.negf %101 : vector<2x32xf32>
    %103 = math.exp %102 : vector<2x32xf32>
    %cst_50 = arith.constant 1.000000e+00 : f32
    %104 = vector.broadcast %cst_50 : f32 to vector<2x32xf32>
    %105 = arith.addf %104, %103 : vector<2x32xf32>
    %106 = arith.divf %104, %105 : vector<2x32xf32>
    %107 = vector.extract_strided_slice %93 {offsets = [0, 32], sizes = [2, 32], strides = [1, 1]} : vector<2x96xf32> to vector<2x32xf32>
    %108 = vector.extract_strided_slice %98 {offsets = [0, 32], sizes = [2, 32], strides = [1, 1]} : vector<2x96xf32> to vector<2x32xf32>
    %109 = arith.addf %107, %108 : vector<2x32xf32>
    %110 = arith.negf %109 : vector<2x32xf32>
    %111 = math.exp %110 : vector<2x32xf32>
    %cst_51 = arith.constant 1.000000e+00 : f32
    %112 = vector.broadcast %cst_51 : f32 to vector<2x32xf32>
    %113 = arith.addf %112, %111 : vector<2x32xf32>
    %114 = arith.divf %112, %113 : vector<2x32xf32>
    %115 = vector.extract_strided_slice %93 {offsets = [0, 64], sizes = [2, 32], strides = [1, 1]} : vector<2x96xf32> to vector<2x32xf32>
    %116 = vector.extract_strided_slice %98 {offsets = [0, 64], sizes = [2, 32], strides = [1, 1]} : vector<2x96xf32> to vector<2x32xf32>
    %117 = arith.mulf %106, %116 : vector<2x32xf32>
    %118 = arith.addf %115, %117 : vector<2x32xf32>
    %119 = math.tanh %118 : vector<2x32xf32>
    %cst_52 = arith.constant 1.000000e+00 : f32
    %120 = vector.broadcast %cst_52 : f32 to vector<2x32xf32>
    %121 = arith.subf %120, %114 : vector<2x32xf32>
    %122 = arith.mulf %121, %119 : vector<2x32xf32>
    %123 = arith.mulf %114, %91 : vector<2x32xf32>
    %124 = arith.addf %122, %123 : vector<2x32xf32>
    %c4 = arith.constant 4 : index
    %c0_53 = arith.constant 0 : index
    %125 = vector.load %arg14[%c4, %c0_53] : memref<8x32xf32, #tpu.memory_space<vmem>>, vector<2x32xf32>
    tpu.vector_store %arg14[%c4, %c0_53], %124 {strides = array<i32>} : memref<8x32xf32, #tpu.memory_space<vmem>>, vector<2x32xf32>,
    %126 = vector.extract_strided_slice %25 {offsets = [6, 0], sizes = [2, 96], strides = [1, 1]} : vector<8x96xf32> to vector<2x96xf32>
    %c0_54 = arith.constant 0 : index
    %c0_55 = arith.constant 0 : index
    %127 = vector.load %arg9[%c0_54, %c0_55] : memref<32x96xf32, #tpu.memory_space<vmem>>, vector<32x96xf32>
    %cst_56 = arith.constant dense<0.000000e+00> : vector<2x96xf32>
    %128 = tpu.matmul %124, %127, %cst_56 {dimension_numbers = #tpu.dot_dimension_numbers<[1], [0], [0], [1], [0, 0, 1, 1], [], []>} : vector<2x32xf32>, vector<32x96xf32>, vector<2x96xf32> -> vector<2x96xf32>
    %c0_57 = arith.constant 0 : index
    %c0_58 = arith.constant 0 : index
    %129 = vector.load %arg10[%c0_57, %c0_58] : memref<1x96xf32, #tpu.memory_space<vmem>>, vector<1x96xf32>
    %130 = vector.broadcast %129 : vector<1x96xf32> to vector<2x96xf32>
    %131 = arith.addf %128, %130 : vector<2x96xf32>
    %132 = vector.extract_strided_slice %126 {offsets = [0, 0], sizes = [2, 32], strides = [1, 1]} : vector<2x96xf32> to vector<2x32xf32>
    %133 = vector.extract_strided_slice %131 {offsets = [0, 0], sizes = [2, 32], strides = [1, 1]} : vector<2x96xf32> to vector<2x32xf32>
    %134 = arith.addf %132, %133 : vector<2x32xf32>
    %135 = arith.negf %134 : vector<2x32xf32>
    %136 = math.exp %135 : vector<2x32xf32>
    %cst_59 = arith.constant 1.000000e+00 : f32
    %137 = vector.broadcast %cst_59 : f32 to vector<2x32xf32>
    %138 = arith.addf %137, %136 : vector<2x32xf32>
    %139 = arith.divf %137, %138 : vector<2x32xf32>
    %140 = vector.extract_strided_slice %126 {offsets = [0, 32], sizes = [2, 32], strides = [1, 1]} : vector<2x96xf32> to vector<2x32xf32>
    %141 = vector.extract_strided_slice %131 {offsets = [0, 32], sizes = [2, 32], strides = [1, 1]} : vector<2x96xf32> to vector<2x32xf32>
    %142 = arith.addf %140, %141 : vector<2x32xf32>
    %143 = arith.negf %142 : vector<2x32xf32>
    %144 = math.exp %143 : vector<2x32xf32>
    %cst_60 = arith.constant 1.000000e+00 : f32
    %145 = vector.broadcast %cst_60 : f32 to vector<2x32xf32>
    %146 = arith.addf %145, %144 : vector<2x32xf32>
    %147 = arith.divf %145, %146 : vector<2x32xf32>
    %148 = vector.extract_strided_slice %126 {offsets = [0, 64], sizes = [2, 32], strides = [1, 1]} : vector<2x96xf32> to vector<2x32xf32>
    %149 = vector.extract_strided_slice %131 {offsets = [0, 64], sizes = [2, 32], strides = [1, 1]} : vector<2x96xf32> to vector<2x32xf32>
    %150 = arith.mulf %139, %149 : vector<2x32xf32>
    %151 = arith.addf %148, %150 : vector<2x32xf32>
    %152 = math.tanh %151 : vector<2x32xf32>
    %cst_61 = arith.constant 1.000000e+00 : f32
    %153 = vector.broadcast %cst_61 : f32 to vector<2x32xf32>
    %154 = arith.subf %153, %147 : vector<2x32xf32>
    %155 = arith.mulf %154, %152 : vector<2x32xf32>
    %156 = arith.mulf %147, %124 : vector<2x32xf32>
    %157 = arith.addf %155, %156 : vector<2x32xf32>
    %c6 = arith.constant 6 : index
    %c0_62 = arith.constant 0 : index
    %158 = vector.load %arg14[%c6, %c0_62] : memref<8x32xf32, #tpu.memory_space<vmem>>, vector<2x32xf32>
    tpu.vector_store %arg14[%c6, %c0_62], %157 {strides = array<i32>} : memref<8x32xf32, #tpu.memory_space<vmem>>, vector<2x32xf32>,
    %c0_63 = arith.constant 0 : index
    %c0_64 = arith.constant 0 : index
    %159 = vector.load %arg14[%c0_63, %c0_64] : memref<8x32xf32, #tpu.memory_space<vmem>>, vector<8x32xf32>
    %c0_65 = arith.constant 0 : index
    %c0_66 = arith.constant 0 : index
    %160 = vector.load %arg11[%c0_65, %c0_66] : memref<32x2xf32, #tpu.memory_space<vmem>>, vector<32x2xf32>
    %cst_67 = arith.constant dense<0.000000e+00> : vector<8x2xf32>
    %161 = tpu.matmul %159, %160, %cst_67 {dimension_numbers = #tpu.dot_dimension_numbers<[1], [0], [0], [1], [0, 0, 1, 1], [], []>} : vector<8x32xf32>, vector<32x2xf32>, vector<8x2xf32> -> vector<8x2xf32>
    %c0_68 = arith.constant 0 : index
    %c0_69 = arith.constant 0 : index
    %162 = vector.load %arg12[%c0_68, %c0_69] : memref<1x2xf32, #tpu.memory_space<vmem>>, vector<1x2xf32>
    %163 = vector.broadcast %162 : vector<1x2xf32> to vector<8x2xf32>
    %164 = arith.addf %161, %163 : vector<8x2xf32>
    %165 = arith.negf %164 : vector<8x2xf32>
    %166 = math.exp %165 : vector<8x2xf32>
    %cst_70 = arith.constant 1.000000e+00 : f32
    %167 = vector.broadcast %cst_70 : f32 to vector<8x2xf32>
    %168 = arith.addf %167, %166 : vector<8x2xf32>
    %169 = arith.divf %167, %168 : vector<8x2xf32>
    %c0_71 = arith.constant 0 : index
    %c0_72 = arith.constant 0 : index
    %170 = vector.load %arg13[%c0_71, %c0_72] : memref<8x2xf32, #tpu.memory_space<vmem>>, vector<8x2xf32>
    tpu.vector_store %arg13[%c0_71, %c0_72], %169 {strides = array<i32>} : memref<8x2xf32, #tpu.memory_space<vmem>>, vector<8x2xf32>,
    return
  }
}

</mosaic_0001>

<bundles_post_ra>
// kernel: policy_stn_forward.1
= control target key start
LH: loop header
LB: loop body
LE: loop exit
PB: predicated region body
PF: predicated region fallthrough
CT: control target
= control target key end

     0   :  { %vm177_vm0 = vcmask 1043456   ;;  %v13476_v0 = vmov 0.0   ;;  %vm173_vm1 = vcmask 31744   ;;  %vm13477_vm2 = vmmov 0   ;;  %s15995_s1 = inlined_call_operand.vmem [shape: f32[64,4,64], index: 1, kind: input, shape index: {}]   ;;  %s15996_s0 = inlined_call_operand.vmem [shape: f32[64,8,4], index: 0, kind: input, shape index: {}]   ;;  %s15997_s4 = inlined_call_operand.vmem [shape: bf16[64,64,32], index: 4, kind: input, shape index: {}]   ;;  %s15998_s2 = inlined_call_operand.vmem [shape: f32[1,1,64], index: 2, kind: input, shape index: {}]   ;;  %s15999_s3 = inlined_call_operand.vmem [shape: f32[1,1,64], index: 3, kind: input, shape index: {}]   ;;  %s16000_s9 = inlined_call_operand.vmem [shape: f32[32,96], index: 9, kind: input, shape index: {}]   ;;  %s16001_s7 = inlined_call_operand.vmem [shape: f32[32,96], index: 7, kind: input, shape index: {}]   ;;  %s16002_s5 = inlined_call_operand.vmem [shape: f32[1,32], index: 5, kind: input, shape index: {}]   ;;  %s16003_s6 = inlined_call_operand.vmem [shape: f32[1,32], index: 6, kind: input, shape index: {}]   ;;  %s16004_s10 = inlined_call_operand.vmem [shape: f32[1,96], index: 10, kind: input, shape index: {}]   ;;  %s16005_s8 = inlined_call_operand.vmem [shape: f32[1,96], index: 8, kind: input, shape index: {}]   ;;  %s16006_s11 = inlined_call_operand.vmem [shape: f32[32,2], index: 11, kind: input, shape index: {}]   ;;  %s16007_s12 = inlined_call_operand.vmem [shape: f32[1,2], index: 12, kind: input, shape index: {}]   ;;  %s16008_s13 = inlined_call_operand.vmem [shape: f32[8,2], index: 13, kind: output, shape index: {}]  }
   0x1   :  { %11861 = vmatprep.subr.mxu0 %v13476_v0  ;;  %11866 = vmatprep.subr.mxu1 %v13476_v0  ;;  %v109_v1 = vld [vmem:[%s15995_s1] sm:$0xf]  ;;  %v110_v2 = vld [vmem:[%s15995_s1 + $0x4] sm:$0xf]  ;;  %v46_v4 = vld [vmem:[%s15996_s0 + $0x8] sm:$0xff]  ;;  %vm5845_vm3 = vcmask 523264  }
   0x2   :  { %v45_v3 = vld [vmem:[%s15996_s0] sm:$0xff]  ;;  %11862 = vmatpush3.msk.msra.mxu0 %vm177_vm0, %v109_v1  ;;  %11863 = vmatprep.mubr.msk.f32.mxu0 %vm13477_vm2, %v13476_v0  ;;  %v111_v5 = vld [vmem:[%s15995_s1 + $0x8] sm:$0xf]  ;;  %v112_v6 = vld [vmem:[%s15995_s1 + $0xc] sm:$0xf]  ;;  %vm10110_vm4 = vcmask 261120  }
   0x3   :  { %11867 = vmatpush3.msk.msra.mxu1 %vm177_vm0, %v110_v2  ;;  %11868 = vmatprep.mubr.msk.f32.mxu1 %vm13477_vm2, %v13476_v0  ;;  %v47_v7 = vld [vmem:[%s15996_s0 + $0x10] sm:$0xff]  ;;  %v48_v8 = vld [vmem:[%s15996_s0 + $0x18] sm:$0xff]  ;;  %v49_v11 = vld [vmem:[%s15996_s0 + $0x20] sm:$0xff]  ;;  %vm10453_vm5 = vcmask 254976   ;;  %vm10572_vm6 = vcmask 257026   ;;  %vm10694_vm7 = vcmask 259076  }
   0x4   :  { %11864 = vmatmul.mubr.msk.f32.vlgmr.msra.gmra.mrb[0].mxu0 %vm173_vm1, %v45_v3  ;;  %11869 = vmatmul.mubr.msk.f32.vlgmr.msra.gmra.mrb[0].mxu1 %vm173_vm1, %v46_v4  ;;  %v113_v9 = vld [vmem:[%s15995_s1 + $0x10] sm:$0xf]  ;;  %v114_v10 = vld [vmem:[%s15995_s1 + $0x14] sm:$0xf]  ;;  %v50_v12 = vld [vmem:[%s15996_s0 + $0x28] sm:$0xff]  ;;  %vm10816_vm8 = vcmask 261126  }
   0x5   :  { %11871 = vmatprep.subr.mxu0 %v13476_v0  ;;  %11876 = vmatprep.subr.mxu1 %v13476_v0  ;;  %v115_v13 = vld [vmem:[%s15995_s1 + $0x18] sm:$0xf]  ;;  %v116_v14 = vld [vmem:[%s15995_s1 + $0x1c] sm:$0xf]  ;;  %v51_v15 = vld [vmem:[%s15996_s0 + $0x30] sm:$0xff]  ;;  %vm10909_vm9 = vcmask 15360  }
   0x6   :  { %11872 = vmatpush3.msk.msra.mxu0 %vm177_vm0, %v111_v5  ;;  %11873 = vmatprep.mubr.msk.f32.mxu0 %vm13477_vm2, %v13476_v0  ;;  %v52_v16 = vld [vmem:[%s15996_s0 + $0x38] sm:$0xff]  ;;  %v117_v17 = vld [vmem:[%s15995_s1 + $0x20] sm:$0xf]  ;;  %v118_v18 = vld [vmem:[%s15995_s1 + $0x24] sm:$0xf] }
   0x7   :  { %11877 = vmatpush3.msk.msra.mxu1 %vm177_vm0, %v112_v6  ;;  %11878 = vmatprep.mubr.msk.f32.mxu1 %vm13477_vm2, %v13476_v0  ;;  %v53_v19 = vld [vmem:[%s15996_s0 + $0x40] sm:$0xff]  ;;  %v54_v20 = vld [vmem:[%s15996_s0 + $0x48] sm:$0xff]  ;;  %v55_v23 = vld [vmem:[%s15996_s0 + $0x50] sm:$0xff] }
   0x8   :  { %11874 = vmatmul.mubr.msk.f32.vlgmr.msra.gmra.mrb[2].mxu0 %vm173_vm1, %v47_v7  ;;  %11879 = vmatmul.mubr.msk.f32.vlgmr.msra.gmra.mrb[2].mxu1 %vm173_vm1, %v48_v8  ;;  %v119_v21 = vld [vmem:[%s15995_s1 + $0x28] sm:$0xf]  ;;  %v120_v22 = vld [vmem:[%s15995_s1 + $0x2c] sm:$0xf]  ;;  %v56_v24 = vld [vmem:[%s15996_s0 + $0x58] sm:$0xff] }
   0x9   :  { %11881 = vmatprep.subr.mxu0 %v13476_v0  ;;  %11886 = vmatprep.subr.mxu1 %v13476_v0  ;;  %v121_v25 = vld [vmem:[%s15995_s1 + $0x30] sm:$0xf]  ;;  %v122_v26 = vld [vmem:[%s15995_s1 + $0x34] sm:$0xf]  ;;  %v57_v27 = vld [vmem:[%s15996_s0 + $0x60] sm:$0xff] }
   0xa   :  { %11882 = vmatpush3.msk.msra.mxu0 %vm177_vm0, %v113_v9  ;;  %11883 = vmatprep.mubr.msk.f32.mxu0 %vm13477_vm2, %v13476_v0  ;;  %v58_v28 = vld [vmem:[%s15996_s0 + $0x68] sm:$0xff]  ;;  %v123_v29 = vld [vmem:[%s15995_s1 + $0x38] sm:$0xf]  ;;  %v124_v30 = vld [vmem:[%s15995_s1 + $0x3c] sm:$0xf] }
   0xb   :  { %11887 = vmatpush3.msk.msra.mxu1 %vm177_vm0, %v114_v10  ;;  %11888 = vmatprep.mubr.msk.f32.mxu1 %vm13477_vm2, %v13476_v0  ;;  %v59_v31 = vld [vmem:[%s15996_s0 + $0x70] sm:$0xff]  ;;  %v60_v32 = vld [vmem:[%s15996_s0 + $0x78] sm:$0xff]  ;;  %v125_v33 = vld [vmem:[%s15995_s1 + $0x40] sm:$0xf] }
   0xc   :  { %11884 = vmatmul.mubr.msk.f32.vlgmr.msra.gmra.mrb[4].mxu0 %vm173_vm1, %v49_v11  ;;  %11889 = vmatmul.mubr.msk.f32.vlgmr.msra.gmra.mrb[4].mxu1 %vm173_vm1, %v50_v12  ;;  %v126_v34 = vld [vmem:[%s15995_s1 + $0x44] sm:$0xf]  ;;  %v62_v36 = vld [vmem:[%s15996_s0 + $0x88] sm:$0xff]  ;;  %v63_v39 = vld [vmem:[%s15996_s0 + $0x90] sm:$0xff] }
   0xd   :  { %11891 = vmatprep.subr.mxu0 %v13476_v0  ;;  %11896 = vmatprep.subr.mxu1 %v13476_v0  ;;  %v61_v35 = vld [vmem:[%s15996_s0 + $0x80] sm:$0xff]  ;;  %v127_v37 = vld [vmem:[%s15995_s1 + $0x48] sm:$0xf]  ;;  %v128_v38 = vld [vmem:[%s15995_s1 + $0x4c] sm:$0xf] }
   0xe   :  { %11892 = vmatpush3.msk.msra.mxu0 %vm177_vm0, %v115_v13  ;;  %11893 = vmatprep.mubr.msk.f32.mxu0 %vm13477_vm2, %v13476_v0  ;;  %v64_v40 = vld [vmem:[%s15996_s0 + $0x98] sm:$0xff]  ;;  %v129_v41 = vld [vmem:[%s15995_s1 + $0x50] sm:$0xf]  ;;  %v130_v42 = vld [vmem:[%s15995_s1 + $0x54] sm:$0xf] }
   0xf   :  { %11897 = vmatpush3.msk.msra.mxu1 %vm177_vm0, %v116_v14  ;;  %11898 = vmatprep.mubr.msk.f32.mxu1 %vm13477_vm2, %v13476_v0  ;;  %v65_v43 = vld [vmem:[%s15996_s0 + $0xa0] sm:$0xff]  ;;  %v66_v44 = vld [vmem:[%s15996_s0 + $0xa8] sm:$0xff]  ;;  %v131_v45 = vld [vmem:[%s15995_s1 + $0x58] sm:$0xf] }
  0x10   :  { %11894 = vmatmul.mubr.msk.f32.vlgmr.msra.gmra.mrb[6].mxu0 %vm173_vm1, %v51_v15  ;;  %11899 = vmatmul.mubr.msk.f32.vlgmr.msra.gmra.mrb[6].mxu1 %vm173_vm1, %v52_v16  ;;  %v132_v46 = vld [vmem:[%s15995_s1 + $0x5c] sm:$0xf]  ;;  %v67_v47 = vld [vmem:[%s15996_s0 + $0xb0] sm:$0xff]  ;;  %v133_v49 = vld [vmem:[%s15995_s1 + $0x60] sm:$0xf] }
  0x11   :  { %11901 = vmatprep.subr.mxu0 %v13476_v0  ;;  %11906 = vmatprep.subr.mxu1 %v13476_v0  ;;  %v68_v48 = vld [vmem:[%s15996_s0 + $0xb8] sm:$0xff]  ;;  %v134_v50 = vld [vmem:[%s15995_s1 + $0x64] sm:$0xf]  ;;  %v70_v52 = vld [vmem:[%s15996_s0 + $0xc8] sm:$0xff] }
  0x12   :  { %11902 = vmatpush3.msk.msra.mxu0 %vm177_vm0, %v117_v17  ;;  %11903 = vmatprep.mubr.msk.f32.mxu0 %vm13477_vm2, %v13476_v0  ;;  %v69_v51 = vld [vmem:[%s15996_s0 + $0xc0] sm:$0xff]  ;;  %v135_v53 = vld [vmem:[%s15995_s1 + $0x68] sm:$0xf]  ;;  %v136_v54 = vld [vmem:[%s15995_s1 + $0x6c] sm:$0xf] }
  0x13   :  { %11907 = vmatpush3.msk.msra.mxu1 %vm177_vm0, %v118_v18  ;;  %11908 = vmatprep.mubr.msk.f32.mxu1 %vm13477_vm2, %v13476_v0  ;;  %v71_v55 = vld [vmem:[%s15996_s0 + $0xd0] sm:$0xff]  ;;  %v72_v56 = vld [vmem:[%s15996_s0 + $0xd8] sm:$0xff]  ;;  %v73_v59 = vld [vmem:[%s15996_s0 + $0xe0] sm:$0xff] }
  0x14   :  { %11904 = vmatmul.mubr.msk.f32.vlgmr.msra.gmra.mrb[8].mxu0 %vm173_vm1, %v53_v19  ;;  %11909 = vmatmul.mubr.msk.f32.vlgmr.msra.gmra.mrb[8].mxu1 %vm173_vm1, %v54_v20  ;;  %v137_v57 = vld [vmem:[%s15995_s1 + $0x70] sm:$0xf]  ;;  %v138_v58 = vld [vmem:[%s15995_s1 + $0x74] sm:$0xf]  ;;  %v74_v60 = vld [vmem:[%s15996_s0 + $0xe8] sm:$0xff] }
  0x15   :  { %11911 = vmatprep.subr.mxu0 %v13476_v0  ;;  %11916 = vmatprep.subr.mxu1 %v13476_v0  ;;  %v139_v61 = vld [vmem:[%s15995_s1 + $0x78] sm:$0xf]  ;;  %v140_v62 = vld [vmem:[%s15995_s1 + $0x7c] sm:$0xf]  ;;  %v75_v63 = vld [vmem:[%s15996_s0 + $0xf0] sm:$0xff] }
  0x16   :  { %11912 = vmatpush3.msk.msra.mxu0 %vm177_vm0, %v119_v21  ;;  %11913 = vmatprep.mubr.msk.f32.mxu0 %vm13477_vm2, %v13476_v0  ;;  %v76_v1 = vld [vmem:[%s15996_s0 + $0xf8] sm:$0xff]  ;;  %v141_v2 = vld [vmem:[%s15995_s1 + $0x80] sm:$0xf]  ;;  %v142_v3 = vld [vmem:[%s15995_s1 + $0x84] sm:$0xf] }
  0x17   :  { %11917 = vmatpush3.msk.msra.mxu1 %vm177_vm0, %v120_v22  ;;  %11918 = vmatprep.mubr.msk.f32.mxu1 %vm13477_vm2, %v13476_v0  ;;  %v77_v4 = vld [vmem:[%s15996_s0 + $0x100] sm:$0xff]  ;;  %v78_v5 = vld [vmem:[%s15996_s0 + $0x108] sm:$0xff]  ;;  %v79_v8 = vld [vmem:[%s15996_s0 + $0x110] sm:$0xff] }
  0x18   :  { %11914 = vmatmul.mubr.msk.f32.vlgmr.msra.gmra.mrb[10].mxu0 %vm173_vm1, %v55_v23  ;;  %11919 = vmatmul.mubr.msk.f32.vlgmr.msra.gmra.mrb[10].mxu1 %vm173_vm1, %v56_v24  ;;  %v143_v6 = vld [vmem:[%s15995_s1 + $0x88] sm:$0xf]  ;;  %v144_v7 = vld [vmem:[%s15995_s1 + $0x8c] sm:$0xf]  ;;  %v80_v9 = vld [vmem:[%s15996_s0 + $0x118] sm:$0xff] }
  0x19   :  { %11921 = vmatprep.subr.mxu0 %v13476_v0  ;;  %11926 = vmatprep.subr.mxu1 %v13476_v0  ;;  %v145_v10 = vld [vmem:[%s15995_s1 + $0x90] sm:$0xf]  ;;  %v146_v11 = vld [vmem:[%s15995_s1 + $0x94] sm:$0xf]  ;;  %v81_v12 = vld [vmem:[%s15996_s0 + $0x120] sm:$0xff] }
  0x1a   :  { %11922 = vmatpush3.msk.msra.mxu0 %vm177_vm0, %v121_v25  ;;  %11923 = vmatprep.mubr.msk.f32.mxu0 %vm13477_vm2, %v13476_v0  ;;  %v82_v13 = vld [vmem:[%s15996_s0 + $0x128] sm:$0xff]  ;;  %v147_v14 = vld [vmem:[%s15995_s1 + $0x98] sm:$0xf]  ;;  %v148_v15 = vld [vmem:[%s15995_s1 + $0x9c] sm:$0xf] }
  0x1b   :  { %11927 = vmatpush3.msk.msra.mxu1 %vm177_vm0, %v122_v26  ;;  %11928 = vmatprep.mubr.msk.f32.mxu1 %vm13477_vm2, %v13476_v0  ;;  %v83_v16 = vld [vmem:[%s15996_s0 + $0x130] sm:$0xff]  ;;  %v84_v17 = vld [vmem:[%s15996_s0 + $0x138] sm:$0xff]  ;;  %v149_v18 = vld [vmem:[%s15995_s1 + $0xa0] sm:$0xf] }
  0x1c   :  { %11924 = vmatmul.mubr.msk.f32.vlgmr.msra.gmra.mrb[12].mxu0 %vm173_vm1, %v57_v27  ;;  %11929 = vmatmul.mubr.msk.f32.vlgmr.msra.gmra.mrb[12].mxu1 %vm173_vm1, %v58_v28  ;;  %v150_v19 = vld [vmem:[%s15995_s1 + $0xa4] sm:$0xf]  ;;  %v86_v21 = vld [vmem:[%s15996_s0 + $0x148] sm:$0xff]  ;;  %v87_v24 = vld [vmem:[%s15996_s0 + $0x150] sm:$0xff] }
  0x1d   :  { %11931 = vmatprep.subr.mxu0 %v13476_v0  ;;  %11936 = vmatprep.subr.mxu1 %v13476_v0  ;;  %v85_v20 = vld [vmem:[%s15996_s0 + $0x140] sm:$0xff]  ;;  %v151_v22 = vld [vmem:[%s15995_s1 + $0xa8] sm:$0xf]  ;;  %v152_v23 = vld [vmem:[%s15995_s1 + $0xac] sm:$0xf] }
  0x1e   :  { %11932 = vmatpush3.msk.msra.mxu0 %vm177_vm0, %v123_v29  ;;  %11933 = vmatprep.mubr.msk.f32.mxu0 %vm13477_vm2, %v13476_v0  ;;  %v88_v25 = vld [vmem:[%s15996_s0 + $0x158] sm:$0xff]  ;;  %v153_v26 = vld [vmem:[%s15995_s1 + $0xb0] sm:$0xf]  ;;  %v154_v27 = vld [vmem:[%s15995_s1 + $0xb4] sm:$0xf] }
  0x1f   :  { %11937 = vmatpush3.msk.msra.mxu1 %vm177_vm0, %v124_v30  ;;  %11938 = vmatprep.mubr.msk.f32.mxu1 %vm13477_vm2, %v13476_v0  ;;  %v89_v28 = vld [vmem:[%s15996_s0 + $0x160] sm:$0xff]  ;;  %v90_v29 = vld [vmem:[%s15996_s0 + $0x168] sm:$0xff]  ;;  %v155_v30 = vld [vmem:[%s15995_s1 + $0xb8] sm:$0xf] }
  0x20   :  { %11934 = vmatmul.mubr.msk.f32.vlgmr.msra.gmra.mrb[14].mxu0 %vm173_vm1, %v59_v31  ;;  %11939 = vmatmul.mubr.msk.f32.vlgmr.msra.gmra.mrb[14].mxu1 %vm173_vm1, %v60_v32  ;;  %v156_v31 = vld [vmem:[%s15995_s1 + $0xbc] sm:$0xf]  ;;  %v91_v32 = vld [vmem:[%s15996_s0 + $0x170] sm:$0xff] }
  0x21   :  { %11941 = vmatprep.subr.mxu0 %v13476_v0  ;;  %11946 = vmatprep.subr.mxu1 %v13476_v0 }
  0x22   :  { %11942 = vmatpush3.msk.msra.mxu0 %vm177_vm0, %v125_v33  ;;  %11943 = vmatprep.mubr.msk.f32.mxu0 %vm13477_vm2, %v13476_v0  ;;  %v92_v33 = vld [vmem:[%s15996_s0 + $0x178] sm:$0xff] }
  0x23   :  { %11947 = vmatpush3.msk.msra.mxu1 %vm177_vm0, %v126_v34  ;;  %11948 = vmatprep.mubr.msk.f32.mxu1 %vm13477_vm2, %v13476_v0  ;;  %v157_v34 = vld [vmem:[%s15995_s1 + $0xc0] sm:$0xf] }
  0x24   :  { %11944 = vmatmul.mubr.msk.f32.vlgmr.msra.gmra.mrb[16].mxu0 %vm173_vm1, %v61_v35  ;;  %11951 = vmatprep.subr.mxu0 %v13476_v0  ;;  %v158_v35 = vld [vmem:[%s15995_s1 + $0xc4] sm:$0xf] }
  0x25   :  { %11949 = vmatmul.mubr.msk.f32.vlgmr.msra.gmra.mrb[16].mxu1 %vm173_vm1, %v62_v36  ;;  %11952 = vmatpush3.msk.msra.mxu0 %vm177_vm0, %v127_v37  ;;  %v93_v36 = vld [vmem:[%s15996_s0 + $0x180] sm:$0xff]  ;;  %v94_v37 = vld [vmem:[%s15996_s0 + $0x188] sm:$0xff] }
  0x26   :  { %11956 = vmatprep.subr.mxu1 %v13476_v0  ;;  %11953 = vmatprep.mubr.msk.f32.mxu0 %vm13477_vm2, %v13476_v0 }
  0x27   :  { %11957 = vmatpush3.msk.msra.mxu1 %vm177_vm0, %v128_v38  ;;  %11958 = vmatprep.mubr.msk.f32.mxu1 %vm13477_vm2, %v13476_v0  ;;  %v159_v38 = vld [vmem:[%s15995_s1 + $0xc8] sm:$0xf] }
  0x28   :  { %11954 = vmatmul.mubr.msk.f32.vlgmr.msra.gmra.mrb[18].mxu0 %vm173_vm1, %v63_v39  ;;  %11961 = vmatprep.subr.mxu0 %v13476_v0  ;;  %v160_v39 = vld [vmem:[%s15995_s1 + $0xcc] sm:$0xf] }
  0x29   :  { %11959 = vmatmul.mubr.msk.f32.vlgmr.msra.gmra.mrb[18].mxu1 %vm173_vm1, %v64_v40  ;;  %11962 = vmatpush3.msk.msra.mxu0 %vm177_vm0, %v129_v41  ;;  %v95_v40 = vld [vmem:[%s15996_s0 + $0x190] sm:$0xff]  ;;  %v96_v41 = vld [vmem:[%s15996_s0 + $0x198] sm:$0xff] }
  0x2a   :  { %11966 = vmatprep.subr.mxu1 %v13476_v0  ;;  %11963 = vmatprep.mubr.msk.f32.mxu0 %vm13477_vm2, %v13476_v0 }
  0x2b   :  { %11967 = vmatpush3.msk.msra.mxu1 %vm177_vm0, %v130_v42  ;;  %11968 = vmatprep.mubr.msk.f32.mxu1 %vm13477_vm2, %v13476_v0  ;;  %v161_v42 = vld [vmem:[%s15995_s1 + $0xd0] sm:$0xf] }
  0x2c   :  { %11964 = vmatmul.mubr.msk.f32.vlgmr.msra.gmra.mrb[20].mxu0 %vm173_vm1, %v65_v43  ;;  %11971 = vmatprep.subr.mxu0 %v13476_v0  ;;  %v162_v43 = vld [vmem:[%s15995_s1 + $0xd4] sm:$0xf] }
  0x2d   :  { %11969 = vmatmul.mubr.msk.f32.vlgmr.msra.gmra.mrb[20].mxu1 %vm173_vm1, %v66_v44  ;;  %11972 = vmatpush3.msk.msra.mxu0 %vm177_vm0, %v131_v45  ;;  %v97_v44 = vld [vmem:[%s15996_s0 + $0x1a0] sm:$0xff]  ;;  %v98_v45 = vld [vmem:[%s15996_s0 + $0x1a8] sm:$0xff] }
  0x2e   :  { %11976 = vmatprep.subr.mxu1 %v13476_v0  ;;  %11973 = vmatprep.mubr.msk.f32.mxu0 %vm13477_vm2, %v13476_v0 }
  0x2f   :  { %11977 = vmatpush3.msk.msra.mxu1 %vm177_vm0, %v132_v46  ;;  %11978 = vmatprep.mubr.msk.f32.mxu1 %vm13477_vm2, %v13476_v0  ;;  %v163_v46 = vld [vmem:[%s15995_s1 + $0xd8] sm:$0xf] }
  0x30   :  { %11974 = vmatmul.mubr.msk.f32.vlgmr.msra.gmra.mrb[22].mxu0 %vm173_vm1, %v67_v47  ;;  %11981 = vmatprep.subr.mxu0 %v13476_v0  ;;  %v164_v47 = vld [vmem:[%s15995_s1 + $0xdc] sm:$0xf] }
  0x31   :  { %11979 = vmatmul.mubr.msk.f32.vlgmr.msra.gmra.mrb[22].mxu1 %vm173_vm1, %v68_v48  ;;  %11982 = vmatpush3.msk.msra.mxu0 %vm177_vm0, %v133_v49  ;;  %v99_v48 = vld [vmem:[%s15996_s0 + $0x1b0] sm:$0xff]  ;;  %v100_v49 = vld [vmem:[%s15996_s0 + $0x1b8] sm:$0xff] }
  0x32   :  { %11986 = vmatprep.subr.mxu1 %v13476_v0  ;;  %11983 = vmatprep.mubr.msk.f32.mxu0 %vm13477_vm2, %v13476_v0 }
  0x33   :  { %11987 = vmatpush3.msk.msra.mxu1 %vm177_vm0, %v134_v50  ;;  %11988 = vmatprep.mubr.msk.f32.mxu1 %vm13477_vm2, %v13476_v0  ;;  %v165_v50 = vld [vmem:[%s15995_s1 + $0xe0] sm:$0xf] }
  0x34   :  { %11984 = vmatmul.mubr.msk.f32.vlgmr.msra.gmra.mrb[24].mxu0 %vm173_vm1, %v69_v51  ;;  %11991 = vmatprep.subr.mxu0 %v13476_v0  ;;  %v166_v51 = vld [vmem:[%s15995_s1 + $0xe4] sm:$0xf] }
  0x35   :  { %11989 = vmatmul.mubr.msk.f32.vlgmr.msra.gmra.mrb[24].mxu1 %vm173_vm1, %v70_v52  ;;  %11992 = vmatpush3.msk.msra.mxu0 %vm177_vm0, %v135_v53  ;;  %v101_v52 = vld [vmem:[%s15996_s0 + $0x1c0] sm:$0xff]  ;;  %v102_v53 = vld [vmem:[%s15996_s0 + $0x1c8] sm:$0xff] }
  0x36   :  { %11996 = vmatprep.subr.mxu1 %v13476_v0  ;;  %11993 = vmatprep.mubr.msk.f32.mxu0 %vm13477_vm2, %v13476_v0 }
  0x37   :  { %11997 = vmatpush3.msk.msra.mxu1 %vm177_vm0, %v136_v54  ;;  %11998 = vmatprep.mubr.msk.f32.mxu1 %vm13477_vm2, %v13476_v0  ;;  %v167_v54 = vld [vmem:[%s15995_s1 + $0xe8] sm:$0xf] }
  0x38   :  { %11994 = vmatmul.mubr.msk.f32.vlgmr.msra.gmra.mrb[26].mxu0 %vm173_vm1, %v71_v55  ;;  %12001 = vmatprep.subr.mxu0 %v13476_v0  ;;  %v168_v55 = vld [vmem:[%s15995_s1 + $0xec] sm:$0xf] }
  0x39   :  { %11999 = vmatmul.mubr.msk.f32.vlgmr.msra.gmra.mrb[26].mxu1 %vm173_vm1, %v72_v56  ;;  %12002 = vmatpush3.msk.msra.mxu0 %vm177_vm0, %v137_v57  ;;  %v103_v56 = vld [vmem:[%s15996_s0 + $0x1d0] sm:$0xff]  ;;  %v104_v57 = vld [vmem:[%s15996_s0 + $0x1d8] sm:$0xff] }
  0x3a   :  { %12006 = vmatprep.subr.mxu1 %v13476_v0  ;;  %12003 = vmatprep.mubr.msk.f32.mxu0 %vm13477_vm2, %v13476_v0 }
  0x3b   :  { %12007 = vmatpush3.msk.msra.mxu1 %vm177_vm0, %v138_v58  ;;  %12008 = vmatprep.mubr.msk.f32.mxu1 %vm13477_vm2, %v13476_v0  ;;  %v169_v58 = vld [vmem:[%s15995_s1 + $0xf0] sm:$0xf] }
  0x3c   :  { %12004 = vmatmul.mubr.msk.f32.vlgmr.msra.gmra.mrb[28].mxu0 %vm173_vm1, %v73_v59  ;;  %12011 = vmatprep.subr.mxu0 %v13476_v0  ;;  %v170_v59 = vld [vmem:[%s15995_s1 + $0xf4] sm:$0xf] }
  0x3d   :  { %12009 = vmatmul.mubr.msk.f32.vlgmr.msra.gmra.mrb[28].mxu1 %vm173_vm1, %v74_v60  ;;  %12012 = vmatpush3.msk.msra.mxu0 %vm177_vm0, %v139_v61  ;;  %v105_v60 = vld [vmem:[%s15996_s0 + $0x1e0] sm:$0xff]  ;;  %v106_v61 = vld [vmem:[%s15996_s0 + $0x1e8] sm:$0xff] }
  0x3e   :  { %12016 = vmatprep.subr.mxu1 %v13476_v0  ;;  %12013 = vmatprep.mubr.msk.f32.mxu0 %vm13477_vm2, %v13476_v0 }
  0x3f   :  { %12017 = vmatpush3.msk.msra.mxu1 %vm177_vm0, %v140_v62  ;;  %12018 = vmatprep.mubr.msk.f32.mxu1 %vm13477_vm2, %v13476_v0  ;;  %v171_v62 = vld [vmem:[%s15995_s1 + $0xf8] sm:$0xf] }
  0x40   :  { %12014 = vmatmul.mubr.msk.f32.vlgmr.msra.gmra.mrb[30].mxu0 %vm173_vm1, %v75_v63  ;;  %12021 = vmatprep.subr.mxu0 %v13476_v0  ;;  %v172_v63 = vld [vmem:[%s15995_s1 + $0xfc] sm:$0xf] }
  0x41   :  { %12019 = vmatmul.mubr.msk.f32.vlgmr.msra.gmra.mrb[30].mxu1 %vm173_vm1, %v76_v1  ;;  %12022 = vmatpush3.msk.msra.mxu0 %vm177_vm0, %v141_v2  ;;  %v107_v1 = vld [vmem:[%s15996_s0 + $0x1f0] sm:$0xff]  ;;  %v108_v2 = vld [vmem:[%s15996_s0 + $0x1f8] sm:$0xff] }
  0x42   :  { %12026 = vmatprep.subr.mxu1 %v13476_v0  ;;  %12023 = vmatprep.mubr.msk.f32.mxu0 %vm13477_vm2, %v13476_v0 }
  0x43   :  { %12027 = vmatpush3.msk.msra.mxu1 %vm177_vm0, %v142_v3  ;;  %12028 = vmatprep.mubr.msk.f32.mxu1 %vm13477_vm2, %v13476_v0  ;;  %v13056_v3 = vld [vmem:[%s15997_s4] sm:$0xff]  }
  0x44   :  { %12024 = vmatmul.mubr.msk.f32.vlgmr.msra.gmra.mrb[32].mxu0 %vm173_vm1, %v77_v4  ;;  %12031 = vmatprep.subr.mxu0 %v13476_v0  ;;  %v13057_v4 = vld [vmem:[%s15997_s4 + $0x20] sm:$0xff]  }
  0x45   :  { %12029 = vmatmul.mubr.msk.f32.vlgmr.msra.gmra.mrb[32].mxu1 %vm173_vm1, %v78_v5  ;;  %12032 = vmatpush3.msk.msra.mxu0 %vm177_vm0, %v143_v6  ;;  %v13058_v5 = vld [vmem:[%s15997_s4 + $0x8] sm:$0xff]  }
  0x46   :  { %12036 = vmatprep.subr.mxu1 %v13476_v0  ;;  %12033 = vmatprep.mubr.msk.f32.mxu0 %vm13477_vm2, %v13476_v0  ;;  %v13059_v6 = vld [vmem:[%s15997_s4 + $0x28] sm:$0xff]  }
  0x47   :  { %12037 = vmatpush3.msk.msra.mxu1 %vm177_vm0, %v144_v7  ;;  %12038 = vmatprep.mubr.msk.f32.mxu1 %vm13477_vm2, %v13476_v0  ;;  %v13060_v7 = vld [vmem:[%s15997_s4 + $0x10] sm:$0xff]  }
  0x48   :  { %12034 = vmatmul.mubr.msk.f32.vlgmr.msra.gmra.mrb[34].mxu0 %vm173_vm1, %v79_v8  ;;  %12041 = vmatprep.subr.mxu0 %v13476_v0  ;;  %v13061_v8 = vld [vmem:[%s15997_s4 + $0x30] sm:$0xff]  }
  0x49   :  { %12039 = vmatmul.mubr.msk.f32.vlgmr.msra.gmra.mrb[34].mxu1 %vm173_vm1, %v80_v9  ;;  %12042 = vmatpush3.msk.msra.mxu0 %vm177_vm0, %v145_v10  ;;  %v13062_v9 = vld [vmem:[%s15997_s4 + $0x18] sm:$0xff]  }
  0x4a   :  { %12046 = vmatprep.subr.mxu1 %v13476_v0  ;;  %12043 = vmatprep.mubr.msk.f32.mxu0 %vm13477_vm2, %v13476_v0  ;;  %v13063_v10 = vld [vmem:[%s15997_s4 + $0x38] sm:$0xff]  }
  0x4b   :  { %12047 = vmatpush3.msk.msra.mxu1 %vm177_vm0, %v146_v11  ;;  %12048 = vmatprep.mubr.msk.f32.mxu1 %vm13477_vm2, %v13476_v0  ;;  %v14296_v11 = vld [vmem:[%s15998_s2] ss:$0 sm:$0xff] }
  0x4c   :  { %12044 = vmatmul.mubr.msk.f32.vlgmr.msra.gmra.mrb[36].mxu0 %vm173_vm1, %v81_v12  ;;  %12051 = vmatprep.subr.mxu0 %v13476_v0  ;;  %v14301_v12 = vld [vmem:[%s15999_s3] ss:$0 sm:$0xff] }
  0x4d   :  { %12049 = vmatmul.mubr.msk.f32.vlgmr.msra.gmra.mrb[36].mxu1 %vm173_vm1, %v82_v13  ;;  %12052 = vmatpush3.msk.msra.mxu0 %vm177_vm0, %v147_v14 }
  0x4e   :  { %12056 = vmatprep.subr.mxu1 %v13476_v0  ;;  %12053 = vmatprep.mubr.msk.f32.mxu0 %vm13477_vm2, %v13476_v0 }
  0x4f   :  { %12057 = vmatpush3.msk.msra.mxu1 %vm177_vm0, %v148_v15  ;;  %12058 = vmatprep.mubr.msk.f32.mxu1 %vm13477_vm2, %v13476_v0 }
  0x50   :  { %12054 = vmatmul.mubr.msk.f32.vlgmr.msra.gmra.mrb[38].mxu0 %vm173_vm1, %v83_v16  ;;  %12061 = vmatprep.subr.mxu0 %v13476_v0 }
  0x51   :  { %12059 = vmatmul.mubr.msk.f32.vlgmr.msra.gmra.mrb[38].mxu1 %vm173_vm1, %v84_v17  ;;  %12062 = vmatpush3.msk.msra.mxu0 %vm177_vm0, %v149_v18 }
  0x52   :  { %12066 = vmatprep.subr.mxu1 %v13476_v0  ;;  %12063 = vmatprep.mubr.msk.f32.mxu0 %vm13477_vm2, %v13476_v0 }
  0x53   :  { %12067 = vmatpush3.msk.msra.mxu1 %vm177_vm0, %v150_v19  ;;  %12068 = vmatprep.mubr.msk.f32.mxu1 %vm13477_vm2, %v13476_v0 }
  0x54   :  { %12064 = vmatmul.mubr.msk.f32.vlgmr.msra.gmra.mrb[40].mxu0 %vm173_vm1, %v85_v20  ;;  %12071 = vmatprep.subr.mxu0 %v13476_v0 }
  0x55   :  { %12069 = vmatmul.mubr.msk.f32.vlgmr.msra.gmra.mrb[40].mxu1 %vm173_vm1, %v86_v21  ;;  %12072 = vmatpush3.msk.msra.mxu0 %vm177_vm0, %v151_v22 }
  0x56   :  { %12076 = vmatprep.subr.mxu1 %v13476_v0  ;;  %12073 = vmatprep.mubr.msk.f32.mxu0 %vm13477_vm2, %v13476_v0 }
  0x57   :  { %12077 = vmatpush3.msk.msra.mxu1 %vm177_vm0, %v152_v23  ;;  %12078 = vmatprep.mubr.msk.f32.mxu1 %vm13477_vm2, %v13476_v0 }
  0x58   :  { %12074 = vmatmul.mubr.msk.f32.vlgmr.msra.gmra.mrb[42].mxu0 %vm173_vm1, %v87_v24  ;;  %12081 = vmatprep.subr.mxu0 %v13476_v0 }
  0x59   :  { %12079 = vmatmul.mubr.msk.f32.vlgmr.msra.gmra.mrb[42].mxu1 %vm173_vm1, %v88_v25  ;;  %12082 = vmatpush3.msk.msra.mxu0 %vm177_vm0, %v153_v26 }
  0x5a   :  { %12086 = vmatprep.subr.mxu1 %v13476_v0  ;;  %12083 = vmatprep.mubr.msk.f32.mxu0 %vm13477_vm2, %v13476_v0 }
  0x5b   :  { %12087 = vmatpush3.msk.msra.mxu1 %vm177_vm0, %v154_v27  ;;  %12088 = vmatprep.mubr.msk.f32.mxu1 %vm13477_vm2, %v13476_v0 }
  0x5c   :  { %12084 = vmatmul.mubr.msk.f32.vlgmr.msra.gmra.mrb[44].mxu0 %vm173_vm1, %v89_v28  ;;  %12091 = vmatprep.subr.mxu0 %v13476_v0 }
  0x5d   :  { %12089 = vmatmul.mubr.msk.f32.vlgmr.msra.gmra.mrb[44].mxu1 %vm173_vm1, %v90_v29  ;;  %12092 = vmatpush3.msk.msra.mxu0 %vm177_vm0, %v155_v30 }
  0x5e   :  { %12096 = vmatprep.subr.mxu1 %v13476_v0  ;;  %12093 = vmatprep.mubr.msk.f32.mxu0 %vm13477_vm2, %v13476_v0 }
  0x5f   :  { %12097 = vmatpush3.msk.msra.mxu1 %vm177_vm0, %v156_v31  ;;  %12098 = vmatprep.mubr.msk.f32.mxu1 %vm13477_vm2, %v13476_v0 }
  0x60   :  { %12094 = vmatmul.mubr.msk.f32.vlgmr.msra.gmra.mrb[46].mxu0 %vm173_vm1, %v91_v32  ;;  %12101 = vmatprep.subr.mxu0 %v13476_v0 }
  0x61   :  { %12099 = vmatmul.mubr.msk.f32.vlgmr.msra.gmra.mrb[46].mxu1 %vm173_vm1, %v92_v33  ;;  %12102 = vmatpush3.msk.msra.mxu0 %vm177_vm0, %v157_v34  ;;  %v13064_v34 = vld [vmem:[%s15997_s4 + $0x40] sm:$0xff]  }
  0x62   :  { %12106 = vmatprep.subr.mxu1 %v13476_v0  ;;  %12103 = vmatprep.mubr.msk.f32.mxu0 %vm13477_vm2, %v13476_v0 }
  0x63   :  { %12107 = vmatpush3.msk.msra.mxu1 %vm177_vm0, %v158_v35  ;;  %12108 = vmatprep.mubr.msk.f32.mxu1 %vm13477_vm2, %v13476_v0 }
  0x64   :  { %12104 = vmatmul.mubr.msk.f32.vlgmr.msra.gmra.mrb[48].mxu0 %vm173_vm1, %v93_v36  ;;  %12111 = vmatprep.subr.mxu0 %v13476_v0 }
  0x65   :  { %12109 = vmatmul.mubr.msk.f32.vlgmr.msra.gmra.mrb[48].mxu1 %vm173_vm1, %v94_v37  ;;  %12112 = vmatpush3.msk.msra.mxu0 %vm177_vm0, %v159_v38  ;;  %v13065_v38 = vld [vmem:[%s15997_s4 + $0x60] sm:$0xff]  }
  0x66   :  { %12116 = vmatprep.subr.mxu1 %v13476_v0  ;;  %12113 = vmatprep.mubr.msk.f32.mxu0 %vm13477_vm2, %v13476_v0 }
  0x67   :  { %12117 = vmatpush3.msk.msra.mxu1 %vm177_vm0, %v160_v39  ;;  %12118 = vmatprep.mubr.msk.f32.mxu1 %vm13477_vm2, %v13476_v0 }
  0x68   :  { %12114 = vmatmul.mubr.msk.f32.vlgmr.msra.gmra.mrb[50].mxu0 %vm173_vm1, %v95_v40  ;;  %12121 = vmatprep.subr.mxu0 %v13476_v0 }
  0x69   :  { %12119 = vmatmul.mubr.msk.f32.vlgmr.msra.gmra.mrb[50].mxu1 %vm173_vm1, %v96_v41  ;;  %12122 = vmatpush3.msk.msra.mxu0 %vm177_vm0, %v161_v42 }
  0x6a   :  { %12126 = vmatprep.subr.mxu1 %v13476_v0  ;;  %12123 = vmatprep.mubr.msk.f32.mxu0 %vm13477_vm2, %v13476_v0 }
  0x6b   :  { %12127 = vmatpush3.msk.msra.mxu1 %vm177_vm0, %v162_v43  ;;  %12128 = vmatprep.mubr.msk.f32.mxu1 %vm13477_vm2, %v13476_v0 }
  0x6c   :  { %12124 = vmatmul.mubr.msk.f32.vlgmr.msra.gmra.mrb[52].mxu0 %vm173_vm1, %v97_v44  ;;  %12131 = vmatprep.subr.mxu0 %v13476_v0 }
  0x6d   :  { %12129 = vmatmul.mubr.msk.f32.vlgmr.msra.gmra.mrb[52].mxu1 %vm173_vm1, %v98_v45  ;;  %12132 = vmatpush3.msk.msra.mxu0 %vm177_vm0, %v163_v46 }
  0x6e   :  { %12136 = vmatprep.subr.mxu1 %v13476_v0  ;;  %12133 = vmatprep.mubr.msk.f32.mxu0 %vm13477_vm2, %v13476_v0 }
  0x6f   :  { %12137 = vmatpush3.msk.msra.mxu1 %vm177_vm0, %v164_v47  ;;  %12138 = vmatprep.mubr.msk.f32.mxu1 %vm13477_vm2, %v13476_v0  ;;  %v13066_v47 = vld [vmem:[%s15997_s4 + $0x48] sm:$0xff]  }
  0x70   :  { %12134 = vmatmul.mubr.msk.f32.vlgmr.msra.gmra.mrb[54].mxu0 %vm173_vm1, %v99_v48  ;;  %12141 = vmatprep.subr.mxu0 %v13476_v0  ;;  %v13067_v48 = vld [vmem:[%s15997_s4 + $0x68] sm:$0xff]  }
  0x71   :  { %12139 = vmatmul.mubr.msk.f32.vlgmr.msra.gmra.mrb[54].mxu1 %vm173_vm1, %v100_v49  ;;  %12142 = vmatpush3.msk.msra.mxu0 %vm177_vm0, %v165_v50 }
  0x72   :  { %12146 = vmatprep.subr.mxu1 %v13476_v0  ;;  %12143 = vmatprep.mubr.msk.f32.mxu0 %vm13477_vm2, %v13476_v0 }
  0x73   :  { %12147 = vmatpush3.msk.msra.mxu1 %vm177_vm0, %v166_v51  ;;  %12148 = vmatprep.mubr.msk.f32.mxu1 %vm13477_vm2, %v13476_v0  ;;  %v13068_v51 = vld [vmem:[%s15997_s4 + $0x50] sm:$0xff]  }
  0x74   :  { %12144 = vmatmul.mubr.msk.f32.vlgmr.msra.gmra.mrb[56].mxu0 %vm173_vm1, %v101_v52  ;;  %12151 = vmatprep.subr.mxu0 %v13476_v0 }
  0x75   :  { %12149 = vmatmul.mubr.msk.f32.vlgmr.msra.gmra.mrb[56].mxu1 %vm173_vm1, %v102_v53  ;;  %12152 = vmatpush3.msk.msra.mxu0 %vm177_vm0, %v167_v54  ;;  %v13069_v54 = vld [vmem:[%s15997_s4 + $0x70] sm:$0xff]  }
  0x76   :  { %12156 = vmatprep.subr.mxu1 %v13476_v0  ;;  %12153 = vmatprep.mubr.msk.f32.mxu0 %vm13477_vm2, %v13476_v0 }
  0x77   :  { %12157 = vmatpush3.msk.msra.mxu1 %vm177_vm0, %v168_v55  ;;  %12158 = vmatprep.mubr.msk.f32.mxu1 %vm13477_vm2, %v13476_v0 }
  0x78   :  { %12154 = vmatmul.mubr.msk.f32.vlgmr.msra.gmra.mrb[58].mxu0 %vm173_vm1, %v103_v56  ;;  %12161 = vmatprep.subr.mxu0 %v13476_v0 }
  0x79   :  { %12159 = vmatmul.mubr.msk.f32.vlgmr.msra.gmra.mrb[58].mxu1 %vm173_vm1, %v104_v57  ;;  %12162 = vmatpush3.msk.msra.mxu0 %vm177_vm0, %v169_v58  ;;  %v13070_v57 = vld [vmem:[%s15997_s4 + $0x58] sm:$0xff]  }
  0x7a   :  { %12166 = vmatprep.subr.mxu1 %v13476_v0  ;;  %12163 = vmatprep.mubr.msk.f32.mxu0 %vm13477_vm2, %v13476_v0 }
  0x7b   :  { %12167 = vmatpush3.msk.msra.mxu1 %vm177_vm0, %v170_v59  ;;  %12168 = vmatprep.mubr.msk.f32.mxu1 %vm13477_vm2, %v13476_v0 }
  0x7c   :  { %12164 = vmatmul.mubr.msk.f32.vlgmr.msra.gmra.mrb[60].mxu0 %vm173_vm1, %v105_v60  ;;  %12171 = vmatprep.subr.mxu0 %v13476_v0 }
  0x7d   :  { %12169 = vmatmul.mubr.msk.f32.vlgmr.msra.gmra.mrb[60].mxu1 %vm173_vm1, %v106_v61  ;;  %12172 = vmatpush3.msk.msra.mxu0 %vm177_vm0, %v171_v62  ;;  %v13071_v61 = vld [vmem:[%s15997_s4 + $0x78] sm:$0xff]  }
  0x7e   :  { %12176 = vmatprep.subr.mxu1 %v13476_v0  ;;  %12173 = vmatprep.mubr.msk.f32.mxu0 %vm13477_vm2, %v13476_v0 }
  0x7f   :  { %12177 = vmatpush3.msk.msra.mxu1 %vm177_vm0, %v172_v63  ;;  %12178 = vmatprep.mubr.msk.f32.mxu1 %vm13477_vm2, %v13476_v0 }
  0x80   :  { %12174 = vmatmul.mubr.msk.f32.vlgmr.msra.gmra.mrb[62].mxu0 %vm173_vm1, %v107_v1  ;;  %12181 = vmatprep.subr.bf16.mxu0 %v13476_v0 }
  0x81   :  { %12193 = vmatprep.subr.bf16.mxu1 %v13476_v0  ;;  %12179 = vmatmul.mubr.msk.f32.vlgmr.msra.gmra.mrb[62].mxu1 %vm173_vm1, %v108_v2 }
  0x82   :  { %12182 = vmatpush3.bf16.msra.mxu0 %v13056_v3  ;;  %12194 = vmatpush3.bf16.msra.mxu1 %v13057_v4 }
  0x83   :  { %12183 = vmatprep.subr.bf16.mxu0 %v13476_v0  ;;  %12195 = vmatprep.subr.bf16.mxu1 %v13476_v0 }
  0x84   :  { %12189 = vmatprep.mubr.msk.bf16.mxu0 %vm13477_vm2, %v13476_v0  ;;  %12201 = vmatprep.mubr.msk.bf16.mxu1 %vm13477_vm2, %v13476_v0 }
  0x86   :  { %12184 = vmatpush3.bf16.msra.mxu0 %v13058_v5  ;;  %12196 = vmatpush3.bf16.msra.mxu1 %v13059_v6 }
  0x87   :  { %12185 = vmatprep.subr.bf16.mxu0 %v13476_v0  ;;  %12197 = vmatprep.subr.bf16.mxu1 %v13476_v0 }
  0x8a   :  { %12186 = vmatpush3.bf16.msra.mxu0 %v13060_v7  ;;  %12198 = vmatpush3.bf16.msra.mxu1 %v13061_v8 }
  0x8b   :  { %12187 = vmatprep.subr.bf16.mxu0 %v13476_v0  ;;  %12199 = vmatprep.subr.bf16.mxu1 %v13476_v0 }
  0x8e   :  { %12188 = vmatpush3.bf16.msra.mxu0 %v13062_v9  ;;  %12200 = vmatpush3.bf16.msra.mxu1 %v13063_v10  ;;  %v13072_v9 = vld [vmem:[%s15997_s4 + $0x80] sm:$0xff]  }
  0x8f   :  { %12205 = vmatprep.subr.bf16.mxu0 %v13476_v0  ;;  %12217 = vmatprep.subr.bf16.mxu1 %v13476_v0 }
  0xd7   :  { %v247_v13 = vpop.f32.mrb[0].mxu0  ;;  %v323_v14 = vpop.f32.mrb[0].mxu1 }
  0xd8   :  { %v5046_v15 = vmul.f32 %v14296_v11, %v247_v13  ;;  %v5047_v16 = vmul.f32 %v14296_v11, %v323_v14  ;;  %v11865_v17 = vpop.f32.mrb[1].mxu0  ;;  %v11870_v18 = vpop.f32.mrb[1].mxu1  ;;  %v13073_v13 = vld [vmem:[%s15997_s4 + $0xa0] sm:$0xff]  }
  0xd9   :  { %v13074_v17 = vld [vmem:[%s15997_s4 + $0x88] sm:$0xff]  }
  0xda   :  { %v5117_v19 = vadd.f32 %v14301_v12, %v5046_v15  ;;  %v5118_v20 = vadd.f32 %v14301_v12, %v5047_v16 }
  0xdb   :  { %v399_v21 = vpop.f32.mrb[2].mxu0  ;;  %v475_v22 = vpop.f32.mrb[2].mxu1 }
  0xdc   :  { %13312 = vtanh.f32 %v5117_v19  ;;  %v11875_v23 = vpop.f32.mrb[3].mxu0  ;;  %v11880_v24 = vpop.f32.mrb[3].mxu1  ;;  %v5048_v27 = vmul.f32 %v14296_v11, %v399_v21  ;;  %v5049_v30 = vmul.f32 %v14296_v11, %v475_v22  ;;  %v13075_v19 = vld [vmem:[%s15997_s4 + $0xa8] sm:$0xff]  }
  0xdd   :  { %13314 = vtanh.f32 %v5118_v20  ;;  %v13076_v23 = vld [vmem:[%s15997_s4 + $0x90] sm:$0xff]  }
  0xde   :  { %v5119_v33 = vadd.f32 %v14301_v12, %v5048_v27  ;;  %v5120_v37 = vadd.f32 %v14301_v12, %v5049_v30  ;;  %v13078_v30 = vld [vmem:[%s15997_s4 + $0x98] sm:$0xff]  }
  0xdf   :  { %v551_v25 = vpop.f32.mrb[4].mxu0  ;;  %v627_v26 = vpop.f32.mrb[4].mxu1 }
  0xe0   :  { %v11885_v28 = vpop.f32.mrb[5].mxu0  ;;  %v11890_v29 = vpop.f32.mrb[5].mxu1  ;;  %13316 = vtanh.f32 %v5119_v33  ;;  %v5050_v58 = vmul.f32 %v14296_v11, %v551_v25  ;;  %v5051_v62 = vmul.f32 %v14296_v11, %v627_v26  ;;  %v13077_v25 = vld [vmem:[%s15997_s4 + $0xb0] sm:$0xff]  }
  0xe1   :  { %13318 = vtanh.f32 %v5120_v37 }
  0xe2   :  { %v5121_v4 = vadd.f32 %v14301_v12, %v5050_v58  ;;  %v5122_v8 = vadd.f32 %v14301_v12, %v5051_v62 }
  0xe3   :  { %v14309_v31 = vpop.f32.mrb[6].mxu0  ;;  %v14311_v32 = vpop.f32.mrb[6].mxu1 }
  0xe4   :  { %v11895_v35 = vpop.f32.mrb[7].mxu0  ;;  %v11900_v36 = vpop.f32.mrb[7].mxu1  ;;  %13320 = vtanh.f32 %v5121_v4  ;;  %v5052_v27 = vmul.f32 %v14296_v11, %v14309_v31  ;;  %v5053_v33 = vmul.f32 %v14296_v11, %v14311_v32  ;;  %v13079_v31 = vld [vmem:[%s15997_s4 + $0xb8] sm:$0xff]  }
  0xe5   :  { %13322 = vtanh.f32 %v5122_v8 }
  0xe6   :  { %v13313_v39 = vpop.eup %13312 }
  0xe7   :  { %v13315_v40 = vpop.eup %13314  ;;  %v5245_v41 = vpack.c.bf16 %v13313_v39, %v13313_v39  ;;  %v14321_v42 = vpop.f32.mrb[8].mxu0 }
  0xe8   :  { %v14323_v43 = vpop.f32.mrb[8].mxu1  ;;  %v5246_v44 = vpack.c.bf16 %v13315_v40, %v13315_v40  ;;  %v11905_v45 = vpop.f32.mrb[9].mxu0  ;;  %v5054_v4 = vmul.f32 %v14296_v11, %v14321_v42  ;;  %v13087_v42 = vld [vmem:[%s15997_s4 + $0xf8] sm:$0xff]  }
  0xe9   :  { %v11910_v46 = vpop.f32.mrb[9].mxu1  ;;  %12190 = vmatmul.mubr.msk.bf16.vlgmr.msra.gmra.mrb[64].mxu0 %vm5845_vm3, %v5245_v41  ;;  %v5124_v41 = vadd.f32 %v14301_v12, %v5053_v33  ;;  %v5055_v8 = vmul.f32 %v14296_v11, %v14323_v43 }
  0xea   :  { %12202 = vmatmul.mubr.msk.bf16.vlgmr.msra.gmra.mrb[64].mxu1 %vm5845_vm3, %v5246_v44  ;;  %12206 = vmatpush3.bf16.msra.mxu0 %v13064_v34  ;;  %v13317_v63 = vpop.eup %13316  ;;  %v13080_v44 = vld [vmem:[%s15997_s4 + $0xc0] sm:$0xff]  }
  0xeb   :  { %12218 = vmatpush3.bf16.msra.mxu1 %v13065_v38  ;;  %12207 = vmatprep.subr.bf16.mxu0 %v13476_v0  ;;  %v14334_v49 = vpop.f32.mrb[10].mxu0  ;;  %v14336_v50 = vpop.f32.mrb[10].mxu1  ;;  %v5247_v7 = vpack.c.bf16 %v13317_v63, %v13317_v63  ;;  %v5123_v38 = vadd.f32 %v14301_v12, %v5052_v27  ;;  %v13085_v63 = vld [vmem:[%s15997_s4 + $0xf0] sm:$0xff]   ;;  %v13089_v27 = vld [vmem:[%s15997_s4 + $0x120] sm:$0xff]  }
  0xec   :  { %12219 = vmatprep.subr.bf16.mxu1 %v13476_v0  ;;  %12213 = vmatprep.mubr.msk.bf16.mxu0 %vm13477_vm2, %v13476_v0  ;;  %v11915_v52 = vpop.f32.mrb[11].mxu0  ;;  %v11920_v53 = vpop.f32.mrb[11].mxu1 }
  0xed   :  { %12225 = vmatprep.mubr.msk.bf16.mxu1 %vm13477_vm2, %v13476_v0  ;;  %v13319_v1 = vpop.eup %13318  ;;  %13324 = vtanh.f32 %v5123_v38  ;;  %v13082_v53 = vld [vmem:[%s15997_s4 + $0xc8] sm:$0xff]  }
  0xee   :  { %12208 = vmatpush3.bf16.msra.mxu0 %v13066_v47  ;;  %v5248_v10 = vpack.c.bf16 %v13319_v1, %v13319_v1  ;;  %v13321_v35 = vpop.eup %13320  ;;  %v13081_v47 = vld [vmem:[%s15997_s4 + $0xe0] sm:$0xff]   ;;  %13326 = vtanh.f32 %v5124_v41 }
  0xef   :  { %12220 = vmatpush3.bf16.msra.mxu1 %v13067_v48  ;;  %12209 = vmatprep.subr.bf16.mxu0 %v13476_v0  ;;  %v14350_v55 = vpop.f32.mrb[12].mxu0  ;;  %v14352_v56 = vpop.f32.mrb[12].mxu1  ;;  %v5249_v32 = vpack.c.bf16 %v13321_v35, %v13321_v35 }
  0xf0   :  { %12221 = vmatprep.subr.bf16.mxu1 %v13476_v0  ;;  %v11925_v59 = vpop.f32.mrb[13].mxu0  ;;  %v11930_v60 = vpop.f32.mrb[13].mxu1 }
  0xf1   :  { %v13323_v36 = vpop.eup %13322 }
  0xf2   :  { %12210 = vmatpush3.bf16.msra.mxu0 %v13068_v51  ;;  %v5250_v46 = vpack.c.bf16 %v13323_v36, %v13323_v36  ;;  %v13091_v36 = vld [vmem:[%s15997_s4 + $0x128] sm:$0xff]  }
  0xf3   :  { %12222 = vmatpush3.bf16.msra.mxu1 %v13069_v54  ;;  %12211 = vmatprep.subr.bf16.mxu0 %v13476_v0  ;;  %v14364_v2 = vpop.f32.mrb[14].mxu0  ;;  %v14366_v3 = vpop.f32.mrb[14].mxu1 }
  0xf4   :  { %12223 = vmatprep.subr.bf16.mxu1 %v13476_v0  ;;  %v11935_v5 = vpop.f32.mrb[15].mxu0  ;;  %v11940_v6 = vpop.f32.mrb[15].mxu1 }
  0xf6   :  { %12212 = vmatpush3.bf16.msra.mxu0 %v13070_v57  ;;  %v13083_v57 = vld [vmem:[%s15997_s4 + $0xe8] sm:$0xff]  }
  0xf7   :  { %12224 = vmatpush3.bf16.msra.mxu1 %v13071_v61  ;;  %12229 = vmatprep.subr.bf16.mxu0 %v13476_v0  ;;  %v14378_v14 = vpop.f32.mrb[16].mxu0  ;;  %v13084_v61 = vld [vmem:[%s15997_s4 + $0xd0] sm:$0xff]  }
  0xf8   :  { %12241 = vmatprep.subr.bf16.mxu1 %v13476_v0  ;;  %v11945_v15 = vpop.f32.mrb[17].mxu0  ;;  %v14381_v16 = vpop.f32.mrb[16].mxu1 }
  0xf9   :  { %12214 = vmatmul.mubr.msk.bf16.vlgmr.msra.gmra.mrb[68].mxu0 %vm5845_vm3, %v5247_v7  ;;  %v11950_v18 = vpop.f32.mrb[17].mxu1  ;;  %v13086_v7 = vld [vmem:[%s15997_s4 + $0xd8] sm:$0xff]  }
  0xfa   :  { %12226 = vmatmul.mubr.msk.bf16.vlgmr.msra.gmra.mrb[68].mxu1 %vm5845_vm3, %v5248_v10  ;;  %12230 = vmatpush3.bf16.msra.mxu0 %v13072_v9  ;;  %v13325_v10 = vpop.eup %13324 }
  0xfb   :  { %12242 = vmatpush3.bf16.msra.mxu1 %v13073_v13  ;;  %12231 = vmatprep.subr.bf16.mxu0 %v13476_v0  ;;  %v14392_v20 = vpop.f32.mrb[18].mxu0  ;;  %v13327_v13 = vpop.eup %13326  ;;  %v5251_v43 = vpack.c.bf16 %v13325_v10, %v13325_v10 }
  0xfc   :  { %12243 = vmatprep.subr.bf16.mxu1 %v13476_v0  ;;  %12237 = vmatprep.mubr.msk.bf16.mxu0 %vm13477_vm2, %v13476_v0  ;;  %v11955_v21 = vpop.f32.mrb[19].mxu0  ;;  %v14397_v22 = vpop.f32.mrb[18].mxu1 }
  0xfd   :  { %12249 = vmatprep.mubr.msk.bf16.mxu1 %vm13477_vm2, %v13476_v0  ;;  %v11960_v24 = vpop.f32.mrb[19].mxu1  ;;  %v5126_v21 = vadd.f32 %v14301_v12, %v5055_v8  ;;  %v13096_v8 = vld [vmem:[%s15997_s4 + $0x140] sm:$0xff]  }
  0xfe   :  { %12232 = vmatpush3.bf16.msra.mxu0 %v13074_v17  ;;  %v5125_v17 = vadd.f32 %v14301_v12, %v5054_v4 }
  0xff   :  { %12244 = vmatpush3.bf16.msra.mxu1 %v13075_v19  ;;  %12233 = vmatprep.subr.bf16.mxu0 %v13476_v0  ;;  %v14408_v26 = vpop.f32.mrb[20].mxu0 }
 0x100   :  { %12245 = vmatprep.subr.bf16.mxu1 %v13476_v0  ;;  %v11965_v28 = vpop.f32.mrb[21].mxu0  ;;  %v14413_v29 = vpop.f32.mrb[20].mxu1  ;;  %13328 = vtanh.f32 %v5125_v17 }
 0x101   :  { %v11970_v34 = vpop.f32.mrb[21].mxu1  ;;  %13330 = vtanh.f32 %v5126_v21 }
 0x102   :  { %12234 = vmatpush3.bf16.msra.mxu0 %v13076_v23  ;;  %v13088_v23 = vld [vmem:[%s15997_s4 + $0x100] sm:$0xff]   ;;  %v13090_v34 = vld [vmem:[%s15997_s4 + $0x108] sm:$0xff]  }
 0x103   :  { %12246 = vmatpush3.bf16.msra.mxu1 %v13077_v25  ;;  %12235 = vmatprep.subr.bf16.mxu0 %v13476_v0  ;;  %v14424_v37 = vpop.f32.mrb[22].mxu0  ;;  %v5252_v25 = vpack.c.bf16 %v13327_v13, %v13327_v13  ;;  %v13097_v13 = vld [vmem:[%s15997_s4 + $0x160] sm:$0xff]  }
 0x104   :  { %12247 = vmatprep.subr.bf16.mxu1 %v13476_v0  ;;  %v11975_v39 = vpop.f32.mrb[23].mxu0  ;;  %v14428_v40 = vpop.f32.mrb[22].mxu1 }
 0x105   :  { %v11980_v45 = vpop.f32.mrb[23].mxu1 }
 0x106   :  { %12236 = vmatpush3.bf16.msra.mxu0 %v13078_v30 }
 0x107   :  { %12248 = vmatpush3.bf16.msra.mxu1 %v13079_v31  ;;  %12253 = vmatprep.subr.bf16.mxu0 %v13476_v0  ;;  %v14438_v48 = vpop.f32.mrb[24].mxu0 }
 0x108   :  { %12265 = vmatprep.subr.bf16.mxu1 %v13476_v0  ;;  %v11985_v51 = vpop.f32.mrb[25].mxu0  ;;  %v14441_v52 = vpop.f32.mrb[24].mxu1 }
 0x109   :  { %12238 = vmatmul.mubr.msk.bf16.vlgmr.msra.gmra.mrb[72].mxu0 %vm5845_vm3, %v5249_v32  ;;  %v11990_v54 = vpop.f32.mrb[25].mxu1  ;;  %v13092_v32 = vld [vmem:[%s15997_s4 + $0x110] sm:$0xff]  }
 0x10a   :  { %12250 = vmatmul.mubr.msk.bf16.vlgmr.msra.gmra.mrb[72].mxu1 %vm5845_vm3, %v5250_v46  ;;  %12254 = vmatpush3.bf16.msra.mxu0 %v13080_v44  ;;  %v13093_v44 = vld [vmem:[%s15997_s4 + $0x130] sm:$0xff]   ;;  %v5056_v46 = vmul.f32 %v14296_v11, %v14334_v49  ;;  %v5057_v54 = vmul.f32 %v14296_v11, %v14336_v50  ;;  %v13095_v49 = vld [vmem:[%s15997_s4 + $0x138] sm:$0xff]  }
 0x10b   :  { %12266 = vmatpush3.bf16.msra.mxu1 %v13081_v47  ;;  %12255 = vmatprep.subr.bf16.mxu0 %v13476_v0  ;;  %v14452_v58 = vpop.f32.mrb[26].mxu0 }
 0x10c   :  { %12267 = vmatprep.subr.bf16.mxu1 %v13476_v0  ;;  %12261 = vmatprep.mubr.msk.bf16.mxu0 %vm13477_vm2, %v13476_v0  ;;  %v11995_v59 = vpop.f32.mrb[27].mxu0  ;;  %v14457_v60 = vpop.f32.mrb[26].mxu1 }
 0x10d   :  { %12273 = vmatprep.mubr.msk.bf16.mxu1 %vm13477_vm2, %v13476_v0  ;;  %v12000_v62 = vpop.f32.mrb[27].mxu1  ;;  %v13329_v59 = vpop.eup %13328 }
 0x10e   :  { %12256 = vmatpush3.bf16.msra.mxu0 %v13082_v53  ;;  %v13094_v53 = vld [vmem:[%s15997_s4 + $0x118] sm:$0xff]   ;;  %v5253_v50 = vpack.c.bf16 %v13329_v59, %v13329_v59 }
 0x10f   :  { %12268 = vmatpush3.bf16.msra.mxu1 %v13083_v57  ;;  %12257 = vmatprep.subr.bf16.mxu0 %v13476_v0  ;;  %v14468_v1 = vpop.f32.mrb[28].mxu0 }
 0x110   :  { %12269 = vmatprep.subr.bf16.mxu1 %v13476_v0  ;;  %v12005_v5 = vpop.f32.mrb[29].mxu0  ;;  %v14473_v6 = vpop.f32.mrb[28].mxu1 }
 0x111   :  { %v12010_v9 = vpop.f32.mrb[29].mxu1 }
 0x112   :  { %12258 = vmatpush3.bf16.msra.mxu0 %v13084_v61  ;;  %v13331_v61 = vpop.eup %13330 }
 0x113   :  { %12270 = vmatpush3.bf16.msra.mxu1 %v13085_v63  ;;  %12259 = vmatprep.subr.bf16.mxu0 %v13476_v0  ;;  %v14484_v15 = vpop.f32.mrb[30].mxu0  ;;  %v5127_v63 = vadd.f32 %v14301_v12, %v5056_v46  ;;  %v5254_v10 = vpack.c.bf16 %v13331_v61, %v13331_v61  ;;  %v5059_v46 = vmul.f32 %v14296_v11, %v14352_v56 }
 0x114   :  { %12271 = vmatprep.subr.bf16.mxu1 %v13476_v0  ;;  %v12015_v18 = vpop.f32.mrb[31].mxu0  ;;  %v14488_v19 = vpop.f32.mrb[30].mxu1 }
 0x115   :  { %v12020_v24 = vpop.f32.mrb[31].mxu1  ;;  %13332 = vtanh.f32 %v5127_v63  ;;  %v5130_v56 = vadd.f32 %v14301_v12, %v5059_v46  ;;  %v13104_v63 = vld [vmem:[%s15997_s4 + $0x180] sm:$0xff]  }
 0x116   :  { %12260 = vmatpush3.bf16.msra.mxu0 %v13086_v7  ;;  %v5128_v7 = vadd.f32 %v14301_v12, %v5057_v54 }
 0x117   :  { %12272 = vmatpush3.bf16.msra.mxu1 %v13087_v42  ;;  %12277 = vmatprep.subr.bf16.mxu0 %v13476_v0  ;;  %v14498_v28 = vpop.f32.mrb[32].mxu0 }
 0x118   :  { %12289 = vmatprep.subr.bf16.mxu1 %v13476_v0  ;;  %v12025_v30 = vpop.f32.mrb[33].mxu0  ;;  %v14501_v33 = vpop.f32.mrb[32].mxu1  ;;  %13334 = vtanh.f32 %v5128_v7  ;;  %v13105_v7 = vld [vmem:[%s15997_s4 + $0x1a0] sm:$0xff]  }
 0x119   :  { %12262 = vmatmul.mubr.msk.bf16.vlgmr.msra.gmra.mrb[76].mxu0 %vm5845_vm3, %v5251_v43  ;;  %v12030_v35 = vpop.f32.mrb[33].mxu1  ;;  %v13098_v43 = vld [vmem:[%s15997_s4 + $0x148] sm:$0xff]   ;;  %v13100_v30 = vld [vmem:[%s15997_s4 + $0x150] sm:$0xff]  }
 0x11a   :  { %12274 = vmatmul.mubr.msk.bf16.vlgmr.msra.gmra.mrb[76].mxu1 %vm5845_vm3, %v5252_v25  ;;  %12278 = vmatpush3.bf16.msra.mxu0 %v13088_v23  ;;  %v13099_v23 = vld [vmem:[%s15997_s4 + $0x168] sm:$0xff]   ;;  %v13101_v35 = vld [vmem:[%s15997_s4 + $0x170] sm:$0xff]  }
 0x11b   :  { %12290 = vmatpush3.bf16.msra.mxu1 %v13089_v27  ;;  %12279 = vmatprep.subr.bf16.mxu0 %v13476_v0  ;;  %v14512_v31 = vpop.f32.mrb[34].mxu0 }
 0x11c   :  { %12291 = vmatprep.subr.bf16.mxu1 %v13476_v0  ;;  %12285 = vmatprep.mubr.msk.bf16.mxu0 %vm13477_vm2, %v13476_v0  ;;  %v12035_v38 = vpop.f32.mrb[35].mxu0  ;;  %v14517_v39 = vpop.f32.mrb[34].mxu1 }
 0x11d   :  { %12297 = vmatprep.mubr.msk.bf16.mxu1 %vm13477_vm2, %v13476_v0  ;;  %v12040_v41 = vpop.f32.mrb[35].mxu1  ;;  %v5058_v38 = vmul.f32 %v14296_v11, %v14350_v55  ;;  %v13103_v55 = vld [vmem:[%s15997_s4 + $0x178] sm:$0xff]  }
 0x11e   :  { %12280 = vmatpush3.bf16.msra.mxu0 %v13090_v34 }
 0x11f   :  { %12292 = vmatpush3.bf16.msra.mxu1 %v13091_v36  ;;  %12281 = vmatprep.subr.bf16.mxu0 %v13476_v0  ;;  %v14528_v45 = vpop.f32.mrb[36].mxu0  ;;  %v5129_v59 = vadd.f32 %v14301_v12, %v5058_v38  ;;  %v14654_v38 = vld [vmem:[%s15998_s2] ss:$0 sm:$0xff] }
 0x120   :  { %12293 = vmatprep.subr.bf16.mxu1 %v13476_v0  ;;  %v12045_v47 = vpop.f32.mrb[37].mxu0  ;;  %v14533_v51 = vpop.f32.mrb[36].mxu1 }
 0x121   :  { %v12050_v57 = vpop.f32.mrb[37].mxu1  ;;  %13336 = vtanh.f32 %v5129_v59 }
 0x122   :  { %12282 = vmatpush3.bf16.msra.mxu0 %v13092_v32  ;;  %13338 = vtanh.f32 %v5130_v56 }
 0x123   :  { %12294 = vmatpush3.bf16.msra.mxu1 %v13093_v44  ;;  %12283 = vmatprep.subr.bf16.mxu0 %v13476_v0  ;;  %v14544_v62 = vpop.f32.mrb[38].mxu0  ;;  %v13102_v44 = vld [vmem:[%s15997_s4 + $0x158] sm:$0xff]  }
 0x124   :  { %12295 = vmatprep.subr.bf16.mxu1 %v13476_v0  ;;  %v12055_v4 = vpop.f32.mrb[39].mxu0  ;;  %v14548_v5 = vpop.f32.mrb[38].mxu1 }
 0x125   :  { %v12060_v9 = vpop.f32.mrb[39].mxu1 }
 0x126   :  { %12284 = vmatpush3.bf16.msra.mxu0 %v13094_v53  ;;  %v13333_v53 = vpop.eup %13332 }
 0x127   :  { %12296 = vmatpush3.bf16.msra.mxu1 %v13095_v49  ;;  %12301 = vmatprep.subr.bf16.mxu0 %v13476_v0  ;;  %v14558_v42 = vpop.f32.mrb[40].mxu0  ;;  %v13335_v54 = vpop.eup %13334  ;;  %v5255_v11 = vpack.c.bf16 %v13333_v53, %v13333_v53 }
 0x128   :  { %12313 = vmatprep.subr.bf16.mxu1 %v13476_v0  ;;  %v12065_v17 = vpop.f32.mrb[41].mxu0  ;;  %v14561_v18 = vpop.f32.mrb[40].mxu1 }
 0x129   :  { %12286 = vmatmul.mubr.msk.bf16.vlgmr.msra.gmra.mrb[80].mxu0 %vm5845_vm3, %v5253_v50  ;;  %v12070_v21 = vpop.f32.mrb[41].mxu1  ;;  %v5256_v50 = vpack.c.bf16 %v13335_v54, %v13335_v54  ;;  %v13107_v17 = vld [vmem:[%s15997_s4 + $0x1a8] sm:$0xff]  }
 0x12a   :  { %12298 = vmatmul.mubr.msk.bf16.vlgmr.msra.gmra.mrb[80].mxu1 %vm5845_vm3, %v5254_v10  ;;  %12302 = vmatpush3.bf16.msra.mxu0 %v13096_v8 }
 0x12b   :  { %12314 = vmatpush3.bf16.msra.mxu1 %v13097_v13  ;;  %12303 = vmatprep.subr.bf16.mxu0 %v13476_v0  ;;  %v14572_v24 = vpop.f32.mrb[42].mxu0  ;;  %v13106_v13 = vld [vmem:[%s15997_s4 + $0x188] sm:$0xff]   ;;  %v13337_v54 = vpop.eup %13336 }
 0x12c   :  { %12315 = vmatprep.subr.bf16.mxu1 %v13476_v0  ;;  %12309 = vmatprep.mubr.msk.bf16.mxu0 %vm13477_vm2, %v13476_v0  ;;  %v12075_v25 = vpop.f32.mrb[43].mxu0  ;;  %v14577_v27 = vpop.f32.mrb[42].mxu1 }
 0x12d   :  { %12321 = vmatprep.mubr.msk.bf16.mxu1 %vm13477_vm2, %v13476_v0  ;;  %v12080_v34 = vpop.f32.mrb[43].mxu1  ;;  %v13339_v59 = vpop.eup %13338 }
 0x12e   :  { %12304 = vmatpush3.bf16.msra.mxu0 %v13098_v43  ;;  %v13109_v34 = vld [vmem:[%s15997_s4 + $0x1b0] sm:$0xff]  }
 0x12f   :  { %12316 = vmatpush3.bf16.msra.mxu1 %v13099_v23  ;;  %12305 = vmatprep.subr.bf16.mxu0 %v13476_v0  ;;  %v14588_v36 = vpop.f32.mrb[44].mxu0 }
 0x130   :  { %12317 = vmatprep.subr.bf16.mxu1 %v13476_v0  ;;  %v12085_v32 = vpop.f32.mrb[45].mxu0  ;;  %v14593_v41 = vpop.f32.mrb[44].mxu1 }
 0x131   :  { %v12090_v47 = vpop.f32.mrb[45].mxu1  ;;  %v5060_v32 = vmul.f32 %v14654_v38, %v14364_v2  ;;  %v13111_v2 = vld [vmem:[%s15997_s4 + $0x1b8] sm:$0xff]  }
 0x132   :  { %12306 = vmatpush3.bf16.msra.mxu0 %v13100_v30  ;;  %v13108_v30 = vld [vmem:[%s15997_s4 + $0x190] sm:$0xff]   ;;  %v5061_v47 = vmul.f32 %v14654_v38, %v14366_v3  ;;  %v14675_v3 = vld [vmem:[%s15999_s3] ss:$0 sm:$0xff] }
 0x133   :  { %12318 = vmatpush3.bf16.msra.mxu1 %v13101_v35  ;;  %12307 = vmatprep.subr.bf16.mxu0 %v13476_v0  ;;  %v14604_v57 = vpop.f32.mrb[46].mxu0 }
 0x134   :  { %12319 = vmatprep.subr.bf16.mxu1 %v13476_v0  ;;  %v12095_v61 = vpop.f32.mrb[47].mxu0  ;;  %v14608_v49 = vpop.f32.mrb[46].mxu1 }
 0x135   :  { %v12100_v4 = vpop.f32.mrb[47].mxu1 }
 0x136   :  { %12308 = vmatpush3.bf16.msra.mxu0 %v13102_v44  ;;  %v5257_v4 = vpack.c.bf16 %v13337_v54, %v13337_v54 }
 0x137   :  { %12320 = vmatpush3.bf16.msra.mxu1 %v13103_v55  ;;  %12325 = vmatprep.subr.bf16.mxu0 %v13476_v0  ;;  %v14618_v8 = vpop.f32.mrb[48].mxu0  ;;  %v13110_v55 = vld [vmem:[%s15997_s4 + $0x198] sm:$0xff]  }
 0x138   :  { %12337 = vmatprep.subr.bf16.mxu1 %v13476_v0  ;;  %v12105_v12 = vpop.f32.mrb[49].mxu0  ;;  %v14621_v9 = vpop.f32.mrb[48].mxu1 }
 0x139   :  { %12310 = vmatmul.mubr.msk.bf16.vlgmr.msra.gmra.mrb[84].mxu0 %vm5845_vm3, %v5255_v11  ;;  %v12110_v10 = vpop.f32.mrb[49].mxu1  ;;  %v5131_v11 = vadd.f32 %v14675_v3, %v5060_v32  ;;  %v5258_v12 = vpack.c.bf16 %v13339_v59, %v13339_v59  ;;  %v13115_v32 = vld [vmem:[%s15997_s4 + $0x1e8] sm:$0xff]   ;;  %v13117_v59 = vld [vmem:[%s15997_s4 + $0x1f0] sm:$0xff]  }
 0x13a   :  { %12322 = vmatmul.mubr.msk.bf16.vlgmr.msra.gmra.mrb[84].mxu1 %vm5845_vm3, %v5256_v50  ;;  %12326 = vmatpush3.bf16.msra.mxu0 %v13104_v63  ;;  %v5132_v50 = vadd.f32 %v14675_v3, %v5061_v47  ;;  %v13112_v10 = vld [vmem:[%s15997_s4 + $0x1c0] sm:$0xff]  }
 0x13b   :  { %12338 = vmatpush3.bf16.msra.mxu1 %v13105_v7  ;;  %12327 = vmatprep.subr.bf16.mxu0 %v13476_v0  ;;  %v14632_v43 = vpop.f32.mrb[50].mxu0  ;;  %13340 = vtanh.f32 %v5131_v11 }
 0x13c   :  { %12339 = vmatprep.subr.bf16.mxu1 %v13476_v0  ;;  %12333 = vmatprep.mubr.msk.bf16.mxu0 %vm13477_vm2, %v13476_v0  ;;  %v12115_v21 = vpop.f32.mrb[51].mxu0  ;;  %v14637_v23 = vpop.f32.mrb[50].mxu1  ;;  %13342 = vtanh.f32 %v5132_v50 }
 0x13d   :  { %12345 = vmatprep.mubr.msk.bf16.mxu1 %vm13477_vm2, %v13476_v0  ;;  %v12120_v25 = vpop.f32.mrb[51].mxu1 }
 0x13e   :  { %12328 = vmatpush3.bf16.msra.mxu0 %v13106_v13  ;;  %v13113_v13 = vld [vmem:[%s15997_s4 + $0x1e0] sm:$0xff]  }
 0x13f   :  { %12340 = vmatpush3.bf16.msra.mxu1 %v13107_v17  ;;  %12329 = vmatprep.subr.bf16.mxu0 %v13476_v0  ;;  %v14648_v35 = vpop.f32.mrb[52].mxu0 }
 0x140   :  { %12341 = vmatprep.subr.bf16.mxu1 %v13476_v0  ;;  %v12125_v44 = vpop.f32.mrb[53].mxu0  ;;  %v14658_v46 = vpop.f32.mrb[52].mxu1 }
 0x141   :  { %v12130_v53 = vpop.f32.mrb[53].mxu1 }
 0x142   :  { %12330 = vmatpush3.bf16.msra.mxu0 %v13108_v30 }
 0x143   :  { %12342 = vmatpush3.bf16.msra.mxu1 %v13109_v34  ;;  %12331 = vmatprep.subr.bf16.mxu0 %v13476_v0  ;;  %v14669_v61 = vpop.f32.mrb[54].mxu0  ;;  %v13114_v34 = vld [vmem:[%s15997_s4 + $0x1c8] sm:$0xff]  }
 0x144   :  { %12343 = vmatprep.subr.bf16.mxu1 %v13476_v0  ;;  %v12135_v56 = vpop.f32.mrb[55].mxu0  ;;  %v14678_v63 = vpop.f32.mrb[54].mxu1 }
 0x145   :  { %v12140_v7 = vpop.f32.mrb[55].mxu1  ;;  %v13341_v50 = vpop.eup %13340 }
 0x146   :  { %12332 = vmatpush3.bf16.msra.mxu0 %v13110_v55  ;;  %v13116_v55 = vld [vmem:[%s15997_s4 + $0x1d0] sm:$0xff]   ;;  %v5062_v7 = vmul.f32 %v14654_v38, %v14378_v14 }
 0x147   :  { %12344 = vmatpush3.bf16.msra.mxu1 %v13111_v2  ;;  %12349 = vmatprep.subr.bf16.mxu0 %v13476_v0  ;;  %v14688_v17 = vpop.f32.mrb[56].mxu0 }
 0x148   :  { %12361 = vmatprep.subr.bf16.mxu1 %v13476_v0  ;;  %v12145_v21 = vpop.f32.mrb[57].mxu0  ;;  %v14691_v25 = vpop.f32.mrb[56].mxu1 }
 0x149   :  { %12334 = vmatmul.mubr.msk.bf16.vlgmr.msra.gmra.mrb[88].mxu0 %vm5845_vm3, %v5257_v4  ;;  %v12150_v30 = vpop.f32.mrb[57].mxu1  ;;  %v13119_v21 = vld [vmem:[%s15997_s4 + $0x1f8] sm:$0xff]  }
 0x14a   :  { %12346 = vmatmul.mubr.msk.bf16.vlgmr.msra.gmra.mrb[88].mxu1 %vm5845_vm3, %v5258_v12  ;;  %12350 = vmatpush3.bf16.msra.mxu0 %v13112_v10  ;;  %v13118_v12 = vld [vmem:[%s15997_s4 + $0x1d8] sm:$0xff]   ;;  %v13343_v10 = vpop.eup %13342 }
 0x14b   :  { %12362 = vmatpush3.bf16.msra.mxu1 %v13113_v13  ;;  %12351 = vmatprep.subr.bf16.mxu0 %v13476_v0  ;;  %v14702_v44 = vpop.f32.mrb[58].mxu0  ;;  %v5063_v13 = vmul.f32 %v14654_v38, %v14381_v16  ;;  %v13120_v16 = vld [vmem:[%s15997_s4 + $0x200] sm:$0xff]  }
 0x14c   :  { %12363 = vmatprep.subr.bf16.mxu1 %v13476_v0  ;;  %12357 = vmatprep.mubr.msk.bf16.mxu0 %vm13477_vm2, %v13476_v0  ;;  %v12155_v47 = vpop.f32.mrb[59].mxu0  ;;  %v14707_v53 = vpop.f32.mrb[58].mxu1 }
 0x14d   :  { %12369 = vmatprep.mubr.msk.bf16.mxu1 %vm13477_vm2, %v13476_v0  ;;  %v12160_v54 = vpop.f32.mrb[59].mxu1 }
 0x14e   :  { %12352 = vmatpush3.bf16.msra.mxu0 %v13114_v34  ;;  %v5260_v54 = vpack.c.bf16 %v13343_v10, %v13343_v10  ;;  %v5064_v10 = vmul.f32 %v14654_v38, %v14392_v20 }
 0x14f   :  { %12364 = vmatpush3.bf16.msra.mxu1 %v13115_v32  ;;  %12353 = vmatprep.subr.bf16.mxu0 %v13476_v0  ;;  %v14718_v2 = vpop.f32.mrb[60].mxu0  ;;  %v5259_v32 = vpack.c.bf16 %v13341_v50, %v13341_v50  ;;  %v13123_v50 = vld [vmem:[%s15997_s4 + $0x228] sm:$0xff]  }
 0x150   :  { %12365 = vmatprep.subr.bf16.mxu1 %v13476_v0  ;;  %v12165_v11 = vpop.f32.mrb[61].mxu0  ;;  %v14721_v56 = vpop.f32.mrb[60].mxu1  ;;  %v5135_v20 = vadd.f32 %v14675_v3, %v5064_v10  ;;  %v13134_v10 = vld [vmem:[%s15997_s4 + $0x258] sm:$0xff]  }
 0x151   :  { %v12170_v4 = vpop.f32.mrb[61].mxu1  ;;  %v13121_v11 = vld [vmem:[%s15997_s4 + $0x220] sm:$0xff]  }
 0x152   :  { %12354 = vmatpush3.bf16.msra.mxu0 %v13116_v55  ;;  %v5133_v55 = vadd.f32 %v14675_v3, %v5062_v7  ;;  %v13122_v4 = vld [vmem:[%s15997_s4 + $0x208] sm:$0xff]   ;;  %v13124_v7 = vld [vmem:[%s15997_s4 + $0x210] sm:$0xff]  }
 0x153   :  { %12366 = vmatpush3.bf16.msra.mxu1 %v13117_v59  ;;  %12355 = vmatprep.subr.bf16.mxu0 %v13476_v0  ;;  %v14734_v30 = vpop.f32.mrb[62].mxu0  ;;  %v5134_v59 = vadd.f32 %v14675_v3, %v5063_v13  ;;  %v13126_v13 = vld [vmem:[%s15997_s4 + $0x218] sm:$0xff]  }
 0x154   :  { %12367 = vmatprep.subr.bf16.mxu1 %v13476_v0  ;;  %v12175_v14 = vpop.f32.mrb[63].mxu0  ;;  %v14737_v34 = vpop.f32.mrb[62].mxu1  ;;  %13344 = vtanh.f32 %v5133_v55 }
 0x155   :  { %v12180_v47 = vpop.f32.mrb[63].mxu1  ;;  %13346 = vtanh.f32 %v5134_v59  ;;  %v13127_v14 = vld [vmem:[%s15997_s4 + $0x238] sm:$0xff]  }
 0x156   :  { %12356 = vmatpush3.bf16.msra.mxu0 %v13118_v12  ;;  %v13125_v12 = vld [vmem:[%s15997_s4 + $0x230] sm:$0xff]   ;;  %13348 = vtanh.f32 %v5135_v20 }
 0x157   :  { %12368 = vmatpush3.bf16.msra.mxu1 %v13119_v21  ;;  %12373 = vmatprep.subr.bf16.mxu0 %v13476_v0  ;;  %v5065_v21 = vmul.f32 %v14654_v38, %v14397_v22 }
 0x158   :  { %12385 = vmatprep.subr.bf16.mxu1 %v13476_v0 }
 0x159   :  { %12358 = vmatmul.mubr.msk.bf16.vlgmr.msra.gmra.mrb[92].mxu0 %vm5845_vm3, %v5259_v32  ;;  %v5136_v22 = vadd.f32 %v14675_v3, %v5065_v21  ;;  %v13135_v21 = vld [vmem:[%s15997_s4 + $0x278] sm:$0xff]  }
 0x15a   :  { %12370 = vmatmul.mubr.msk.bf16.vlgmr.msra.gmra.mrb[92].mxu1 %vm5845_vm3, %v5260_v54  ;;  %12374 = vmatpush3.bf16.msra.mxu0 %v13120_v16  ;;  %v13128_v54 = vld [vmem:[%s15997_s4 + $0x240] sm:$0xff]  }
 0x15b   :  { %12386 = vmatpush3.bf16.msra.mxu1 %v13121_v11  ;;  %12375 = vmatprep.subr.bf16.mxu0 %v13476_v0  ;;  %v13129_v16 = vld [vmem:[%s15997_s4 + $0x260] sm:$0xff]   ;;  %v13130_v11 = vld [vmem:[%s15997_s4 + $0x248] sm:$0xff]   ;;  %13350 = vtanh.f32 %v5136_v22 }
 0x15c   :  { %12387 = vmatprep.subr.bf16.mxu1 %v13476_v0  ;;  %12381 = vmatprep.mubr.msk.bf16.mxu0 %vm13477_vm2, %v13476_v0  ;;  %v13138_v22 = vld [vmem:[%s15997_s4 + $0x288] sm:$0xff]  }
 0x15d   :  { %12393 = vmatprep.mubr.msk.bf16.mxu1 %vm13477_vm2, %v13476_v0 }
 0x15e   :  { %12376 = vmatpush3.bf16.msra.mxu0 %v13122_v4  ;;  %v13345_v32 = vpop.eup %13344  ;;  %v13131_v4 = vld [vmem:[%s15997_s4 + $0x268] sm:$0xff]  }
 0x15f   :  { %12388 = vmatpush3.bf16.msra.mxu1 %v13123_v50  ;;  %12377 = vmatprep.subr.bf16.mxu0 %v13476_v0  ;;  %v13347_v47 = vpop.eup %13346  ;;  %v5261_v55 = vpack.c.bf16 %v13345_v32, %v13345_v32  ;;  %v13132_v50 = vld [vmem:[%s15997_s4 + $0x250] sm:$0xff]  }
 0x160   :  { %12389 = vmatprep.subr.bf16.mxu1 %v13476_v0  ;;  %v5262_v59 = vpack.c.bf16 %v13347_v47, %v13347_v47  ;;  %v13136_v47 = vld [vmem:[%s15997_s4 + $0x280] sm:$0xff]  }
 0x162   :  { %12378 = vmatpush3.bf16.msra.mxu0 %v13124_v7  ;;  %v13133_v7 = vld [vmem:[%s15997_s4 + $0x270] sm:$0xff]  }
 0x163   :  { %12390 = vmatpush3.bf16.msra.mxu1 %v13125_v12  ;;  %12379 = vmatprep.subr.bf16.mxu0 %v13476_v0  ;;  %v5066_v12 = vmul.f32 %v14654_v38, %v14408_v26 }
 0x164   :  { %12391 = vmatprep.subr.bf16.mxu1 %v13476_v0 }
 0x165   :  { %v5137_v26 = vadd.f32 %v14675_v3, %v5066_v12  ;;  %v13143_v12 = vld [vmem:[%s15997_s4 + $0x2b8] sm:$0xff]  }
 0x166   :  { %12380 = vmatpush3.bf16.msra.mxu0 %v13126_v13  ;;  %v5067_v13 = vmul.f32 %v14654_v38, %v14413_v29 }
 0x167   :  { %12392 = vmatpush3.bf16.msra.mxu1 %v13127_v14  ;;  %12397 = vmatprep.subr.bf16.mxu0 %v13476_v0  ;;  %v13349_v14 = vpop.eup %13348  ;;  %13352 = vtanh.f32 %v5137_v26 }
 0x168   :  { %12409 = vmatprep.subr.bf16.mxu1 %v13476_v0  ;;  %v13351_v32 = vpop.eup %13350  ;;  %v5263_v20 = vpack.c.bf16 %v13349_v14, %v13349_v14  ;;  %v5138_v29 = vadd.f32 %v14675_v3, %v5067_v13 }
 0x169   :  { %12382 = vmatmul.mubr.msk.bf16.vlgmr.msra.gmra.mrb[96].mxu0 %vm5845_vm3, %v5261_v55  ;;  %v5264_v55 = vpack.c.bf16 %v13351_v32, %v13351_v32  ;;  %v13145_v32 = vld [vmem:[%s15997_s4 + $0x2e0] sm:$0xff]  }
 0x16a   :  { %12394 = vmatmul.mubr.msk.bf16.vlgmr.msra.gmra.mrb[96].mxu1 %vm5845_vm3, %v5262_v59  ;;  %12398 = vmatpush3.bf16.msra.mxu0 %v13128_v54  ;;  %v13137_v54 = vld [vmem:[%s15997_s4 + $0x2a0] sm:$0xff]   ;;  %13354 = vtanh.f32 %v5138_v29  ;;  %v13140_v59 = vld [vmem:[%s15997_s4 + $0x290] sm:$0xff]  }
 0x16b   :  { %12410 = vmatpush3.bf16.msra.mxu1 %v13129_v16  ;;  %12399 = vmatprep.subr.bf16.mxu0 %v13476_v0  ;;  %v13139_v16 = vld [vmem:[%s15997_s4 + $0x2a8] sm:$0xff]   ;;  %v13148_v29 = vld [vmem:[%s15997_s4 + $0x2d0] sm:$0xff]  }
 0x16c   :  { %12411 = vmatprep.subr.bf16.mxu1 %v13476_v0  ;;  %12405 = vmatprep.mubr.msk.bf16.mxu0 %vm13477_vm2, %v13476_v0 }
 0x16d   :  { %12417 = vmatprep.mubr.msk.bf16.mxu1 %vm13477_vm2, %v13476_v0 }
 0x16e   :  { %12400 = vmatpush3.bf16.msra.mxu0 %v13130_v11  ;;  %v13141_v11 = vld [vmem:[%s15997_s4 + $0x2b0] sm:$0xff]  }
 0x16f   :  { %12412 = vmatpush3.bf16.msra.mxu1 %v13131_v4  ;;  %12401 = vmatprep.subr.bf16.mxu0 %v13476_v0  ;;  %v5068_v4 = vmul.f32 %v14654_v38, %v14424_v37 }
 0x170   :  { %12413 = vmatprep.subr.bf16.mxu1 %v13476_v0 }
 0x171   :  { %v5139_v37 = vadd.f32 %v14675_v3, %v5068_v4 }
 0x172   :  { %12402 = vmatpush3.bf16.msra.mxu0 %v13132_v50  ;;  %v13142_v50 = vld [vmem:[%s15997_s4 + $0x298] sm:$0xff]  }
 0x173   :  { %12414 = vmatpush3.bf16.msra.mxu1 %v13133_v7  ;;  %12403 = vmatprep.subr.bf16.mxu0 %v13476_v0  ;;  %v5069_v7 = vmul.f32 %v14654_v38, %v14428_v40  ;;  %13356 = vtanh.f32 %v5139_v37  ;;  %v13155_v37 = vld [vmem:[%s15997_s4 + $0x328] sm:$0xff]  }
 0x174   :  { %12415 = vmatprep.subr.bf16.mxu1 %v13476_v0 }
 0x175   :  { %v5140_v40 = vadd.f32 %v14675_v3, %v5069_v7 }
 0x176   :  { %12404 = vmatpush3.bf16.msra.mxu0 %v13134_v10  ;;  %v13353_v10 = vpop.eup %13352 }
 0x177   :  { %12416 = vmatpush3.bf16.msra.mxu1 %v13135_v21  ;;  %12421 = vmatprep.subr.bf16.mxu0 %v13476_v0  ;;  %v13355_v13 = vpop.eup %13354  ;;  %v13144_v21 = vld [vmem:[%s15997_s4 + $0x2c0] sm:$0xff]   ;;  %v5265_v14 = vpack.c.bf16 %v13353_v10, %v13353_v10  ;;  %13358 = vtanh.f32 %v5140_v40  ;;  %v5072_v40 = vmul.f32 %v14654_v38, %v14452_v58 }
 0x178   :  { %12433 = vmatprep.subr.bf16.mxu1 %v13476_v0  ;;  %v5266_v26 = vpack.c.bf16 %v13355_v13, %v13355_v13  ;;  %v13154_v13 = vld [vmem:[%s15997_s4 + $0x308] sm:$0xff]  }
 0x179   :  { %12406 = vmatmul.mubr.msk.bf16.vlgmr.msra.gmra.mrb[100].mxu0 %vm5845_vm3, %v5263_v20  ;;  %v13147_v20 = vld [vmem:[%s15997_s4 + $0x2e8] sm:$0xff]   ;;  %v5143_v58 = vadd.f32 %v14675_v3, %v5072_v40 }
 0x17a   :  { %12418 = vmatmul.mubr.msk.bf16.vlgmr.msra.gmra.mrb[100].mxu1 %vm5845_vm3, %v5264_v55  ;;  %12422 = vmatpush3.bf16.msra.mxu0 %v13136_v47  ;;  %v13146_v47 = vld [vmem:[%s15997_s4 + $0x2c8] sm:$0xff]   ;;  %v5070_v55 = vmul.f32 %v14654_v38, %v14438_v48 }
 0x17b   :  { %12434 = vmatpush3.bf16.msra.mxu1 %v13137_v54  ;;  %12423 = vmatprep.subr.bf16.mxu0 %v13476_v0  ;;  %v13149_v54 = vld [vmem:[%s15997_s4 + $0x2f0] sm:$0xff]  }
 0x17c   :  { %12435 = vmatprep.subr.bf16.mxu1 %v13476_v0  ;;  %12429 = vmatprep.mubr.msk.bf16.mxu0 %vm13477_vm2, %v13476_v0  ;;  %v5141_v48 = vadd.f32 %v14675_v3, %v5070_v55 }
 0x17d   :  { %12441 = vmatprep.mubr.msk.bf16.mxu1 %vm13477_vm2, %v13476_v0 }
 0x17e   :  { %12424 = vmatpush3.bf16.msra.mxu0 %v13138_v22  ;;  %v13150_v22 = vld [vmem:[%s15997_s4 + $0x2d8] sm:$0xff]   ;;  %13360 = vtanh.f32 %v5141_v48  ;;  %v13165_v48 = vld [vmem:[%s15997_s4 + $0x370] sm:$0xff]  }
 0x17f   :  { %12436 = vmatpush3.bf16.msra.mxu1 %v13139_v16  ;;  %12425 = vmatprep.subr.bf16.mxu0 %v13476_v0  ;;  %v5071_v16 = vmul.f32 %v14654_v38, %v14441_v52 }
 0x180   :  { %12437 = vmatprep.subr.bf16.mxu1 %v13476_v0 }
 0x181   :  { %v5142_v52 = vadd.f32 %v14675_v3, %v5071_v16 }
 0x182   :  { %12426 = vmatpush3.bf16.msra.mxu0 %v13140_v59  ;;  %v13151_v59 = vld [vmem:[%s15997_s4 + $0x2f8] sm:$0xff]  }
 0x183   :  { %12438 = vmatpush3.bf16.msra.mxu1 %v13141_v11  ;;  %12427 = vmatprep.subr.bf16.mxu0 %v13476_v0  ;;  %v13357_v11 = vpop.eup %13356  ;;  %13362 = vtanh.f32 %v5142_v52  ;;  %v5075_v52 = vmul.f32 %v14654_v38, %v14473_v6 }
 0x184   :  { %12439 = vmatprep.subr.bf16.mxu1 %v13476_v0  ;;  %v13359_v4 = vpop.eup %13358  ;;  %v5267_v7 = vpack.c.bf16 %v13357_v11, %v13357_v11  ;;  %13364 = vtanh.f32 %v5143_v58  ;;  %v13163_v11 = vld [vmem:[%s15997_s4 + $0x368] sm:$0xff]  }
 0x185   :  { %v5268_v10 = vpack.c.bf16 %v13359_v4, %v13359_v4  ;;  %v13164_v4 = vld [vmem:[%s15997_s4 + $0x350] sm:$0xff]   ;;  %v5146_v6 = vadd.f32 %v14675_v3, %v5075_v52  ;;  %v5077_v52 = vmul.f32 %v14654_v38, %v14488_v19 }
 0x186   :  { %12428 = vmatpush3.bf16.msra.mxu0 %v13142_v50  ;;  %v13152_v50 = vld [vmem:[%s15997_s4 + $0x300] sm:$0xff]  }
 0x187   :  { %12440 = vmatpush3.bf16.msra.mxu1 %v13143_v12  ;;  %12445 = vmatprep.subr.bf16.mxu0 %v13476_v0  ;;  %v13153_v12 = vld [vmem:[%s15997_s4 + $0x320] sm:$0xff]   ;;  %v5148_v19 = vadd.f32 %v14675_v3, %v5077_v52  ;;  %v13183_v52 = vld [vmem:[%s15997_s4 + $0x3f8] sm:$0xff]  }
 0x188   :  { %12457 = vmatprep.subr.bf16.mxu1 %v13476_v0 }
 0x189   :  { %12430 = vmatmul.mubr.msk.bf16.vlgmr.msra.gmra.mrb[104].mxu0 %vm5845_vm3, %v5265_v14  ;;  %v13157_v14 = vld [vmem:[%s15997_s4 + $0x330] sm:$0xff]  }
 0x18a   :  { %12442 = vmatmul.mubr.msk.bf16.vlgmr.msra.gmra.mrb[104].mxu1 %vm5845_vm3, %v5266_v26  ;;  %12446 = vmatpush3.bf16.msra.mxu0 %v13144_v21  ;;  %v13156_v21 = vld [vmem:[%s15997_s4 + $0x310] sm:$0xff]   ;;  %v5073_v26 = vmul.f32 %v14654_v38, %v14457_v60 }
 0x18b   :  { %12458 = vmatpush3.bf16.msra.mxu1 %v13145_v32  ;;  %12447 = vmatprep.subr.bf16.mxu0 %v13476_v0  ;;  %v13158_v32 = vld [vmem:[%s15997_s4 + $0x318] sm:$0xff]  }
 0x18c   :  { %12459 = vmatprep.subr.bf16.mxu1 %v13476_v0  ;;  %12453 = vmatprep.mubr.msk.bf16.mxu0 %vm13477_vm2, %v13476_v0  ;;  %v5144_v60 = vadd.f32 %v14675_v3, %v5073_v26  ;;  %v13171_v26 = vld [vmem:[%s15997_s4 + $0x3a8] sm:$0xff]  }
 0x18d   :  { %12465 = vmatprep.mubr.msk.bf16.mxu1 %vm13477_vm2, %v13476_v0 }
 0x18e   :  { %12448 = vmatpush3.bf16.msra.mxu0 %v13146_v47  ;;  %v13159_v47 = vld [vmem:[%s15997_s4 + $0x338] sm:$0xff]   ;;  %13366 = vtanh.f32 %v5144_v60 }
 0x18f   :  { %12460 = vmatpush3.bf16.msra.mxu1 %v13147_v20  ;;  %12449 = vmatprep.subr.bf16.mxu0 %v13476_v0  ;;  %v13361_v20 = vpop.eup %13360 }
 0x190   :  { %12461 = vmatprep.subr.bf16.mxu1 %v13476_v0  ;;  %v5269_v55 = vpack.c.bf16 %v13361_v20, %v13361_v20 }
 0x192   :  { %12450 = vmatpush3.bf16.msra.mxu0 %v13148_v29  ;;  %v13363_v29 = vpop.eup %13362 }
 0x193   :  { %12462 = vmatpush3.bf16.msra.mxu1 %v13149_v54  ;;  %12451 = vmatprep.subr.bf16.mxu0 %v13476_v0  ;;  %v13160_v54 = vld [vmem:[%s15997_s4 + $0x340] sm:$0xff]   ;;  %v5270_v16 = vpack.c.bf16 %v13363_v29, %v13363_v29 }
 0x194   :  { %12463 = vmatprep.subr.bf16.mxu1 %v13476_v0 }
 0x196   :  { %12452 = vmatpush3.bf16.msra.mxu0 %v13150_v22  ;;  %v13161_v22 = vld [vmem:[%s15997_s4 + $0x360] sm:$0xff]  }
 0x197   :  { %12464 = vmatpush3.bf16.msra.mxu1 %v13151_v59  ;;  %12469 = vmatprep.subr.bf16.mxu0 %v13476_v0  ;;  %v13162_v59 = vld [vmem:[%s15997_s4 + $0x348] sm:$0xff]  }
 0x198   :  { %12481 = vmatprep.subr.bf16.mxu1 %v13476_v0 }
 0x199   :  { %12454 = vmatmul.mubr.msk.bf16.vlgmr.msra.gmra.mrb[108].mxu0 %vm5845_vm3, %v5267_v7  ;;  %v13166_v7 = vld [vmem:[%s15997_s4 + $0x358] sm:$0xff]  }
 0x19a   :  { %12466 = vmatmul.mubr.msk.bf16.vlgmr.msra.gmra.mrb[108].mxu1 %vm5845_vm3, %v5268_v10  ;;  %12470 = vmatpush3.bf16.msra.mxu0 %v13152_v50  ;;  %v5074_v50 = vmul.f32 %v14654_v38, %v14468_v1  ;;  %v13365_v10 = vpop.eup %13364 }
 0x19b   :  { %12482 = vmatpush3.bf16.msra.mxu1 %v13153_v12  ;;  %12471 = vmatprep.subr.bf16.mxu0 %v13476_v0  ;;  %v13167_v12 = vld [vmem:[%s15997_s4 + $0x378] sm:$0xff]  }
 0x19c   :  { %12483 = vmatprep.subr.bf16.mxu1 %v13476_v0  ;;  %12477 = vmatprep.mubr.msk.bf16.mxu0 %vm13477_vm2, %v13476_v0  ;;  %v5145_v1 = vadd.f32 %v14675_v3, %v5074_v50  ;;  %v5076_v50 = vmul.f32 %v14654_v38, %v14484_v15 }
 0x19d   :  { %12489 = vmatprep.mubr.msk.bf16.mxu1 %vm13477_vm2, %v13476_v0 }
 0x19e   :  { %12472 = vmatpush3.bf16.msra.mxu0 %v13154_v13  ;;  %v13367_v13 = vpop.eup %13366  ;;  %13368 = vtanh.f32 %v5145_v1  ;;  %v5147_v15 = vadd.f32 %v14675_v3, %v5076_v50  ;;  %v13176_v1 = vld [vmem:[%s15997_s4 + $0x3c0] sm:$0xff]   ;;  %v13182_v50 = vld [vmem:[%s15997_s4 + $0x3d8] sm:$0xff]  }
 0x19f   :  { %12484 = vmatpush3.bf16.msra.mxu1 %v13155_v37  ;;  %12473 = vmatprep.subr.bf16.mxu0 %v13476_v0  ;;  %v13168_v37 = vld [vmem:[%s15997_s4 + $0x380] sm:$0xff]   ;;  %v5272_v40 = vpack.c.bf16 %v13367_v13, %v13367_v13  ;;  %13370 = vtanh.f32 %v5146_v6 }
 0x1a0   :  { %12485 = vmatprep.subr.bf16.mxu1 %v13476_v0  ;;  %13372 = vtanh.f32 %v5147_v15 }
 0x1a1   :  { %13374 = vtanh.f32 %v5148_v19  ;;  %v13186_v19 = vld [vmem:[%s15997_s4 + $0x408] sm:$0xff]  }
 0x1a2   :  { %12474 = vmatpush3.bf16.msra.mxu0 %v13156_v21  ;;  %v5271_v21 = vpack.c.bf16 %v13365_v10, %v13365_v10 }
 0x1a3   :  { %12486 = vmatpush3.bf16.msra.mxu1 %v13157_v14  ;;  %12475 = vmatprep.subr.bf16.mxu0 %v13476_v0  ;;  %v13169_v14 = vld [vmem:[%s15997_s4 + $0x3a0] sm:$0xff]  }
 0x1a4   :  { %12487 = vmatprep.subr.bf16.mxu1 %v13476_v0 }
 0x1a6   :  { %12476 = vmatpush3.bf16.msra.mxu0 %v13158_v32  ;;  %v13170_v32 = vld [vmem:[%s15997_s4 + $0x388] sm:$0xff]  }
 0x1a7   :  { %12488 = vmatpush3.bf16.msra.mxu1 %v13159_v47  ;;  %12493 = vmatprep.subr.bf16.mxu0 %v13476_v0 }
 0x1a8   :  { %12505 = vmatprep.subr.bf16.mxu1 %v13476_v0  ;;  %v13369_v10 = vpop.eup %13368 }
 0x1a9   :  { %12478 = vmatmul.mubr.msk.bf16.vlgmr.msra.gmra.mrb[112].mxu0 %vm5845_vm3, %v5269_v55  ;;  %v13371_v13 = vpop.eup %13370 }
 0x1aa   :  { %12490 = vmatmul.mubr.msk.bf16.vlgmr.msra.gmra.mrb[112].mxu1 %vm5845_vm3, %v5270_v16  ;;  %12494 = vmatpush3.bf16.msra.mxu0 %v13160_v54  ;;  %v5274_v6 = vpack.c.bf16 %v13371_v13, %v13371_v13  ;;  %v13184_v13 = vld [vmem:[%s15997_s4 + $0x400] sm:$0xff]  }
 0x1ab   :  { %12506 = vmatpush3.bf16.msra.mxu1 %v13161_v22  ;;  %12495 = vmatprep.subr.bf16.mxu0 %v13476_v0  ;;  %v13172_v22 = vld [vmem:[%s15997_s4 + $0x390] sm:$0xff]  }
 0x1ac   :  { %12507 = vmatprep.subr.bf16.mxu1 %v13476_v0  ;;  %12501 = vmatprep.mubr.msk.bf16.mxu0 %vm13477_vm2, %v13476_v0 }
 0x1ad   :  { %12513 = vmatprep.mubr.msk.bf16.mxu1 %vm13477_vm2, %v13476_v0 }
 0x1ae   :  { %12496 = vmatpush3.bf16.msra.mxu0 %v13162_v59 }
 0x1af   :  { %12508 = vmatpush3.bf16.msra.mxu1 %v13163_v11  ;;  %12497 = vmatprep.subr.bf16.mxu0 %v13476_v0 }
 0x1b0   :  { %12509 = vmatprep.subr.bf16.mxu1 %v13476_v0 }
 0x1b2   :  { %12498 = vmatpush3.bf16.msra.mxu0 %v13164_v4  ;;  %v13173_v4 = vld [vmem:[%s15997_s4 + $0x3b0] sm:$0xff]  }
 0x1b3   :  { %12510 = vmatpush3.bf16.msra.mxu1 %v13165_v48  ;;  %12499 = vmatprep.subr.bf16.mxu0 %v13476_v0 }
 0x1b4   :  { %12511 = vmatprep.subr.bf16.mxu1 %v13476_v0 }
 0x1b6   :  { %12500 = vmatpush3.bf16.msra.mxu0 %v13166_v7  ;;  %v13174_v7 = vld [vmem:[%s15997_s4 + $0x398] sm:$0xff]  }
 0x1b7   :  { %12512 = vmatpush3.bf16.msra.mxu1 %v13167_v12  ;;  %12517 = vmatprep.subr.bf16.mxu0 %v13476_v0  ;;  %v13175_v12 = vld [vmem:[%s15997_s4 + $0x3b8] sm:$0xff]  }
 0x1b8   :  { %12529 = vmatprep.subr.bf16.mxu1 %v13476_v0 }
 0x1b9   :  { %12502 = vmatmul.mubr.msk.bf16.vlgmr.msra.gmra.mrb[116].mxu0 %vm5845_vm3, %v5271_v21  ;;  %v13177_v21 = vld [vmem:[%s15997_s4 + $0x3e0] sm:$0xff]  }
 0x1ba   :  { %12514 = vmatmul.mubr.msk.bf16.vlgmr.msra.gmra.mrb[116].mxu1 %vm5845_vm3, %v5272_v40  ;;  %12518 = vmatpush3.bf16.msra.mxu0 %v13168_v37  ;;  %v5273_v37 = vpack.c.bf16 %v13369_v10, %v13369_v10  ;;  %v13179_v40 = vld [vmem:[%s15997_s4 + $0x3e8] sm:$0xff]  }
 0x1bb   :  { %12530 = vmatpush3.bf16.msra.mxu1 %v13169_v14  ;;  %12519 = vmatprep.subr.bf16.mxu0 %v13476_v0  ;;  %v13178_v14 = vld [vmem:[%s15997_s4 + $0x3c8] sm:$0xff]  }
 0x1bc   :  { %v5883_v47 = vpop.f32.mrb[64].mxu0  ;;  %12531 = vmatprep.subr.bf16.mxu1 %v13476_v0  ;;  %12525 = vmatprep.mubr.msk.bf16.mxu0 %vm13477_vm2, %v13476_v0 }
 0x1bd   :  { %v10111_v20 = vsel %vm10110_vm4, %v5883_v47, 0.0  ;;  %v5950_v29 = vpop.f32.mrb[64].mxu1  ;;  %v12191_v58 = vpop.f32.mrb[65].mxu0  ;;  %12537 = vmatprep.mubr.msk.bf16.mxu1 %vm13477_vm2, %v13476_v0 }
 0x1be   :  { %v10112_v54 = vsel %vm10110_vm4, %v5950_v29, 0.0  ;;  %v12203_v55 = vpop.f32.mrb[65].mxu1  ;;  %12520 = vmatpush3.bf16.msra.mxu0 %v13170_v32  ;;  %v5886_v60 = vpop.f32.mrb[66].mxu0 }
 0x1bf   :  { %v10113_v16 = vadd.f32 %v10112_v54, %v10111_v20  ;;  %12532 = vmatpush3.bf16.msra.mxu1 %v13171_v26  ;;  %v5953_v59 = vpop.f32.mrb[66].mxu1  ;;  %v12192_v11 = vpop.f32.mrb[67].mxu0  ;;  %12521 = vmatprep.subr.bf16.mxu0 %v13476_v0  ;;  %v13180_v60 = vld [vmem:[%s15997_s4 + $0x3d0] sm:$0xff]  }
 0x1c0   :  { %v12204_v48 = vpop.f32.mrb[67].mxu1  ;;  %12533 = vmatprep.subr.bf16.mxu1 %v13476_v0  ;;  %v13181_v11 = vld [vmem:[%s15997_s4 + $0x3f0] sm:$0xff]  }
 0x1c1   :  { %v5078_v48 = vmul.f32 %v14654_v38, %v14498_v28 }
 0x1c2   :  { %12522 = vmatpush3.bf16.msra.mxu0 %v13172_v22 }
 0x1c3   :  { %12534 = vmatpush3.bf16.msra.mxu1 %v13173_v4  ;;  %12523 = vmatprep.subr.bf16.mxu0 %v13476_v0  ;;  %v5149_v28 = vadd.f32 %v14675_v3, %v5078_v48  ;;  %v13191_v48 = vld [vmem:[%s15997_s4 + $0x438] sm:$0xff]  }
 0x1c4   :  { %12535 = vmatprep.subr.bf16.mxu1 %v13476_v0 }
 0x1c5   :  { %13376 = vtanh.f32 %v5149_v28 }
 0x1c6   :  { %12524 = vmatpush3.bf16.msra.mxu0 %v13174_v7  ;;  %v5079_v7 = vmul.f32 %v14654_v38, %v14501_v33 }
 0x1c7   :  { %12536 = vmatpush3.bf16.msra.mxu1 %v13175_v12  ;;  %12541 = vmatprep.subr.bf16.mxu0 %v13476_v0  ;;  %v13373_v12 = vpop.eup %13372 }
 0x1c8   :  { %12553 = vmatprep.subr.bf16.mxu1 %v13476_v0  ;;  %v13375_v10 = vpop.eup %13374  ;;  %v5275_v15 = vpack.c.bf16 %v13373_v12, %v13373_v12  ;;  %v5150_v33 = vadd.f32 %v14675_v3, %v5079_v7 }
 0x1c9   :  { %12526 = vmatmul.mubr.msk.bf16.vlgmr.msra.gmra.mrb[120].mxu0 %vm5845_vm3, %v5273_v37  ;;  %v5276_v37 = vpack.c.bf16 %v13375_v10, %v13375_v10  ;;  %v13193_v10 = vld [vmem:[%s15997_s4 + $0x460] sm:$0xff]  }
 0x1ca   :  { %12538 = vmatmul.mubr.msk.bf16.vlgmr.msra.gmra.mrb[120].mxu1 %vm5845_vm3, %v5274_v6  ;;  %12542 = vmatpush3.bf16.msra.mxu0 %v13176_v1  ;;  %v13185_v1 = vld [vmem:[%s15997_s4 + $0x420] sm:$0xff]   ;;  %13378 = vtanh.f32 %v5150_v33 }
 0x1cb   :  { %12554 = vmatpush3.bf16.msra.mxu1 %v13177_v21  ;;  %12543 = vmatprep.subr.bf16.mxu0 %v13476_v0  ;;  %v13187_v21 = vld [vmem:[%s15997_s4 + $0x428] sm:$0xff]  }
 0x1cc   :  { %v6017_v32 = vpop.f32.mrb[68].mxu0  ;;  %12555 = vmatprep.subr.bf16.mxu1 %v13476_v0  ;;  %12549 = vmatprep.mubr.msk.bf16.mxu0 %vm13477_vm2, %v13476_v0 }
 0x1cd   :  { %v10114_v26 = vsel %vm10110_vm4, %v6017_v32, 0.0  ;;  %v6084_v47 = vpop.f32.mrb[68].mxu1  ;;  %v12215_v20 = vpop.f32.mrb[69].mxu0  ;;  %12561 = vmatprep.mubr.msk.bf16.mxu1 %vm13477_vm2, %v13476_v0 }
 0x1ce   :  { %v10115_v29 = vadd.f32 %v10114_v26, %v10113_v16  ;;  %v10116_v58 = vsel %vm10110_vm4, %v6084_v47, 0.0  ;;  %v12227_v54 = vpop.f32.mrb[69].mxu1  ;;  %v6020_v55 = vpop.f32.mrb[70].mxu0  ;;  %12544 = vmatpush3.bf16.msra.mxu0 %v13178_v14 }
 0x1cf   :  { %v6087_v22 = vpop.f32.mrb[70].mxu1  ;;  %12556 = vmatpush3.bf16.msra.mxu1 %v13179_v40  ;;  %v12216_v59 = vpop.f32.mrb[71].mxu0  ;;  %12545 = vmatprep.subr.bf16.mxu0 %v13476_v0 }
 0x1d0   :  { %v10117_v4 = vadd.f32 %v10116_v58, %v10115_v29  ;;  %v12228_v16 = vpop.f32.mrb[71].mxu1  ;;  %12557 = vmatprep.subr.bf16.mxu1 %v13476_v0  ;;  %v13188_v58 = vld [vmem:[%s15997_s4 + $0x410] sm:$0xff]  }
 0x1d1   :  { %v5081_v16 = vmul.f32 %v14654_v38, %v14517_v39 }
 0x1d2   :  { %12546 = vmatpush3.bf16.msra.mxu0 %v13180_v60  ;;  %v13189_v60 = vld [vmem:[%s15997_s4 + $0x430] sm:$0xff]  }
 0x1d3   :  { %12558 = vmatpush3.bf16.msra.mxu1 %v13181_v11  ;;  %12547 = vmatprep.subr.bf16.mxu0 %v13476_v0  ;;  %v5080_v11 = vmul.f32 %v14654_v38, %v14512_v31  ;;  %v5152_v39 = vadd.f32 %v14675_v3, %v5081_v16 }
 0x1d4   :  { %12559 = vmatprep.subr.bf16.mxu1 %v13476_v0 }
 0x1d5   :  { %v5151_v31 = vadd.f32 %v14675_v3, %v5080_v11 }
 0x1d6   :  { %12548 = vmatpush3.bf16.msra.mxu0 %v13182_v50  ;;  %v13377_v50 = vpop.eup %13376 }
 0x1d7   :  { %12560 = vmatpush3.bf16.msra.mxu1 %v13183_v52  ;;  %12565 = vmatprep.subr.bf16.mxu0 %v13476_v0  ;;  %v13379_v7 = vpop.eup %13378  ;;  %v13192_v52 = vld [vmem:[%s15997_s4 + $0x440] sm:$0xff]   ;;  %v5277_v12 = vpack.c.bf16 %v13377_v50, %v13377_v50  ;;  %13380 = vtanh.f32 %v5151_v31  ;;  %v13203_v50 = vld [vmem:[%s15997_s4 + $0x4a8] sm:$0xff]  }
 0x1d8   :  { %12577 = vmatprep.subr.bf16.mxu1 %v13476_v0  ;;  %v5278_v28 = vpack.c.bf16 %v13379_v7, %v13379_v7  ;;  %13382 = vtanh.f32 %v5152_v39 }
 0x1d9   :  { %12550 = vmatmul.mubr.msk.bf16.vlgmr.msra.gmra.mrb[124].mxu0 %vm5845_vm3, %v5275_v15  ;;  %v13195_v15 = vld [vmem:[%s15997_s4 + $0x468] sm:$0xff]  }
 0x1da   :  { %12562 = vmatmul.mubr.msk.bf16.vlgmr.msra.gmra.mrb[124].mxu1 %vm5845_vm3, %v5276_v37  ;;  %12566 = vmatpush3.bf16.msra.mxu0 %v13184_v13  ;;  %v13194_v13 = vld [vmem:[%s15997_s4 + $0x448] sm:$0xff]  }
 0x1db   :  { %12578 = vmatpush3.bf16.msra.mxu1 %v13185_v1  ;;  %12567 = vmatprep.subr.bf16.mxu0 %v13476_v0 }
 0x1dc   :  { %v6151_v6 = vpop.f32.mrb[72].mxu0  ;;  %12579 = vmatprep.subr.bf16.mxu1 %v13476_v0  ;;  %12573 = vmatprep.mubr.msk.bf16.mxu0 %vm13477_vm2, %v13476_v0 }
 0x1dd   :  { %v10118_v14 = vsel %vm10110_vm4, %v6151_v6, 0.0  ;;  %v6218_v40 = vpop.f32.mrb[72].mxu1  ;;  %v12239_v32 = vpop.f32.mrb[73].mxu0  ;;  %12585 = vmatprep.mubr.msk.bf16.mxu1 %vm13477_vm2, %v13476_v0 }
 0x1de   :  { %v10119_v26 = vadd.f32 %v10118_v14, %v10117_v4  ;;  %v10120_v47 = vsel %vm10110_vm4, %v6218_v40, 0.0  ;;  %v12251_v20 = vpop.f32.mrb[73].mxu1  ;;  %v6154_v29 = vpop.f32.mrb[74].mxu0  ;;  %12568 = vmatpush3.bf16.msra.mxu0 %v13186_v19  ;;  %v13190_v4 = vld [vmem:[%s15997_s4 + $0x418] sm:$0xff]   ;;  %v13196_v32 = vld [vmem:[%s15997_s4 + $0x450] sm:$0xff]  }
 0x1df   :  { %v6221_v54 = vpop.f32.mrb[74].mxu1  ;;  %12580 = vmatpush3.bf16.msra.mxu1 %v13187_v21  ;;  %v12240_v55 = vpop.f32.mrb[75].mxu0  ;;  %12569 = vmatprep.subr.bf16.mxu0 %v13476_v0  ;;  %v13197_v20 = vld [vmem:[%s15997_s4 + $0x470] sm:$0xff]  }
 0x1e0   :  { %v10121_v22 = vadd.f32 %v10120_v47, %v10119_v26  ;;  %v12252_v59 = vpop.f32.mrb[75].mxu1  ;;  %12581 = vmatprep.subr.bf16.mxu1 %v13476_v0  ;;  %v5082_v54 = vmul.f32 %v14654_v38, %v14528_v45  ;;  %v13198_v55 = vld [vmem:[%s15997_s4 + $0x458] sm:$0xff]  }
 0x1e1   :  { %v13381_v59 = vpop.eup %13380 }
 0x1e2   :  { %12570 = vmatpush3.bf16.msra.mxu0 %v13188_v58  ;;  %v13383_v11 = vpop.eup %13382  ;;  %v5153_v45 = vadd.f32 %v14675_v3, %v5082_v54  ;;  %v5279_v16 = vpack.c.bf16 %v13381_v59, %v13381_v59  ;;  %v13211_v59 = vld [vmem:[%s15997_s4 + $0x4e8] sm:$0xff]  }
 0x1e3   :  { %12582 = vmatpush3.bf16.msra.mxu1 %v13189_v60  ;;  %12571 = vmatprep.subr.bf16.mxu0 %v13476_v0  ;;  %v5083_v60 = vmul.f32 %v14654_v38, %v14533_v51  ;;  %v13201_v38 = vld [vmem:[%s15997_s4 + $0x4a0] sm:$0xff]  }
 0x1e4   :  { %12583 = vmatprep.subr.bf16.mxu1 %v13476_v0  ;;  %13384 = vtanh.f32 %v5153_v45 }
 0x1e5   :  { %v5154_v51 = vadd.f32 %v14675_v3, %v5083_v60  ;;  %v13202_v3 = vld [vmem:[%s15997_s4 + $0x488] sm:$0xff]  }
 0x1e6   :  { %12572 = vmatpush3.bf16.msra.mxu0 %v13190_v4  ;;  %v13200_v4 = vld [vmem:[%s15997_s4 + $0x480] sm:$0xff]  }
 0x1e7   :  { %12584 = vmatpush3.bf16.msra.mxu1 %v13191_v48  ;;  %12589 = vmatprep.subr.bf16.mxu0 %v13476_v0  ;;  %v5280_v48 = vpack.c.bf16 %v13383_v11, %v13383_v11  ;;  %13386 = vtanh.f32 %v5154_v51 }
 0x1e8   :  { %12601 = vmatprep.subr.bf16.mxu1 %v13476_v0 }
 0x1e9   :  { %12574 = vmatmul.mubr.msk.bf16.vlgmr.msra.gmra.mrb[128].mxu0 %vm5845_vm3, %v5277_v12 }
 0x1ea   :  { %12586 = vmatmul.mubr.msk.bf16.vlgmr.msra.gmra.mrb[128].mxu1 %vm5845_vm3, %v5278_v28  ;;  %12590 = vmatpush3.bf16.msra.mxu0 %v13192_v52 }
 0x1eb   :  { %12602 = vmatpush3.bf16.msra.mxu1 %v13193_v10  ;;  %12591 = vmatprep.subr.bf16.mxu0 %v13476_v0 }
 0x1ec   :  { %v6285_v33 = vpop.f32.mrb[76].mxu0  ;;  %12603 = vmatprep.subr.bf16.mxu1 %v13476_v0  ;;  %12597 = vmatprep.mubr.msk.bf16.mxu0 %vm13477_vm2, %v13476_v0 }
 0x1ed   :  { %v10122_v1 = vsel %vm10110_vm4, %v6285_v33, 0.0  ;;  %v6352_v37 = vpop.f32.mrb[76].mxu1  ;;  %v12263_v19 = vpop.f32.mrb[77].mxu0  ;;  %12609 = vmatprep.mubr.msk.bf16.mxu1 %vm13477_vm2, %v13476_v0 }
 0x1ee   :  { %v10123_v21 = vadd.f32 %v10122_v1, %v10121_v22  ;;  %v10124_v6 = vsel %vm10110_vm4, %v6352_v37, 0.0  ;;  %v12275_v14 = vpop.f32.mrb[77].mxu1  ;;  %v6288_v40 = vpop.f32.mrb[78].mxu0  ;;  %12592 = vmatpush3.bf16.msra.mxu0 %v13194_v13  ;;  %v13199_v22 = vld [vmem:[%s15997_s4 + $0x478] sm:$0xff]   ;;  %v13205_v37 = vld [vmem:[%s15997_s4 + $0x4b0] sm:$0xff]  }
 0x1ef   :  { %v6355_v26 = vpop.f32.mrb[78].mxu1  ;;  %12604 = vmatpush3.bf16.msra.mxu1 %v13195_v15  ;;  %v12264_v47 = vpop.f32.mrb[79].mxu0  ;;  %12593 = vmatprep.subr.bf16.mxu0 %v13476_v0  ;;  %v13204_v15 = vld [vmem:[%s15997_s4 + $0x490] sm:$0xff]   ;;  %v13206_v40 = vld [vmem:[%s15997_s4 + $0x498] sm:$0xff]  }
 0x1f0   :  { %v10125_v29 = vadd.f32 %v10124_v6, %v10123_v21  ;;  %v12276_v58 = vpop.f32.mrb[79].mxu1  ;;  %12605 = vmatprep.subr.bf16.mxu1 %v13476_v0  ;;  %v15224_v6 = vld [vmem:[%s15998_s2] ss:$0 sm:$0xff]  ;;  %v13207_v26 = vld [vmem:[%s15997_s4 + $0x4b8] sm:$0xff]   ;;  %v13385_v47 = vpop.eup %13384 }
 0x1f1   :  { %v5084_v14 = vmul.f32 %v15224_v6, %v14544_v62  ;;  %v15241_v62 = vld [vmem:[%s15999_s3] ss:$0 sm:$0xff]  ;;  %v5281_v58 = vpack.c.bf16 %v13385_v47, %v13385_v47 }
 0x1f2   :  { %12594 = vmatpush3.bf16.msra.mxu0 %v13196_v32  ;;  %v5085_v32 = vmul.f32 %v15224_v6, %v14548_v5  ;;  %v13208_v5 = vld [vmem:[%s15997_s4 + $0x4c0] sm:$0xff]  }
 0x1f3   :  { %12606 = vmatpush3.bf16.msra.mxu1 %v13197_v20  ;;  %12595 = vmatprep.subr.bf16.mxu0 %v13476_v0  ;;  %v13387_v20 = vpop.eup %13386 }
 0x1f4   :  { %12607 = vmatprep.subr.bf16.mxu1 %v13476_v0  ;;  %v5156_v54 = vadd.f32 %v15241_v62, %v5085_v32  ;;  %v5282_v60 = vpack.c.bf16 %v13387_v20, %v13387_v20  ;;  %v13219_v32 = vld [vmem:[%s15997_s4 + $0x528] sm:$0xff]  }
 0x1f6   :  { %12596 = vmatpush3.bf16.msra.mxu0 %v13198_v55  ;;  %v13209_v55 = vld [vmem:[%s15997_s4 + $0x4e0] sm:$0xff]  }
 0x1f7   :  { %12608 = vmatpush3.bf16.msra.mxu1 %v13199_v22  ;;  %12613 = vmatprep.subr.bf16.mxu0 %v13476_v0  ;;  %v13210_v22 = vld [vmem:[%s15997_s4 + $0x4c8] sm:$0xff]  }
 0x1f8   :  { %12625 = vmatprep.subr.bf16.mxu1 %v13476_v0 }
 0x1f9   :  { %12598 = vmatmul.mubr.msk.bf16.vlgmr.msra.gmra.mrb[132].mxu0 %vm5845_vm3, %v5279_v16 }
 0x1fa   :  { %12610 = vmatmul.mubr.msk.bf16.vlgmr.msra.gmra.mrb[132].mxu1 %vm5845_vm3, %v5280_v48  ;;  %12614 = vmatpush3.bf16.msra.mxu0 %v13200_v4 }
 0x1fb   :  { %12626 = vmatpush3.bf16.msra.mxu1 %v13201_v38  ;;  %12615 = vmatprep.subr.bf16.mxu0 %v13476_v0 }
 0x1fc   :  { %v6419_v7 = vpop.f32.mrb[80].mxu0  ;;  %12627 = vmatprep.subr.bf16.mxu1 %v13476_v0  ;;  %12621 = vmatprep.mubr.msk.bf16.mxu0 %vm13477_vm2, %v13476_v0 }
 0x1fd   :  { %v10126_v31 = vsel %vm10110_vm4, %v6419_v7, 0.0  ;;  %v6486_v52 = vpop.f32.mrb[80].mxu1  ;;  %v12287_v12 = vpop.f32.mrb[81].mxu0  ;;  %12633 = vmatprep.mubr.msk.bf16.mxu1 %vm13477_vm2, %v13476_v0 }
 0x1fe   :  { %v10127_v39 = vadd.f32 %v10126_v31, %v10125_v29  ;;  %v10128_v10 = vsel %vm10110_vm4, %v6486_v52, 0.0  ;;  %v12299_v28 = vpop.f32.mrb[81].mxu1  ;;  %v6422_v13 = vpop.f32.mrb[82].mxu0  ;;  %12616 = vmatpush3.bf16.msra.mxu0 %v13202_v3  ;;  %v5155_v29 = vadd.f32 %v15241_v62, %v5084_v14  ;;  %v13213_v52 = vld [vmem:[%s15997_s4 + $0x4f0] sm:$0xff]  }
 0x1ff   :  { %v6489_v33 = vpop.f32.mrb[82].mxu1  ;;  %12628 = vmatpush3.bf16.msra.mxu1 %v13203_v50  ;;  %v12288_v1 = vpop.f32.mrb[83].mxu0  ;;  %12617 = vmatprep.subr.bf16.mxu0 %v13476_v0  ;;  %v13212_v50 = vld [vmem:[%s15997_s4 + $0x4d0] sm:$0xff]   ;;  %v13214_v28 = vld [vmem:[%s15997_s4 + $0x4d8] sm:$0xff]   ;;  %v5087_v13 = vmul.f32 %v15224_v6, %v14561_v18 }
 0x200   :  { %v10129_v19 = vadd.f32 %v10128_v10, %v10127_v39  ;;  %v12300_v21 = vpop.f32.mrb[83].mxu1  ;;  %12629 = vmatprep.subr.bf16.mxu1 %v13476_v0  ;;  %13388 = vtanh.f32 %v5155_v29  ;;  %v5086_v10 = vmul.f32 %v15224_v6, %v14558_v42 }
 0x201   :  { %13390 = vtanh.f32 %v5156_v54  ;;  %v5158_v18 = vadd.f32 %v15241_v62, %v5087_v13  ;;  %v13217_v21 = vld [vmem:[%s15997_s4 + $0x520] sm:$0xff]  }
 0x202   :  { %12618 = vmatpush3.bf16.msra.mxu0 %v13204_v15  ;;  %v13215_v15 = vld [vmem:[%s15997_s4 + $0x4f8] sm:$0xff]   ;;  %v5157_v42 = vadd.f32 %v15241_v62, %v5086_v10  ;;  %v13227_v10 = vld [vmem:[%s15997_s4 + $0x568] sm:$0xff]  }
 0x203   :  { %12630 = vmatpush3.bf16.msra.mxu1 %v13205_v37  ;;  %12619 = vmatprep.subr.bf16.mxu0 %v13476_v0  ;;  %v13216_v37 = vld [vmem:[%s15997_s4 + $0x500] sm:$0xff]  }
 0x204   :  { %12631 = vmatprep.subr.bf16.mxu1 %v13476_v0  ;;  %13392 = vtanh.f32 %v5157_v42 }
 0x205   :  { %13394 = vtanh.f32 %v5158_v18  ;;  %v13228_v18 = vld [vmem:[%s15997_s4 + $0x550] sm:$0xff]  }
 0x206   :  { %12620 = vmatpush3.bf16.msra.mxu0 %v13206_v40  ;;  %v13218_v40 = vld [vmem:[%s15997_s4 + $0x508] sm:$0xff]  }
 0x207   :  { %12632 = vmatpush3.bf16.msra.mxu1 %v13207_v26  ;;  %12637 = vmatprep.subr.bf16.mxu0 %v13476_v0 }
 0x208   :  { %12649 = vmatprep.subr.bf16.mxu1 %v13476_v0 }
 0x209   :  { %12622 = vmatmul.mubr.msk.bf16.vlgmr.msra.gmra.mrb[136].mxu0 %vm5845_vm3, %v5281_v58 }
 0x20a   :  { %12634 = vmatmul.mubr.msk.bf16.vlgmr.msra.gmra.mrb[136].mxu1 %vm5845_vm3, %v5282_v60  ;;  %12638 = vmatpush3.bf16.msra.mxu0 %v13208_v5  ;;  %v13389_v33 = vpop.eup %13388  ;;  %v13220_v60 = vld [vmem:[%s15997_s4 + $0x510] sm:$0xff]  }
 0x20b   :  { %12650 = vmatpush3.bf16.msra.mxu1 %v13209_v55  ;;  %12639 = vmatprep.subr.bf16.mxu0 %v13476_v0  ;;  %v13391_v1 = vpop.eup %13390 }
 0x20c   :  { %v6553_v11 = vpop.f32.mrb[84].mxu0  ;;  %12651 = vmatprep.subr.bf16.mxu1 %v13476_v0  ;;  %12645 = vmatprep.mubr.msk.bf16.mxu0 %vm13477_vm2, %v13476_v0  ;;  %v5284_v14 = vpack.c.bf16 %v13391_v1, %v13391_v1 }
 0x20d   :  { %v10130_v45 = vsel %vm10110_vm4, %v6553_v11, 0.0  ;;  %v6620_v4 = vpop.f32.mrb[84].mxu1  ;;  %v12311_v16 = vpop.f32.mrb[85].mxu0  ;;  %12657 = vmatprep.mubr.msk.bf16.mxu1 %vm13477_vm2, %v13476_v0  ;;  %v13221_v11 = vld [vmem:[%s15997_s4 + $0x530] sm:$0xff]  }
 0x20e   :  { %v10131_v51 = vadd.f32 %v10130_v45, %v10129_v19  ;;  %v10132_v38 = vsel %vm10110_vm4, %v6620_v4, 0.0  ;;  %v12323_v48 = vpop.f32.mrb[85].mxu1  ;;  %v6556_v3 = vpop.f32.mrb[86].mxu0  ;;  %12640 = vmatpush3.bf16.msra.mxu0 %v13210_v22  ;;  %v5283_v19 = vpack.c.bf16 %v13389_v33, %v13389_v33  ;;  %v5088_v16 = vmul.f32 %v15224_v6, %v14572_v24 }
 0x20f   :  { %v6623_v7 = vpop.f32.mrb[86].mxu1  ;;  %12652 = vmatpush3.bf16.msra.mxu1 %v13211_v59  ;;  %v12312_v31 = vpop.f32.mrb[87].mxu0  ;;  %12641 = vmatprep.subr.bf16.mxu0 %v13476_v0  ;;  %v13223_v48 = vld [vmem:[%s15997_s4 + $0x538] sm:$0xff]  }
 0x210   :  { %v10133_v12 = vadd.f32 %v10132_v38, %v10131_v51  ;;  %v12324_v39 = vpop.f32.mrb[87].mxu1  ;;  %12653 = vmatprep.subr.bf16.mxu1 %v13476_v0  ;;  %v13222_v51 = vld [vmem:[%s15997_s4 + $0x518] sm:$0xff]   ;;  %v5089_v38 = vmul.f32 %v15224_v6, %v14577_v27  ;;  %v13393_v3 = vpop.eup %13392  ;;  %v5159_v24 = vadd.f32 %v15241_v62, %v5088_v16  ;;  %v13224_v7 = vld [vmem:[%s15997_s4 + $0x540] sm:$0xff]  }
 0x211   :  { %v5285_v31 = vpack.c.bf16 %v13393_v3, %v13393_v3  ;;  %v13226_v39 = vld [vmem:[%s15997_s4 + $0x548] sm:$0xff]  }
 0x212   :  { %12642 = vmatpush3.bf16.msra.mxu0 %v13212_v50  ;;  %v13395_v50 = vpop.eup %13394  ;;  %v5160_v27 = vadd.f32 %v15241_v62, %v5089_v38  ;;  %13396 = vtanh.f32 %v5159_v24  ;;  %v13236_v24 = vld [vmem:[%s15997_s4 + $0x590] sm:$0xff]  }
 0x213   :  { %12654 = vmatpush3.bf16.msra.mxu1 %v13213_v52  ;;  %12643 = vmatprep.subr.bf16.mxu0 %v13476_v0  ;;  %v13225_v52 = vld [vmem:[%s15997_s4 + $0x560] sm:$0xff]  }
 0x214   :  { %12655 = vmatprep.subr.bf16.mxu1 %v13476_v0  ;;  %13398 = vtanh.f32 %v5160_v27 }
 0x216   :  { %12644 = vmatpush3.bf16.msra.mxu0 %v13214_v28 }
 0x217   :  { %12656 = vmatpush3.bf16.msra.mxu1 %v13215_v15  ;;  %12661 = vmatprep.subr.bf16.mxu0 %v13476_v0 }
 0x218   :  { %12673 = vmatprep.subr.bf16.mxu1 %v13476_v0 }
 0x219   :  { %12646 = vmatmul.mubr.msk.bf16.vlgmr.msra.gmra.mrb[140].mxu0 %vm5845_vm3, %v5283_v19 }
 0x21a   :  { %12658 = vmatmul.mubr.msk.bf16.vlgmr.msra.gmra.mrb[140].mxu1 %vm5845_vm3, %v5284_v14  ;;  %12662 = vmatpush3.bf16.msra.mxu0 %v13216_v37 }
 0x21b   :  { %12674 = vmatpush3.bf16.msra.mxu1 %v13217_v21  ;;  %12663 = vmatprep.subr.bf16.mxu0 %v13476_v0 }
 0x21c   :  { %v6687_v26 = vpop.f32.mrb[88].mxu0  ;;  %12675 = vmatprep.subr.bf16.mxu1 %v13476_v0  ;;  %12669 = vmatprep.mubr.msk.bf16.mxu0 %vm13477_vm2, %v13476_v0 }
 0x21d   :  { %v10134_v47 = vsel %vm10110_vm4, %v6687_v26, 0.0  ;;  %v6754_v20 = vpop.f32.mrb[88].mxu1  ;;  %v12335_v29 = vpop.f32.mrb[89].mxu0  ;;  %12681 = vmatprep.mubr.msk.bf16.mxu1 %vm13477_vm2, %v13476_v0 }
 0x21e   :  { %v10135_v5 = vadd.f32 %v10134_v47, %v10133_v12  ;;  %v10136_v58 = vsel %vm10110_vm4, %v6754_v20, 0.0  ;;  %v12347_v54 = vpop.f32.mrb[89].mxu1  ;;  %v6690_v55 = vpop.f32.mrb[90].mxu0  ;;  %12664 = vmatpush3.bf16.msra.mxu0 %v13218_v40  ;;  %v5286_v12 = vpack.c.bf16 %v13395_v50, %v13395_v50  ;;  %v13229_v40 = vld [vmem:[%s15997_s4 + $0x570] sm:$0xff]   ;;  %v5090_v47 = vmul.f32 %v15224_v6, %v14588_v36  ;;  %v13230_v20 = vld [vmem:[%s15997_s4 + $0x558] sm:$0xff]  }
 0x21f   :  { %v6757_v22 = vpop.f32.mrb[90].mxu1  ;;  %12676 = vmatpush3.bf16.msra.mxu1 %v13219_v32  ;;  %v12336_v59 = vpop.f32.mrb[91].mxu0  ;;  %12665 = vmatprep.subr.bf16.mxu0 %v13476_v0  ;;  %v5091_v29 = vmul.f32 %v15224_v6, %v14593_v41  ;;  %v13232_v55 = vld [vmem:[%s15997_s4 + $0x580] sm:$0xff]  }
 0x220   :  { %v10137_v45 = vadd.f32 %v10136_v58, %v10135_v5  ;;  %v12348_v4 = vpop.f32.mrb[91].mxu1  ;;  %12677 = vmatprep.subr.bf16.mxu1 %v13476_v0  ;;  %v13231_v5 = vld [vmem:[%s15997_s4 + $0x578] sm:$0xff]   ;;  %v13397_v58 = vpop.eup %13396  ;;  %v5161_v36 = vadd.f32 %v15241_v62, %v5090_v47  ;;  %v13233_v22 = vld [vmem:[%s15997_s4 + $0x5a0] sm:$0xff]  }
 0x221   :  { %v13399_v54 = vpop.eup %13398  ;;  %v5162_v41 = vadd.f32 %v15241_v62, %v5091_v29 }
 0x222   :  { %12666 = vmatpush3.bf16.msra.mxu0 %v13220_v60  ;;  %v5287_v60 = vpack.c.bf16 %v13397_v58, %v13397_v58  ;;  %v5288_v59 = vpack.c.bf16 %v13399_v54, %v13399_v54  ;;  %13400 = vtanh.f32 %v5161_v36  ;;  %v13244_v58 = vld [vmem:[%s15997_s4 + $0x5d0] sm:$0xff]  }
 0x223   :  { %12678 = vmatpush3.bf16.msra.mxu1 %v13221_v11  ;;  %12667 = vmatprep.subr.bf16.mxu0 %v13476_v0  ;;  %v13234_v11 = vld [vmem:[%s15997_s4 + $0x588] sm:$0xff]   ;;  %13402 = vtanh.f32 %v5162_v41 }
 0x224   :  { %12679 = vmatprep.subr.bf16.mxu1 %v13476_v0 }
 0x226   :  { %12668 = vmatpush3.bf16.msra.mxu0 %v13222_v51 }
 0x227   :  { %12680 = vmatpush3.bf16.msra.mxu1 %v13223_v48  ;;  %12685 = vmatprep.subr.bf16.mxu0 %v13476_v0 }
 0x228   :  { %12697 = vmatprep.subr.bf16.mxu1 %v13476_v0 }
 0x229   :  { %12670 = vmatmul.mubr.msk.bf16.vlgmr.msra.gmra.mrb[144].mxu0 %vm5845_vm3, %v5285_v31 }
 0x22a   :  { %12682 = vmatmul.mubr.msk.bf16.vlgmr.msra.gmra.mrb[144].mxu1 %vm5845_vm3, %v5286_v12  ;;  %12686 = vmatpush3.bf16.msra.mxu0 %v13224_v7 }
 0x22b   :  { %12698 = vmatpush3.bf16.msra.mxu1 %v13225_v52  ;;  %12687 = vmatprep.subr.bf16.mxu0 %v13476_v0  ;;  %v13237_v52 = vld [vmem:[%s15997_s4 + $0x5b0] sm:$0xff]  }
 0x22c   :  { %v6821_v28 = vpop.f32.mrb[92].mxu0  ;;  %12699 = vmatprep.subr.bf16.mxu1 %v13476_v0  ;;  %12693 = vmatprep.mubr.msk.bf16.mxu0 %vm13477_vm2, %v13476_v0 }
 0x22d   :  { %v10138_v13 = vsel %vm10110_vm4, %v6821_v28, 0.0  ;;  %v6888_v15 = vpop.f32.mrb[92].mxu1  ;;  %v12359_v33 = vpop.f32.mrb[93].mxu0  ;;  %12705 = vmatprep.mubr.msk.bf16.mxu1 %vm13477_vm2, %v13476_v0  ;;  %v13238_v28 = vld [vmem:[%s15997_s4 + $0x598] sm:$0xff]  }
 0x22e   :  { %v10139_v1 = vadd.f32 %v10138_v13, %v10137_v45  ;;  %v10140_v42 = vsel %vm10110_vm4, %v6888_v15, 0.0  ;;  %v12371_v37 = vpop.f32.mrb[93].mxu1  ;;  %v6824_v19 = vpop.f32.mrb[94].mxu0  ;;  %12688 = vmatpush3.bf16.msra.mxu0 %v13226_v39  ;;  %v13235_v45 = vld [vmem:[%s15997_s4 + $0x5a8] sm:$0xff]   ;;  %v5093_v13 = vmul.f32 %v15224_v6, %v14608_v49  ;;  %v13239_v15 = vld [vmem:[%s15997_s4 + $0x5b8] sm:$0xff]  }
 0x22f   :  { %v6891_v21 = vpop.f32.mrb[94].mxu1  ;;  %12700 = vmatpush3.bf16.msra.mxu1 %v13227_v10  ;;  %v12360_v14 = vpop.f32.mrb[95].mxu0  ;;  %12689 = vmatprep.subr.bf16.mxu0 %v13476_v0  ;;  %v5092_v10 = vmul.f32 %v15224_v6, %v14604_v57  ;;  %v13241_v19 = vld [vmem:[%s15997_s4 + $0x5e0] sm:$0xff]  }
 0x230   :  { %v10141_v32 = vadd.f32 %v10140_v42, %v10139_v1  ;;  %v12372_v26 = vpop.f32.mrb[95].mxu1  ;;  %12701 = vmatprep.subr.bf16.mxu1 %v13476_v0  ;;  %v13401_v33 = vpop.eup %13400  ;;  %v13240_v42 = vld [vmem:[%s15997_s4 + $0x5c0] sm:$0xff]   ;;  %v5164_v49 = vadd.f32 %v15241_v62, %v5093_v13  ;;  %v13242_v21 = vld [vmem:[%s15997_s4 + $0x5c8] sm:$0xff]   ;;  %v13252_v13 = vld [vmem:[%s15997_s4 + $0x610] sm:$0xff]  }
 0x231   :  { %v13403_v1 = vpop.eup %13402  ;;  %v5163_v57 = vadd.f32 %v15241_v62, %v5092_v10  ;;  %v5289_v37 = vpack.c.bf16 %v13401_v33, %v13401_v33  ;;  %v13243_v14 = vld [vmem:[%s15997_s4 + $0x5e8] sm:$0xff]  }
 0x232   :  { %12690 = vmatpush3.bf16.msra.mxu0 %v13228_v18  ;;  %v5290_v18 = vpack.c.bf16 %v13403_v1, %v13403_v1 }
 0x233   :  { %12702 = vmatpush3.bf16.msra.mxu1 %v13229_v40  ;;  %12691 = vmatprep.subr.bf16.mxu0 %v13476_v0  ;;  %13404 = vtanh.f32 %v5163_v57  ;;  %v13253_v57 = vld [vmem:[%s15997_s4 + $0x630] sm:$0xff]  }
 0x234   :  { %12703 = vmatprep.subr.bf16.mxu1 %v13476_v0  ;;  %13406 = vtanh.f32 %v5164_v49  ;;  %v5096_v49 = vmul.f32 %v15224_v6, %v14632_v43 }
 0x236   :  { %12692 = vmatpush3.bf16.msra.mxu0 %v13230_v20  ;;  %v5167_v43 = vadd.f32 %v15241_v62, %v5096_v49 }
 0x237   :  { %12704 = vmatpush3.bf16.msra.mxu1 %v13231_v5  ;;  %12709 = vmatprep.subr.bf16.mxu0 %v13476_v0 }
 0x238   :  { %12721 = vmatprep.subr.bf16.mxu1 %v13476_v0 }
 0x239   :  { %12694 = vmatmul.mubr.msk.bf16.vlgmr.msra.gmra.mrb[148].mxu0 %vm5845_vm3, %v5287_v60  ;;  %v13245_v60 = vld [vmem:[%s15997_s4 + $0x5f0] sm:$0xff]  }
 0x23a   :  { %12706 = vmatmul.mubr.msk.bf16.vlgmr.msra.gmra.mrb[148].mxu1 %vm5845_vm3, %v5288_v59  ;;  %12710 = vmatpush3.bf16.msra.mxu0 %v13232_v55  ;;  %v5094_v59 = vmul.f32 %v15224_v6, %v14618_v8 }
 0x23b   :  { %12722 = vmatpush3.bf16.msra.mxu1 %v13233_v22  ;;  %12711 = vmatprep.subr.bf16.mxu0 %v13476_v0 }
 0x23c   :  { %v6955_v4 = vpop.f32.mrb[96].mxu0  ;;  %12723 = vmatprep.subr.bf16.mxu1 %v13476_v0  ;;  %12717 = vmatprep.mubr.msk.bf16.mxu0 %vm13477_vm2, %v13476_v0  ;;  %v5165_v8 = vadd.f32 %v15241_v62, %v5094_v59  ;;  %v13260_v59 = vld [vmem:[%s15997_s4 + $0x650] sm:$0xff]  }
 0x23d   :  { %v10142_v16 = vsel %vm10110_vm4, %v6955_v4, 0.0  ;;  %v7022_v51 = vpop.f32.mrb[96].mxu1  ;;  %v12383_v38 = vpop.f32.mrb[97].mxu0  ;;  %12729 = vmatprep.mubr.msk.bf16.mxu1 %vm13477_vm2, %v13476_v0  ;;  %v13247_v4 = vld [vmem:[%s15997_s4 + $0x5f8] sm:$0xff]  }
 0x23e   :  { %v10143_v48 = vadd.f32 %v10142_v16, %v10141_v32  ;;  %v12395_v3 = vpop.f32.mrb[97].mxu1  ;;  %v6958_v50 = vpop.f32.mrb[98].mxu0  ;;  %12712 = vmatpush3.bf16.msra.mxu0 %v13234_v11  ;;  %v10144_v7 = vsel %vm10110_vm4, %v7022_v51, 0.0  ;;  %v13246_v11 = vld [vmem:[%s15997_s4 + $0x5d8] sm:$0xff]   ;;  %v13248_v38 = vld [vmem:[%s15997_s4 + $0x600] sm:$0xff]   ;;  %13408 = vtanh.f32 %v5165_v8 }
 0x23f   :  { %v7025_v31 = vpop.f32.mrb[98].mxu1  ;;  %12724 = vmatpush3.bf16.msra.mxu1 %v13235_v45  ;;  %v12384_v27 = vpop.f32.mrb[99].mxu0  ;;  %12713 = vmatprep.subr.bf16.mxu0 %v13476_v0  ;;  %v5095_v45 = vmul.f32 %v15224_v6, %v14621_v9  ;;  %v13249_v3 = vld [vmem:[%s15997_s4 + $0x620] sm:$0xff]  }
 0x240   :  { %v10145_v12 = vadd.f32 %v10144_v7, %v10143_v48  ;;  %v12396_v39 = vpop.f32.mrb[99].mxu1  ;;  %12725 = vmatprep.subr.bf16.mxu1 %v13476_v0  ;;  %v13405_v16 = vpop.eup %13404  ;;  %v13251_v7 = vld [vmem:[%s15997_s4 + $0x628] sm:$0xff]  }
 0x241   :  { %v13407_v51 = vpop.eup %13406  ;;  %v5291_v48 = vpack.c.bf16 %v13405_v16, %v13405_v16  ;;  %v5166_v9 = vadd.f32 %v15241_v62, %v5095_v45  ;;  %v13261_v16 = vld [vmem:[%s15997_s4 + $0x670] sm:$0xff]  }
 0x242   :  { %12714 = vmatpush3.bf16.msra.mxu0 %v13236_v24  ;;  %v5292_v50 = vpack.c.bf16 %v13407_v51, %v13407_v51  ;;  %v13250_v24 = vld [vmem:[%s15997_s4 + $0x608] sm:$0xff]  }
 0x243   :  { %12726 = vmatpush3.bf16.msra.mxu1 %v13237_v52  ;;  %12715 = vmatprep.subr.bf16.mxu0 %v13476_v0  ;;  %13410 = vtanh.f32 %v5166_v9  ;;  %v5099_v9 = vmul.f32 %v15224_v6, %v14658_v46 }
 0x244   :  { %12727 = vmatprep.subr.bf16.mxu1 %v13476_v0  ;;  %13412 = vtanh.f32 %v5167_v43  ;;  %v13270_v43 = vld [vmem:[%s15997_s4 + $0x698] sm:$0xff]  }
 0x245   :  { %v5170_v46 = vadd.f32 %v15241_v62, %v5099_v9 }
 0x246   :  { %12716 = vmatpush3.bf16.msra.mxu0 %v13238_v28 }
 0x247   :  { %12728 = vmatpush3.bf16.msra.mxu1 %v13239_v15  ;;  %12733 = vmatprep.subr.bf16.mxu0 %v13476_v0 }
 0x248   :  { %12745 = vmatprep.subr.bf16.mxu1 %v13476_v0 }
 0x249   :  { %12718 = vmatmul.mubr.msk.bf16.vlgmr.msra.gmra.mrb[152].mxu0 %vm5845_vm3, %v5289_v37 }
 0x24a   :  { %12730 = vmatmul.mubr.msk.bf16.vlgmr.msra.gmra.mrb[152].mxu1 %vm5845_vm3, %v5290_v18  ;;  %12734 = vmatpush3.bf16.msra.mxu0 %v13240_v42  ;;  %v5097_v18 = vmul.f32 %v15224_v6, %v14637_v23 }
 0x24b   :  { %12746 = vmatpush3.bf16.msra.mxu1 %v13241_v19  ;;  %12735 = vmatprep.subr.bf16.mxu0 %v13476_v0  ;;  %v13254_v19 = vld [vmem:[%s15997_s4 + $0x618] sm:$0xff]  }
 0x24c   :  { %v7089_v40 = vpop.f32.mrb[100].mxu0  ;;  %12747 = vmatprep.subr.bf16.mxu1 %v13476_v0  ;;  %12741 = vmatprep.mubr.msk.bf16.mxu0 %vm13477_vm2, %v13476_v0  ;;  %v5168_v23 = vadd.f32 %v15241_v62, %v5097_v18  ;;  %v13269_v18 = vld [vmem:[%s15997_s4 + $0x6b0] sm:$0xff]  }
 0x24d   :  { %v10146_v32 = vsel %vm10110_vm4, %v7089_v40, 0.0  ;;  %v7156_v26 = vpop.f32.mrb[100].mxu1  ;;  %v12407_v47 = vpop.f32.mrb[101].mxu0  ;;  %12753 = vmatprep.mubr.msk.bf16.mxu1 %vm13477_vm2, %v13476_v0 }
 0x24e   :  { %v10147_v20 = vadd.f32 %v10146_v32, %v10145_v12  ;;  %v12419_v29 = vpop.f32.mrb[101].mxu1  ;;  %v7092_v5 = vpop.f32.mrb[102].mxu0  ;;  %12736 = vmatpush3.bf16.msra.mxu0 %v13242_v21  ;;  %v10148_v54 = vsel %vm10110_vm4, %v7156_v26, 0.0  ;;  %v13255_v21 = vld [vmem:[%s15997_s4 + $0x638] sm:$0xff]   ;;  %v13256_v32 = vld [vmem:[%s15997_s4 + $0x640] sm:$0xff]   ;;  %13414 = vtanh.f32 %v5168_v23 }
 0x24f   :  { %v7159_v36 = vpop.f32.mrb[102].mxu1  ;;  %12748 = vmatpush3.bf16.msra.mxu1 %v13243_v14  ;;  %v12408_v55 = vpop.f32.mrb[103].mxu0  ;;  %12737 = vmatprep.subr.bf16.mxu0 %v13476_v0  ;;  %v13257_v47 = vld [vmem:[%s15997_s4 + $0x660] sm:$0xff]   ;;  %v13258_v29 = vld [vmem:[%s15997_s4 + $0x648] sm:$0xff]  }
 0x250   :  { %v10149_v41 = vadd.f32 %v10148_v54, %v10147_v20  ;;  %v12420_v22 = vpop.f32.mrb[103].mxu1  ;;  %12749 = vmatprep.subr.bf16.mxu1 %v13476_v0  ;;  %v13409_v14 = vpop.eup %13408  ;;  %v13259_v5 = vld [vmem:[%s15997_s4 + $0x668] sm:$0xff]  }
 0x251   :  { %v13411_v40 = vpop.eup %13410  ;;  %v5293_v26 = vpack.c.bf16 %v13409_v14, %v13409_v14 }
 0x252   :  { %12738 = vmatpush3.bf16.msra.mxu0 %v13244_v58  ;;  %v5294_v20 = vpack.c.bf16 %v13411_v40, %v13411_v40  ;;  %v5100_v40 = vmul.f32 %v15224_v6, %v14669_v61 }
 0x253   :  { %12750 = vmatpush3.bf16.msra.mxu1 %v13245_v60  ;;  %12739 = vmatprep.subr.bf16.mxu0 %v13476_v0 }
 0x254   :  { %12751 = vmatprep.subr.bf16.mxu1 %v13476_v0  ;;  %v5171_v61 = vadd.f32 %v15241_v62, %v5100_v40 }
 0x256   :  { %12740 = vmatpush3.bf16.msra.mxu0 %v13246_v11 }
 0x257   :  { %12752 = vmatpush3.bf16.msra.mxu1 %v13247_v4  ;;  %12757 = vmatprep.subr.bf16.mxu0 %v13476_v0 }
 0x258   :  { %12769 = vmatprep.subr.bf16.mxu1 %v13476_v0 }
 0x259   :  { %12742 = vmatmul.mubr.msk.bf16.vlgmr.msra.gmra.mrb[156].mxu0 %vm5845_vm3, %v5291_v48  ;;  %v13262_v48 = vld [vmem:[%s15997_s4 + $0x658] sm:$0xff]  }
 0x25a   :  { %12754 = vmatmul.mubr.msk.bf16.vlgmr.msra.gmra.mrb[156].mxu1 %vm5845_vm3, %v5292_v50  ;;  %12758 = vmatpush3.bf16.msra.mxu0 %v13248_v38  ;;  %v5098_v38 = vmul.f32 %v15224_v6, %v14648_v35  ;;  %v13413_v50 = vpop.eup %13412 }
 0x25b   :  { %12770 = vmatpush3.bf16.msra.mxu1 %v13249_v3  ;;  %12759 = vmatprep.subr.bf16.mxu0 %v13476_v0  ;;  %v13263_v3 = vld [vmem:[%s15997_s4 + $0x678] sm:$0xff]  }
 0x25c   :  { %v7223_v31 = vpop.f32.mrb[104].mxu0  ;;  %12771 = vmatprep.subr.bf16.mxu1 %v13476_v0  ;;  %12765 = vmatprep.mubr.msk.bf16.mxu0 %vm13477_vm2, %v13476_v0  ;;  %v5169_v35 = vadd.f32 %v15241_v62, %v5098_v38  ;;  %v13277_v38 = vld [vmem:[%s15997_s4 + $0x6f0] sm:$0xff]  }
 0x25d   :  { %v10150_v27 = vsel %vm10110_vm4, %v7223_v31, 0.0  ;;  %v7290_v52 = vpop.f32.mrb[104].mxu1  ;;  %v12431_v12 = vpop.f32.mrb[105].mxu0  ;;  %12777 = vmatprep.mubr.msk.bf16.mxu1 %vm13477_vm2, %v13476_v0  ;;  %v5295_v31 = vpack.c.bf16 %v13413_v50, %v13413_v50  ;;  %v13278_v50 = vld [vmem:[%s15997_s4 + $0x6d8] sm:$0xff]  }
 0x25e   :  { %v10151_v39 = vadd.f32 %v10150_v27, %v10149_v41  ;;  %v12443_v10 = vpop.f32.mrb[105].mxu1  ;;  %v7226_v28 = vpop.f32.mrb[106].mxu0  ;;  %12760 = vmatpush3.bf16.msra.mxu0 %v13250_v24  ;;  %v10152_v15 = vsel %vm10110_vm4, %v7290_v52, 0.0  ;;  %v13265_v27 = vld [vmem:[%s15997_s4 + $0x6a0] sm:$0xff]   ;;  %13416 = vtanh.f32 %v5169_v35  ;;  %v13266_v12 = vld [vmem:[%s15997_s4 + $0x688] sm:$0xff]   ;;  %v13279_v35 = vld [vmem:[%s15997_s4 + $0x6f8] sm:$0xff]  }
 0x25f   :  { %v7293_v33 = vpop.f32.mrb[106].mxu1  ;;  %12772 = vmatpush3.bf16.msra.mxu1 %v13251_v7  ;;  %v12432_v1 = vpop.f32.mrb[107].mxu0  ;;  %12761 = vmatprep.subr.bf16.mxu0 %v13476_v0  ;;  %v13264_v7 = vld [vmem:[%s15997_s4 + $0x680] sm:$0xff]   ;;  %13418 = vtanh.f32 %v5170_v46 }
 0x260   :  { %v10153_v42 = vadd.f32 %v10152_v15, %v10151_v39  ;;  %v12444_v37 = vpop.f32.mrb[107].mxu1  ;;  %12773 = vmatprep.subr.bf16.mxu1 %v13476_v0  ;;  %v13415_v24 = vpop.eup %13414  ;;  %v13267_v39 = vld [vmem:[%s15997_s4 + $0x6a8] sm:$0xff]   ;;  %13420 = vtanh.f32 %v5171_v61  ;;  %v13280_v46 = vld [vmem:[%s15997_s4 + $0x700] sm:$0xff]  }
 0x261   :  { %v5296_v52 = vpack.c.bf16 %v13415_v24, %v13415_v24  ;;  %v5103_v24 = vmul.f32 %v15224_v6, %v14691_v25 }
 0x262   :  { %12762 = vmatpush3.bf16.msra.mxu0 %v13252_v13 }
 0x263   :  { %12774 = vmatpush3.bf16.msra.mxu1 %v13253_v57  ;;  %12763 = vmatprep.subr.bf16.mxu0 %v13476_v0  ;;  %v5174_v25 = vadd.f32 %v15241_v62, %v5103_v24 }
 0x264   :  { %12775 = vmatprep.subr.bf16.mxu1 %v13476_v0 }
 0x266   :  { %12764 = vmatpush3.bf16.msra.mxu0 %v13254_v19 }
 0x267   :  { %12776 = vmatpush3.bf16.msra.mxu1 %v13255_v21  ;;  %12781 = vmatprep.subr.bf16.mxu0 %v13476_v0 }
 0x268   :  { %12793 = vmatprep.subr.bf16.mxu1 %v13476_v0  ;;  %v13417_v23 = vpop.eup %13416 }
 0x269   :  { %12766 = vmatmul.mubr.msk.bf16.vlgmr.msra.gmra.mrb[160].mxu0 %vm5845_vm3, %v5293_v26  ;;  %v13271_v26 = vld [vmem:[%s15997_s4 + $0x6b8] sm:$0xff]  }
 0x26a   :  { %12778 = vmatmul.mubr.msk.bf16.vlgmr.msra.gmra.mrb[160].mxu1 %vm5845_vm3, %v5294_v20  ;;  %12782 = vmatpush3.bf16.msra.mxu0 %v13256_v32  ;;  %v5101_v32 = vmul.f32 %v15224_v6, %v14678_v63  ;;  %v13272_v20 = vld [vmem:[%s15997_s4 + $0x6c0] sm:$0xff]  }
 0x26b   :  { %12794 = vmatpush3.bf16.msra.mxu1 %v13257_v47  ;;  %12783 = vmatprep.subr.bf16.mxu0 %v13476_v0  ;;  %v13419_v47 = vpop.eup %13418 }
 0x26c   :  { %v7357_v58 = vpop.f32.mrb[108].mxu0  ;;  %12795 = vmatprep.subr.bf16.mxu1 %v13476_v0  ;;  %12789 = vmatprep.mubr.msk.bf16.mxu0 %vm13477_vm2, %v13476_v0  ;;  %v5172_v63 = vadd.f32 %v15241_v62, %v5101_v32  ;;  %v13286_v32 = vld [vmem:[%s15997_s4 + $0x718] sm:$0xff]  }
 0x26d   :  { %v10154_v54 = vsel %vm10110_vm4, %v7357_v58, 0.0  ;;  %v7424_v36 = vpop.f32.mrb[108].mxu1  ;;  %v12455_v55 = vpop.f32.mrb[109].mxu0  ;;  %12801 = vmatprep.mubr.msk.bf16.mxu1 %vm13477_vm2, %v13476_v0  ;;  %v5298_v58 = vpack.c.bf16 %v13419_v47, %v13419_v47 }
 0x26e   :  { %v10155_v60 = vadd.f32 %v10154_v54, %v10153_v42  ;;  %v12467_v41 = vpop.f32.mrb[109].mxu1  ;;  %v7360_v22 = vpop.f32.mrb[110].mxu0  ;;  %12784 = vmatpush3.bf16.msra.mxu0 %v13258_v29  ;;  %v10156_v11 = vsel %vm10110_vm4, %v7424_v36, 0.0  ;;  %v13268_v42 = vld [vmem:[%s15997_s4 + $0x690] sm:$0xff]   ;;  %v5297_v29 = vpack.c.bf16 %v13417_v23, %v13417_v23  ;;  %v13274_v54 = vld [vmem:[%s15997_s4 + $0x6c8] sm:$0xff]   ;;  %13422 = vtanh.f32 %v5172_v63  ;;  %v13287_v23 = vld [vmem:[%s15997_s4 + $0x738] sm:$0xff]  }
 0x26f   :  { %v7427_v45 = vpop.f32.mrb[110].mxu1  ;;  %12796 = vmatpush3.bf16.msra.mxu1 %v13259_v5  ;;  %v12456_v4 = vpop.f32.mrb[111].mxu0  ;;  %12785 = vmatprep.subr.bf16.mxu0 %v13476_v0  ;;  %v13273_v5 = vld [vmem:[%s15997_s4 + $0x6e0] sm:$0xff]   ;;  %v13275_v36 = vld [vmem:[%s15997_s4 + $0x6e8] sm:$0xff]  }
 0x270   :  { %v10157_v51 = vadd.f32 %v10156_v11, %v10155_v60  ;;  %v12468_v8 = vpop.f32.mrb[111].mxu1  ;;  %12797 = vmatprep.subr.bf16.mxu1 %v13476_v0  ;;  %v13276_v4 = vld [vmem:[%s15997_s4 + $0x6d0] sm:$0xff]  }
 0x272   :  { %12786 = vmatpush3.bf16.msra.mxu0 %v13260_v59 }
 0x273   :  { %12798 = vmatpush3.bf16.msra.mxu1 %v13261_v16  ;;  %12787 = vmatprep.subr.bf16.mxu0 %v13476_v0 }
 0x274   :  { %12799 = vmatprep.subr.bf16.mxu1 %v13476_v0 }
 0x276   :  { %12788 = vmatpush3.bf16.msra.mxu0 %v13262_v48 }
 0x277   :  { %12800 = vmatpush3.bf16.msra.mxu1 %v13263_v3  ;;  %12805 = vmatprep.subr.bf16.mxu0 %v13476_v0  ;;  %v5102_v3 = vmul.f32 %v15224_v6, %v14688_v17 }
 0x278   :  { %12817 = vmatprep.subr.bf16.mxu1 %v13476_v0 }
 0x279   :  { %12790 = vmatmul.mubr.msk.bf16.vlgmr.msra.gmra.mrb[164].mxu0 %vm5845_vm3, %v5295_v31  ;;  %v5173_v17 = vadd.f32 %v15241_v62, %v5102_v3 }
 0x27a   :  { %12802 = vmatmul.mubr.msk.bf16.vlgmr.msra.gmra.mrb[164].mxu1 %vm5845_vm3, %v5296_v52  ;;  %12806 = vmatpush3.bf16.msra.mxu0 %v13264_v7  ;;  %v13421_v7 = vpop.eup %13420  ;;  %v13281_v52 = vld [vmem:[%s15997_s4 + $0x720] sm:$0xff]  }
 0x27b   :  { %12818 = vmatpush3.bf16.msra.mxu1 %v13265_v27  ;;  %12807 = vmatprep.subr.bf16.mxu0 %v13476_v0  ;;  %v13423_v31 = vpop.eup %13422  ;;  %v5299_v27 = vpack.c.bf16 %v13421_v7, %v13421_v7  ;;  %13424 = vtanh.f32 %v5173_v17 }
 0x27c   :  { %v7491_v10 = vpop.f32.mrb[112].mxu0  ;;  %12819 = vmatprep.subr.bf16.mxu1 %v13476_v0  ;;  %12813 = vmatprep.mubr.msk.bf16.mxu0 %vm13477_vm2, %v13476_v0  ;;  %13426 = vtanh.f32 %v5174_v25  ;;  %v13298_v25 = vld [vmem:[%s15997_s4 + $0x788] sm:$0xff]  }
 0x27d   :  { %v10158_v28 = vsel %vm10110_vm4, %v7491_v10, 0.0  ;;  %v7558_v13 = vpop.f32.mrb[112].mxu1  ;;  %v12479_v15 = vpop.f32.mrb[113].mxu0  ;;  %12825 = vmatprep.mubr.msk.bf16.mxu1 %vm13477_vm2, %v13476_v0  ;;  %v13283_v10 = vld [vmem:[%s15997_s4 + $0x728] sm:$0xff]  }
 0x27e   :  { %v10159_v33 = vadd.f32 %v10158_v28, %v10157_v51  ;;  %v12491_v1 = vpop.f32.mrb[113].mxu1  ;;  %v7494_v57 = vpop.f32.mrb[114].mxu0  ;;  %12808 = vmatpush3.bf16.msra.mxu0 %v13266_v12  ;;  %v10160_v37 = vsel %vm10110_vm4, %v7558_v13, 0.0  ;;  %v5300_v12 = vpack.c.bf16 %v13423_v31, %v13423_v31 }
 0x27f   :  { %v7561_v49 = vpop.f32.mrb[114].mxu1  ;;  %12820 = vmatpush3.bf16.msra.mxu1 %v13267_v39  ;;  %v12480_v19 = vpop.f32.mrb[115].mxu0  ;;  %12809 = vmatprep.subr.bf16.mxu0 %v13476_v0  ;;  %v13282_v39 = vld [vmem:[%s15997_s4 + $0x708] sm:$0xff]  }
 0x280   :  { %v10161_v21 = vadd.f32 %v10160_v37, %v10159_v33  ;;  %v12492_v14 = vpop.f32.mrb[115].mxu1  ;;  %12821 = vmatprep.subr.bf16.mxu1 %v13476_v0  ;;  %v13284_v37 = vld [vmem:[%s15997_s4 + $0x710] sm:$0xff]  }
 0x282   :  { %12810 = vmatpush3.bf16.msra.mxu0 %v13268_v42 }
 0x283   :  { %12822 = vmatpush3.bf16.msra.mxu1 %v13269_v18  ;;  %12811 = vmatprep.subr.bf16.mxu0 %v13476_v0 }
 0x284   :  { %12823 = vmatprep.subr.bf16.mxu1 %v13476_v0 }
 0x285   :  { %v13425_v47 = vpop.eup %13424 }
 0x286   :  { %12812 = vmatpush3.bf16.msra.mxu0 %v13270_v43  ;;  %v5104_v43 = vmul.f32 %v15224_v6, %v14702_v44  ;;  %v13427_v61 = vpop.eup %13426 }
 0x287   :  { %12824 = vmatpush3.bf16.msra.mxu1 %v13271_v26  ;;  %12829 = vmatprep.subr.bf16.mxu0 %v13476_v0  ;;  %v5105_v26 = vmul.f32 %v15224_v6, %v14707_v53  ;;  %v13289_v6 = vld [vmem:[%s15997_s4 + $0x760] sm:$0xff]   ;;  %v5302_v63 = vpack.c.bf16 %v13427_v61, %v13427_v61 }
 0x288   :  { %12841 = vmatprep.subr.bf16.mxu1 %v13476_v0  ;;  %v5175_v44 = vadd.f32 %v15241_v62, %v5104_v43  ;;  %v13303_v43 = vld [vmem:[%s15997_s4 + $0x7b8] sm:$0xff]  }
 0x289   :  { %12814 = vmatmul.mubr.msk.bf16.vlgmr.msra.gmra.mrb[168].mxu0 %vm5845_vm3, %v5297_v29  ;;  %v5301_v29 = vpack.c.bf16 %v13425_v47, %v13425_v47  ;;  %v5176_v53 = vadd.f32 %v15241_v62, %v5105_v26  ;;  %v13290_v62 = vld [vmem:[%s15997_s4 + $0x748] sm:$0xff]  }
 0x28a   :  { %12826 = vmatmul.mubr.msk.bf16.vlgmr.msra.gmra.mrb[168].mxu1 %vm5845_vm3, %v5298_v58  ;;  %12830 = vmatpush3.bf16.msra.mxu0 %v13272_v20  ;;  %v13288_v20 = vld [vmem:[%s15997_s4 + $0x740] sm:$0xff]   ;;  %13428 = vtanh.f32 %v5175_v44 }
 0x28b   :  { %12842 = vmatpush3.bf16.msra.mxu1 %v13273_v5  ;;  %12831 = vmatprep.subr.bf16.mxu0 %v13476_v0  ;;  %13430 = vtanh.f32 %v5176_v53  ;;  %v13291_v5 = vld [vmem:[%s15997_s4 + $0x768] sm:$0xff]  }
 0x28c   :  { %v7625_v55 = vpop.f32.mrb[116].mxu0  ;;  %12843 = vmatprep.subr.bf16.mxu1 %v13476_v0  ;;  %12837 = vmatprep.mubr.msk.bf16.mxu0 %vm13477_vm2, %v13476_v0 }
 0x28d   :  { %v10162_v60 = vsel %vm10110_vm4, %v7625_v55, 0.0  ;;  %v7692_v41 = vpop.f32.mrb[116].mxu1  ;;  %v12503_v22 = vpop.f32.mrb[117].mxu0  ;;  %12849 = vmatprep.mubr.msk.bf16.mxu1 %vm13477_vm2, %v13476_v0 }
 0x28e   :  { %v10163_v59 = vadd.f32 %v10162_v60, %v10161_v21  ;;  %v12515_v11 = vpop.f32.mrb[117].mxu1  ;;  %v7628_v45 = vpop.f32.mrb[118].mxu0  ;;  %12832 = vmatpush3.bf16.msra.mxu0 %v13274_v54  ;;  %v10164_v16 = vsel %vm10110_vm4, %v7692_v41, 0.0  ;;  %v13285_v21 = vld [vmem:[%s15997_s4 + $0x730] sm:$0xff]  }
 0x28f   :  { %v7695_v51 = vpop.f32.mrb[118].mxu1  ;;  %12844 = vmatpush3.bf16.msra.mxu1 %v13275_v36  ;;  %v12504_v8 = vpop.f32.mrb[119].mxu0  ;;  %12833 = vmatprep.subr.bf16.mxu0 %v13476_v0 }
 0x290   :  { %v10165_v48 = vadd.f32 %v10164_v16, %v10163_v59  ;;  %v12516_v9 = vpop.f32.mrb[119].mxu1  ;;  %12845 = vmatprep.subr.bf16.mxu1 %v13476_v0  ;;  %v13292_v59 = vld [vmem:[%s15997_s4 + $0x750] sm:$0xff]  }
 0x291   :  { %v13293_v16 = vld [vmem:[%s15997_s4 + $0x770] sm:$0xff]   ;;  %v13294_v9 = vld [vmem:[%s15997_s4 + $0x758] sm:$0xff]  }
 0x292   :  { %12834 = vmatpush3.bf16.msra.mxu0 %v13276_v4 }
 0x293   :  { %12846 = vmatpush3.bf16.msra.mxu1 %v13277_v38  ;;  %12835 = vmatprep.subr.bf16.mxu0 %v13476_v0  ;;  %v13474_v38 = vld [vmem:[%s15998_s2] ss:$0 sm:$0xff] }
 0x294   :  { %12847 = vmatprep.subr.bf16.mxu1 %v13476_v0  ;;  %v5107_v3 = vmul.f32 %v13474_v38, %v14721_v56  ;;  %v13429_v24 = vpop.eup %13428  ;;  %v13296_v56 = vld [vmem:[%s15997_s4 + $0x780] sm:$0xff]  }
 0x295   :  { %v5303_v31 = vpack.c.bf16 %v13429_v24, %v13429_v24 }
 0x296   :  { %12836 = vmatpush3.bf16.msra.mxu0 %v13278_v50  ;;  %v13295_v50 = vld [vmem:[%s15997_s4 + $0x778] sm:$0xff]  }
 0x297   :  { %12848 = vmatpush3.bf16.msra.mxu1 %v13279_v35  ;;  %12853 = vmatprep.subr.bf16.mxu0 %v13476_v0  ;;  %v13431_v35 = vpop.eup %13430 }
 0x298   :  { %12865 = vmatprep.subr.bf16.mxu1 %v13476_v0 }
 0x299   :  { %12838 = vmatmul.mubr.msk.bf16.vlgmr.msra.gmra.mrb[172].mxu0 %vm5845_vm3, %v5299_v27  ;;  %v5304_v27 = vpack.c.bf16 %v13431_v35, %v13431_v35 }
 0x29a   :  { %12850 = vmatmul.mubr.msk.bf16.vlgmr.msra.gmra.mrb[172].mxu1 %vm5845_vm3, %v5300_v12  ;;  %12854 = vmatpush3.bf16.msra.mxu0 %v13280_v46  ;;  %v13297_v46 = vld [vmem:[%s15997_s4 + $0x7a0] sm:$0xff]  }
 0x29b   :  { %12866 = vmatpush3.bf16.msra.mxu1 %v13281_v52  ;;  %12855 = vmatprep.subr.bf16.mxu0 %v13476_v0  ;;  %v13299_v52 = vld [vmem:[%s15997_s4 + $0x7a8] sm:$0xff]  }
 0x29c   :  { %v7759_v28 = vpop.f32.mrb[120].mxu0  ;;  %12867 = vmatprep.subr.bf16.mxu1 %v13476_v0  ;;  %12861 = vmatprep.mubr.msk.bf16.mxu0 %vm13477_vm2, %v13476_v0 }
 0x29d   :  { %v10166_v13 = vsel %vm10110_vm4, %v7759_v28, 0.0  ;;  %v7826_v15 = vpop.f32.mrb[120].mxu1  ;;  %v12527_v33 = vpop.f32.mrb[121].mxu0  ;;  %12873 = vmatprep.mubr.msk.bf16.mxu1 %vm13477_vm2, %v13476_v0 }
 0x29e   :  { %v10167_v1 = vadd.f32 %v10166_v13, %v10165_v48  ;;  %v12539_v57 = vpop.f32.mrb[121].mxu1  ;;  %v7762_v42 = vpop.f32.mrb[122].mxu0  ;;  %12856 = vmatpush3.bf16.msra.mxu0 %v13282_v39  ;;  %v10168_v49 = vsel %vm10110_vm4, %v7826_v15, 0.0  ;;  %v5106_v48 = vmul.f32 %v13474_v38, %v14718_v2  ;;  %v13475_v2 = vld [vmem:[%s15999_s3] ss:$0 sm:$0xff] }
 0x29f   :  { %v7829_v19 = vpop.f32.mrb[122].mxu1  ;;  %12868 = vmatpush3.bf16.msra.mxu1 %v13283_v10  ;;  %v12528_v18 = vpop.f32.mrb[123].mxu0  ;;  %12857 = vmatprep.subr.bf16.mxu0 %v13476_v0  ;;  %v5178_v17 = vadd.f32 %v13475_v2, %v5107_v3 }
 0x2a0   :  { %v10169_v14 = vadd.f32 %v10168_v49, %v10167_v1  ;;  %v12540_v40 = vpop.f32.mrb[123].mxu1  ;;  %12869 = vmatprep.subr.bf16.mxu1 %v13476_v0  ;;  %v5177_v7 = vadd.f32 %v13475_v2, %v5106_v48  ;;  %v13300_v1 = vld [vmem:[%s15997_s4 + $0x790] sm:$0xff]  }
 0x2a1   :  { %v13301_v49 = vld [vmem:[%s15997_s4 + $0x7b0] sm:$0xff]   ;;  %v5109_v40 = vmul.f32 %v13474_v38, %v14737_v34  ;;  %v13305_v34 = vld [vmem:[%s15997_s4 + $0x7e0] sm:$0xff]  }
 0x2a2   :  { %12858 = vmatpush3.bf16.msra.mxu0 %v13284_v37  ;;  %13432 = vtanh.f32 %v5177_v7 }
 0x2a3   :  { %12870 = vmatpush3.bf16.msra.mxu1 %v13285_v21  ;;  %12859 = vmatprep.subr.bf16.mxu0 %v13476_v0  ;;  %13434 = vtanh.f32 %v5178_v17  ;;  %v5108_v21 = vmul.f32 %v13474_v38, %v14734_v30  ;;  %v13304_v30 = vld [vmem:[%s15997_s4 + $0x7c0] sm:$0xff]   ;;  %v5180_v61 = vadd.f32 %v13475_v2, %v5109_v40 }
 0x2a4   :  { %12871 = vmatprep.subr.bf16.mxu1 %v13476_v0 }
 0x2a6   :  { %12860 = vmatpush3.bf16.msra.mxu0 %v13286_v32 }
 0x2a7   :  { %12872 = vmatpush3.bf16.msra.mxu1 %v13287_v23  ;;  %12877 = vmatprep.subr.bf16.mxu0 %v13476_v0  ;;  %v5179_v23 = vadd.f32 %v13475_v2, %v5108_v21 }
 0x2a8   :  { %12889 = vmatprep.subr.bf16.mxu1 %v13476_v0 }
 0x2a9   :  { %12862 = vmatmul.mubr.msk.bf16.vlgmr.msra.gmra.mrb[176].mxu0 %vm5845_vm3, %v5301_v29  ;;  %13436 = vtanh.f32 %v5179_v23  ;;  %v13307_v29 = vld [vmem:[%s15997_s4 + $0x7e8] sm:$0xff]  }
 0x2aa   :  { %12874 = vmatmul.mubr.msk.bf16.vlgmr.msra.gmra.mrb[176].mxu1 %vm5845_vm3, %v5302_v63  ;;  %12878 = vmatpush3.bf16.msra.mxu0 %v13288_v20  ;;  %v13306_v20 = vld [vmem:[%s15997_s4 + $0x7c8] sm:$0xff]   ;;  %13438 = vtanh.f32 %v5180_v61 }
 0x2ab   :  { %12890 = vmatpush3.bf16.msra.mxu1 %v13289_v6  ;;  %12879 = vmatprep.subr.bf16.mxu0 %v13476_v0 }
 0x2ac   :  { %v7893_v58 = vpop.f32.mrb[124].mxu0  ;;  %12891 = vmatprep.subr.bf16.mxu1 %v13476_v0  ;;  %12885 = vmatprep.mubr.msk.bf16.mxu0 %vm13477_vm2, %v13476_v0  ;;  %v13433_v32 = vpop.eup %13432 }
 0x2ad   :  { %v10170_v54 = vsel %vm10110_vm4, %v7893_v58, 0.0  ;;  %v7960_v36 = vpop.f32.mrb[124].mxu1  ;;  %v12551_v55 = vpop.f32.mrb[125].mxu0  ;;  %12897 = vmatprep.mubr.msk.bf16.mxu1 %vm13477_vm2, %v13476_v0  ;;  %v5305_v47 = vpack.c.bf16 %v13433_v32, %v13433_v32 }
 0x2ae   :  { %v10171_v60 = vadd.f32 %v10170_v54, %v10169_v14  ;;  %v12563_v41 = vpop.f32.mrb[125].mxu1  ;;  %v7896_v22 = vpop.f32.mrb[126].mxu0  ;;  %12880 = vmatpush3.bf16.msra.mxu0 %v13290_v62  ;;  %v10172_v11 = vsel %vm10110_vm4, %v7960_v36, 0.0  ;;  %v13302_v14 = vld [vmem:[%s15997_s4 + $0x798] sm:$0xff]   ;;  %v13308_v36 = vld [vmem:[%s15997_s4 + $0x7d0] sm:$0xff]  }
 0x2af   :  { %v7963_v45 = vpop.f32.mrb[126].mxu1  ;;  %12892 = vmatpush3.bf16.msra.mxu1 %v13291_v5  ;;  %v12552_v4 = vpop.f32.mrb[127].mxu0  ;;  %12881 = vmatprep.subr.bf16.mxu0 %v13476_v0  ;;  %v13309_v22 = vld [vmem:[%s15997_s4 + $0x7f0] sm:$0xff]  }
 0x2b0   :  { %v10173_v51 = vadd.f32 %v10172_v11, %v10171_v60  ;;  %v12564_v8 = vpop.f32.mrb[127].mxu1  ;;  %12893 = vmatprep.subr.bf16.mxu1 %v13476_v0  ;;  %v13435_v26 = vpop.eup %13434  ;;  %v13310_v45 = vld [vmem:[%s15997_s4 + $0x7d8] sm:$0xff]  }
 0x2b1   :  { %v5306_v44 = vpack.c.bf16 %v13435_v26, %v13435_v26  ;;  %v13311_v4 = vld [vmem:[%s15997_s4 + $0x7f8] sm:$0xff]  }
 0x2b2   :  { %12882 = vmatpush3.bf16.msra.mxu0 %v13292_v59 }
 0x2b3   :  { %12894 = vmatpush3.bf16.msra.mxu1 %v13293_v16  ;;  %12883 = vmatprep.subr.bf16.mxu0 %v13476_v0  ;;  %v13437_v16 = vpop.eup %13436 }
 0x2b4   :  { %12895 = vmatprep.subr.bf16.mxu1 %v13476_v0  ;;  %v5307_v8 = vpack.c.bf16 %v13437_v16, %v13437_v16 }
 0x2b6   :  { %12884 = vmatpush3.bf16.msra.mxu0 %v13294_v9 }
 0x2b7   :  { %12896 = vmatpush3.bf16.msra.mxu1 %v13295_v50  ;;  %12901 = vmatprep.subr.bf16.mxu0 %v13476_v0 }
 0x2b8   :  { %12913 = vmatprep.subr.bf16.mxu1 %v13476_v0 }
 0x2b9   :  { %12886 = vmatmul.mubr.msk.bf16.vlgmr.msra.gmra.mrb[180].mxu0 %vm5845_vm3, %v5303_v31 }
 0x2ba   :  { %12898 = vmatmul.mubr.msk.bf16.vlgmr.msra.gmra.mrb[180].mxu1 %vm5845_vm3, %v5304_v27  ;;  %12902 = vmatpush3.bf16.msra.mxu0 %v13296_v56  ;;  %v10339_v27 = vld [vmem:[%s16000_s9] sm:$0xff] }
 0x2bb   :  { %12914 = vmatpush3.bf16.msra.mxu1 %v13297_v46  ;;  %12903 = vmatprep.subr.bf16.mxu0 %v13476_v0 }
 0x2bc   :  { %v8027_v12 = vpop.f32.mrb[128].mxu0  ;;  %12915 = vmatprep.subr.bf16.mxu1 %v13476_v0  ;;  %12909 = vmatprep.mubr.msk.bf16.mxu0 %vm13477_vm2, %v13476_v0 }
 0x2bd   :  { %v10174_v39 = vsel %vm10110_vm4, %v8027_v12, 0.0  ;;  %v8094_v10 = vpop.f32.mrb[128].mxu1  ;;  %v12575_v28 = vpop.f32.mrb[129].mxu0  ;;  %12921 = vmatprep.mubr.msk.bf16.mxu1 %vm13477_vm2, %v13476_v0  ;;  %v13478_v12 = vmov 0.0|0.0  }
 0x2be   :  { %v10175_v13 = vadd.f32 %v10174_v39, %v10173_v51  ;;  %v12587_v15 = vpop.f32.mrb[129].mxu1  ;;  %v8030_v33 = vpop.f32.mrb[130].mxu0  ;;  %12904 = vmatpush3.bf16.msra.mxu0 %v13298_v25  ;;  %v10176_v57 = vsel %vm10110_vm4, %v8094_v10, 0.0  ;;  %v10340_v25 = vld [vmem:[%s16000_s9 + $0x8] sm:$0xff]  ;;  %v10342_v10 = vld [vmem:[%s16000_s9 + $0x18] sm:$0xff] }
 0x2bf   :  { %v8097_v42 = vpop.f32.mrb[130].mxu1  ;;  %12916 = vmatpush3.bf16.msra.mxu1 %v13299_v52  ;;  %v12576_v37 = vpop.f32.mrb[131].mxu0  ;;  %12905 = vmatprep.subr.bf16.mxu0 %v13476_v0  ;;  %v10341_v52 = vld [vmem:[%s16000_s9 + $0x10] sm:$0xff]  ;;  %v15853_v39 = vpack.c.bf16 %v10340_v25, %v10339_v27 }
 0x2c0   :  { %v10177_v19 = vadd.f32 %v10176_v57, %v10175_v13  ;;  %v12588_v18 = vpop.f32.mrb[131].mxu1  ;;  %12917 = vmatprep.subr.bf16.mxu1 %v13476_v0  ;;  %v13439_v51 = vpop.eup %13438  ;;  %v15860_v28 = vpack.c.bf16 %v10342_v10, %v10341_v52 }
 0x2c1   :  { %v5308_v38 = vpack.c.bf16 %v13439_v51, %v13439_v51 }
 0x2c2   :  { %12906 = vmatpush3.bf16.msra.mxu0 %v13300_v1 }
 0x2c3   :  { %12918 = vmatpush3.bf16.msra.mxu1 %v13301_v49  ;;  %12907 = vmatprep.subr.bf16.mxu0 %v13476_v0 }
 0x2c4   :  { %12919 = vmatprep.subr.bf16.mxu1 %v13476_v0 }
 0x2c6   :  { %12908 = vmatpush3.bf16.msra.mxu0 %v13302_v14 }
 0x2c7   :  { %12920 = vmatpush3.bf16.msra.mxu1 %v13303_v43  ;;  %12925 = vmatprep.subr.bf16.mxu0 %v13476_v0 }
 0x2c8   :  { %12937 = vmatprep.subr.bf16.mxu1 %v13476_v0 }
 0x2c9   :  { %12910 = vmatmul.mubr.msk.bf16.vlgmr.msra.gmra.mrb[184].mxu0 %vm5845_vm3, %v5305_v47 }
 0x2ca   :  { %12922 = vmatmul.mubr.msk.bf16.vlgmr.msra.gmra.mrb[184].mxu1 %vm5845_vm3, %v5306_v44  ;;  %12926 = vmatpush3.bf16.msra.mxu0 %v13304_v30 }
 0x2cb   :  { %12938 = vmatpush3.bf16.msra.mxu1 %v13305_v34  ;;  %12927 = vmatprep.subr.bf16.mxu0 %v13476_v0 }
 0x2cc   :  { %v8161_v53 = vpop.f32.mrb[132].mxu0  ;;  %12939 = vmatprep.subr.bf16.mxu1 %v13476_v0  ;;  %12933 = vmatprep.mubr.msk.bf16.mxu0 %vm13477_vm2, %v13476_v0 }
 0x2cd   :  { %v10178_v6 = vsel %vm10110_vm4, %v8161_v53, 0.0  ;;  %v8228_v63 = vpop.f32.mrb[132].mxu1  ;;  %v12599_v62 = vpop.f32.mrb[133].mxu0  ;;  %12945 = vmatprep.mubr.msk.bf16.mxu1 %vm13477_vm2, %v13476_v0 }
 0x2ce   :  { %v10179_v5 = vadd.f32 %v10178_v6, %v10177_v19  ;;  %v12611_v58 = vpop.f32.mrb[133].mxu1  ;;  %v8164_v54 = vpop.f32.mrb[134].mxu0  ;;  %12928 = vmatpush3.bf16.msra.mxu0 %v13306_v20  ;;  %v10180_v55 = vsel %vm10110_vm4, %v8228_v63, 0.0 }
 0x2cf   :  { %v8231_v60 = vpop.f32.mrb[134].mxu1  ;;  %12940 = vmatpush3.bf16.msra.mxu1 %v13307_v29  ;;  %v12600_v41 = vpop.f32.mrb[135].mxu0  ;;  %12929 = vmatprep.subr.bf16.mxu0 %v13476_v0 }
 0x2d0   :  { %v10181_v59 = vadd.f32 %v10180_v55, %v10179_v5  ;;  %v12612_v11 = vpop.f32.mrb[135].mxu1  ;;  %12941 = vmatprep.subr.bf16.mxu1 %v13476_v0 }
 0x2d2   :  { %12930 = vmatpush3.bf16.msra.mxu0 %v13308_v36 }
 0x2d3   :  { %12942 = vmatpush3.bf16.msra.mxu1 %v13309_v22  ;;  %12931 = vmatprep.subr.bf16.mxu0 %v13476_v0 }
 0x2d4   :  { %12943 = vmatprep.subr.bf16.mxu1 %v13476_v0 }
 0x2d6   :  { %12932 = vmatpush3.bf16.msra.mxu0 %v13310_v45 }
 0x2d7   :  { %12944 = vmatpush3.bf16.msra.mxu1 %v13311_v4  ;;  %13015 = vmatprep.subr.bf16.mxu0 %v13478_v12 }
 0x2d8   :  { %13021 = vmatprep.subr.bf16.mxu1 %v13478_v12 }
 0x2d9   :  { %12934 = vmatmul.mubr.msk.bf16.vlgmr.msra.gmra.mrb[188].mxu0 %vm5845_vm3, %v5307_v8 }
 0x2da   :  { %12946 = vmatmul.mubr.msk.bf16.vlgmr.msra.gmra.mrb[188].mxu1 %vm5845_vm3, %v5308_v38  ;;  %12957 = vmatprep.mubr.msk.f32.mxu0 %vm13477_vm2, %v13476_v0 }
 0x2db   :  { %12968 = vmatprep.mubr.msk.f32.mxu1 %vm13477_vm2, %v13476_v0  ;;  %13023 = vmatpush3.bf16.msra.mxu1 %v15853_v39 }
 0x2dc   :  { %v8295_v48 = vpop.f32.mrb[136].mxu0  ;;  %13024 = vmatprep.subr.bf16.mxu1 %v13478_v12 }
 0x2dd   :  { %v10182_v9 = vsel %vm10110_vm4, %v8295_v48, 0.0  ;;  %v8362_v3 = vpop.f32.mrb[136].mxu1  ;;  %v12623_v50 = vpop.f32.mrb[137].mxu0 }
 0x2de   :  { %v10183_v24 = vadd.f32 %v10182_v9, %v10181_v59  ;;  %v12635_v35 = vpop.f32.mrb[137].mxu1  ;;  %v8298_v2 = vpop.f32.mrb[138].mxu0  ;;  %v10184_v7 = vsel %vm10110_vm4, %v8362_v3, 0.0 }
 0x2df   :  { %v8365_v56 = vpop.f32.mrb[138].mxu1  ;;  %v12624_v31 = vpop.f32.mrb[139].mxu0  ;;  %13026 = vmatpush3.bf16.msra.mxu1 %v15860_v28 }
 0x2e0   :  { %v10185_v17 = vadd.f32 %v10184_v7, %v10183_v24  ;;  %v12636_v46 = vpop.f32.mrb[139].mxu1  ;;  %13033 = vmatprep.subr.bf16.mxu1 %v13478_v12 }
 0x2e2   :  { %12969 = vmatmul.mubr.f32.vlgmr.msra.gmra.mrb[192].mxu1 %v13476_v0 }
 0x2e3   :  { %13035 = vmatpush3.bf16.msra.mxu1 %v15853_v39  ;;  %12990 = vmatprep.mubr.msk.f32.mxu1 %vm13477_vm2, %v13476_v0 }
 0x2e4   :  { %13036 = vmatprep.subr.bf16.mxu1 %v13478_v12 }
 0x2e7   :  { %13038 = vmatpush3.bf16.msra.mxu1 %v15860_v28 }
 0x2e8   :  { %13045 = vmatprep.subr.bf16.mxu1 %v13478_v12 }
 0x2ec   :  { %v8429_v13 = vpop.f32.mrb[140].mxu0 }
 0x2ed   :  { %v10186_v15 = vsel %vm10110_vm4, %v8429_v13, 0.0  ;;  %v8496_v33 = vpop.f32.mrb[140].mxu1  ;;  %v12647_v1 = vpop.f32.mrb[141].mxu0  ;;  %v10255_v13 = vld [vmem:[%s16001_s7] sm:$0xff] }
 0x2ee   :  { %v10187_v57 = vadd.f32 %v10186_v15, %v10185_v17  ;;  %v12659_v42 = vpop.f32.mrb[141].mxu1  ;;  %v8432_v37 = vpop.f32.mrb[142].mxu0  ;;  %v10188_v49 = vsel %vm10110_vm4, %v8496_v33, 0.0  ;;  %v10256_v15 = vld [vmem:[%s16001_s7 + $0x8] sm:$0xff]  ;;  %v10257_v33 = vld [vmem:[%s16001_s7 + $0x10] sm:$0xff] }
 0x2ef   :  { %v8499_v19 = vpop.f32.mrb[142].mxu1  ;;  %v12648_v18 = vpop.f32.mrb[143].mxu0  ;;  %v13016_v1 = vpack.c.bf16 %v10256_v15, %v10255_v13 }
 0x2f0   :  { %v10189_v21 = vadd.f32 %v10188_v49, %v10187_v57  ;;  %v12660_v14 = vpop.f32.mrb[143].mxu1  ;;  %v10258_v57 = vld [vmem:[%s16001_s7 + $0x18] sm:$0xff] }
 0x2f1   :  { %13017 = vmatpush3.bf16.msra.mxu0 %v13016_v1  ;;  %v13019_v42 = vpack.c.bf16 %v10258_v57, %v10257_v33 }
 0x2f2   :  { %13018 = vmatprep.subr.bf16.mxu0 %v13478_v12 }
 0x2f5   :  { %13020 = vmatpush3.bf16.msra.mxu0 %v13019_v42 }
 0x2f6   :  { %13027 = vmatprep.subr.bf16.mxu0 %v13478_v12 }
 0x2fc   :  { %v8563_v40 = vpop.f32.mrb[144].mxu0 }
 0x2fd   :  { %v10190_v43 = vsel %vm10110_vm4, %v8563_v40, 0.0  ;;  %v8630_v32 = vpop.f32.mrb[144].mxu1  ;;  %v12671_v26 = vpop.f32.mrb[145].mxu0 }
 0x2fe   :  { %v10191_v23 = vadd.f32 %v10190_v43, %v10189_v21  ;;  %v12683_v30 = vpop.f32.mrb[145].mxu1  ;;  %v8566_v47 = vpop.f32.mrb[146].mxu0  ;;  %v10192_v61 = vsel %vm10110_vm4, %v8630_v32, 0.0 }
 0x2ff   :  { %v8633_v34 = vpop.f32.mrb[146].mxu1  ;;  %v12672_v44 = vpop.f32.mrb[147].mxu0 }
 0x300   :  { %v10193_v20 = vadd.f32 %v10192_v61, %v10191_v23  ;;  %v12684_v29 = vpop.f32.mrb[147].mxu1 }
 0x30c   :  { %v8697_v53 = vpop.f32.mrb[148].mxu0 }
 0x30d   :  { %v10194_v6 = vsel %vm10110_vm4, %v8697_v53, 0.0  ;;  %v8764_v63 = vpop.f32.mrb[148].mxu1  ;;  %v12695_v62 = vpop.f32.mrb[149].mxu0 }
 0x30e   :  { %v10195_v5 = vadd.f32 %v10194_v6, %v10193_v20  ;;  %v12707_v58 = vpop.f32.mrb[149].mxu1  ;;  %v8700_v54 = vpop.f32.mrb[150].mxu0  ;;  %v10196_v36 = vsel %vm10110_vm4, %v8764_v63, 0.0 }
 0x30f   :  { %v8767_v55 = vpop.f32.mrb[150].mxu1  ;;  %v12696_v60 = vpop.f32.mrb[151].mxu0 }
 0x310   :  { %v10197_v41 = vadd.f32 %v10196_v36, %v10195_v5  ;;  %v12708_v22 = vpop.f32.mrb[151].mxu1 }
 0x31c   :  { %v8831_v59 = vpop.f32.mrb[152].mxu0 }
 0x31d   :  { %v10198_v11 = vsel %vm10110_vm4, %v8831_v59, 0.0  ;;  %v8898_v45 = vpop.f32.mrb[152].mxu1  ;;  %v12719_v4 = vpop.f32.mrb[153].mxu0 }
 0x31e   :  { %v10199_v16 = vadd.f32 %v10198_v11, %v10197_v41  ;;  %v12731_v51 = vpop.f32.mrb[153].mxu1  ;;  %v8834_v8 = vpop.f32.mrb[154].mxu0  ;;  %v10200_v38 = vsel %vm10110_vm4, %v8898_v45, 0.0 }
 0x31f   :  { %v8901_v48 = vpop.f32.mrb[154].mxu1  ;;  %v12720_v9 = vpop.f32.mrb[155].mxu0 }
 0x320   :  { %v10201_v3 = vadd.f32 %v10200_v38, %v10199_v16  ;;  %v12732_v50 = vpop.f32.mrb[155].mxu1 }
 0x32c   :  { %v8965_v24 = vpop.f32.mrb[156].mxu0 }
 0x32d   :  { %v10202_v35 = vsel %vm10110_vm4, %v8965_v24, 0.0  ;;  %v9032_v2 = vpop.f32.mrb[156].mxu1  ;;  %v12743_v7 = vpop.f32.mrb[157].mxu0 }
 0x32e   :  { %v10203_v56 = vadd.f32 %v10202_v35, %v10201_v3  ;;  %v12755_v31 = vpop.f32.mrb[157].mxu1  ;;  %v8968_v17 = vpop.f32.mrb[158].mxu0  ;;  %v10204_v46 = vsel %vm10110_vm4, %v9032_v2, 0.0 }
 0x32f   :  { %v9035_v27 = vpop.f32.mrb[158].mxu1  ;;  %v12744_v25 = vpop.f32.mrb[159].mxu0 }
 0x330   :  { %v10205_v52 = vadd.f32 %v10204_v46, %v10203_v56  ;;  %v12756_v10 = vpop.f32.mrb[159].mxu1 }
 0x33c   :  { %v9099_v37 = vpop.f32.mrb[160].mxu0 }
 0x33d   :  { %v10206_v49 = vsel %vm10110_vm4, %v9099_v37, 0.0  ;;  %v9166_v19 = vpop.f32.mrb[160].mxu1  ;;  %v12767_v18 = vpop.f32.mrb[161].mxu0 }
 0x33e   :  { %v10207_v21 = vadd.f32 %v10206_v49, %v10205_v52  ;;  %v12779_v14 = vpop.f32.mrb[161].mxu1  ;;  %v9102_v40 = vpop.f32.mrb[162].mxu0  ;;  %v10208_v43 = vsel %vm10110_vm4, %v9166_v19, 0.0 }
 0x33f   :  { %v9169_v32 = vpop.f32.mrb[162].mxu1  ;;  %v12768_v26 = vpop.f32.mrb[163].mxu0 }
 0x340   :  { %v10209_v23 = vadd.f32 %v10208_v43, %v10207_v21  ;;  %v12780_v30 = vpop.f32.mrb[163].mxu1 }
 0x34c   :  { %v9233_v47 = vpop.f32.mrb[164].mxu0 }
 0x34d   :  { %v10210_v61 = vsel %vm10110_vm4, %v9233_v47, 0.0  ;;  %v9300_v34 = vpop.f32.mrb[164].mxu1  ;;  %v12791_v44 = vpop.f32.mrb[165].mxu0 }
 0x34e   :  { %v10211_v20 = vadd.f32 %v10210_v61, %v10209_v23  ;;  %v12803_v29 = vpop.f32.mrb[165].mxu1  ;;  %v9236_v53 = vpop.f32.mrb[166].mxu0  ;;  %v10212_v6 = vsel %vm10110_vm4, %v9300_v34, 0.0 }
 0x34f   :  { %v9303_v63 = vpop.f32.mrb[166].mxu1  ;;  %v12792_v62 = vpop.f32.mrb[167].mxu0 }
 0x350   :  { %v10213_v5 = vadd.f32 %v10212_v6, %v10211_v20  ;;  %v12804_v58 = vpop.f32.mrb[167].mxu1 }
 0x35c   :  { %v9367_v54 = vpop.f32.mrb[168].mxu0 }
 0x35d   :  { %v10214_v36 = vsel %vm10110_vm4, %v9367_v54, 0.0  ;;  %v9434_v55 = vpop.f32.mrb[168].mxu1  ;;  %v12815_v60 = vpop.f32.mrb[169].mxu0 }
 0x35e   :  { %v10215_v41 = vadd.f32 %v10214_v36, %v10213_v5  ;;  %v12827_v22 = vpop.f32.mrb[169].mxu1  ;;  %v9370_v59 = vpop.f32.mrb[170].mxu0  ;;  %v10216_v11 = vsel %vm10110_vm4, %v9434_v55, 0.0 }
 0x35f   :  { %v9437_v45 = vpop.f32.mrb[170].mxu1  ;;  %v12816_v4 = vpop.f32.mrb[171].mxu0 }
 0x360   :  { %v10217_v16 = vadd.f32 %v10216_v11, %v10215_v41  ;;  %v12828_v51 = vpop.f32.mrb[171].mxu1  ;;  %v11365_v45 = vld [vmem:[%s16002_s5] ss:$0 sm:$0xff]  ;;  %s13479_s5 = smov 64  }
 0x36c   :  { %v9501_v8 = vpop.f32.mrb[172].mxu0 }
 0x36d   :  { %v10218_v38 = vsel %vm10110_vm4, %v9501_v8, 0.0  ;;  %v9568_v48 = vpop.f32.mrb[172].mxu1  ;;  %v12839_v9 = vpop.f32.mrb[173].mxu0 }
 0x36e   :  { %v10219_v3 = vadd.f32 %v10218_v38, %v10217_v16  ;;  %v12851_v50 = vpop.f32.mrb[173].mxu1  ;;  %v9504_v24 = vpop.f32.mrb[174].mxu0  ;;  %v10220_v35 = vsel %vm10110_vm4, %v9568_v48, 0.0  ;;  %v11366_v38 = vld [vmem:[%s16003_s6] ss:$0 sm:$0xff] }
 0x36f   :  { %v9571_v2 = vpop.f32.mrb[174].mxu1  ;;  %v12840_v7 = vpop.f32.mrb[175].mxu0 }
 0x370   :  { %v10221_v56 = vadd.f32 %v10220_v35, %v10219_v3  ;;  %v12852_v31 = vpop.f32.mrb[175].mxu1  ;;  %v15921_v3 = vld [vmem:[%s16004_s10] ss:$0 sm:$0xff] }
 0x371   :  { %v11367_v7 = vld [vmem:[%s16005_s8] ss:$0 sm:$0xff]  ;;  %s13480_s8 = smov 96  }
 0x37c   :  { %v9635_v17 = vpop.f32.mrb[176].mxu0 }
 0x37d   :  { %v10222_v46 = vsel %vm10110_vm4, %v9635_v17, 0.0  ;;  %v9702_v27 = vpop.f32.mrb[176].mxu1  ;;  %v12863_v25 = vpop.f32.mrb[177].mxu0 }
 0x37e   :  { %v10223_v52 = vadd.f32 %v10222_v46, %v10221_v56  ;;  %v12875_v10 = vpop.f32.mrb[177].mxu1  ;;  %v9638_v13 = vpop.f32.mrb[178].mxu0  ;;  %v10224_v15 = vsel %vm10110_vm4, %v9702_v27, 0.0 }
 0x37f   :  { %v9705_v33 = vpop.f32.mrb[178].mxu1  ;;  %v12864_v1 = vpop.f32.mrb[179].mxu0 }
 0x380   :  { %v10225_v57 = vadd.f32 %v10224_v15, %v10223_v52  ;;  %v12876_v42 = vpop.f32.mrb[179].mxu1 }
 0x38c   :  { %v9769_v37 = vpop.f32.mrb[180].mxu0 }
 0x38d   :  { %v10226_v49 = vsel %vm10110_vm4, %v9769_v37, 0.0  ;;  %v9836_v19 = vpop.f32.mrb[180].mxu1  ;;  %v12887_v18 = vpop.f32.mrb[181].mxu0 }
 0x38e   :  { %v10227_v21 = vadd.f32 %v10226_v49, %v10225_v57  ;;  %v12899_v14 = vpop.f32.mrb[181].mxu1  ;;  %v9772_v40 = vpop.f32.mrb[182].mxu0  ;;  %v10228_v43 = vsel %vm10110_vm4, %v9836_v19, 0.0 }
 0x38f   :  { %v9839_v32 = vpop.f32.mrb[182].mxu1  ;;  %v12888_v26 = vpop.f32.mrb[183].mxu0 }
 0x390   :  { %v10229_v23 = vadd.f32 %v10228_v43, %v10227_v21  ;;  %v12900_v30 = vpop.f32.mrb[183].mxu1 }
 0x39c   :  { %v9903_v47 = vpop.f32.mrb[184].mxu0 }
 0x39d   :  { %v10230_v61 = vsel %vm10110_vm4, %v9903_v47, 0.0  ;;  %v9970_v34 = vpop.f32.mrb[184].mxu1  ;;  %v12911_v44 = vpop.f32.mrb[185].mxu0 }
 0x39e   :  { %v10231_v20 = vadd.f32 %v10230_v61, %v10229_v23  ;;  %v12923_v29 = vpop.f32.mrb[185].mxu1  ;;  %v9906_v53 = vpop.f32.mrb[186].mxu0  ;;  %v10232_v6 = vsel %vm10110_vm4, %v9970_v34, 0.0 }
 0x39f   :  { %v9973_v63 = vpop.f32.mrb[186].mxu1  ;;  %v12912_v62 = vpop.f32.mrb[187].mxu0 }
 0x3a0   :  { %v10233_v5 = vadd.f32 %v10232_v6, %v10231_v20  ;;  %v12924_v58 = vpop.f32.mrb[187].mxu1 }
 0x3ac   :  { %v10037_v54 = vpop.f32.mrb[188].mxu0 }
 0x3ad   :  { %v10234_v36 = vsel %vm10110_vm4, %v10037_v54, 0.0  ;;  %v10104_v55 = vpop.f32.mrb[188].mxu1  ;;  %v12935_v60 = vpop.f32.mrb[189].mxu0 }
 0x3ae   :  { %v10235_v41 = vadd.f32 %v10234_v36, %v10233_v5  ;;  %v12947_v22 = vpop.f32.mrb[189].mxu1  ;;  %v10040_v59 = vpop.f32.mrb[190].mxu0  ;;  %v10236_v11 = vsel %vm10110_vm4, %v10104_v55, 0.0 }
 0x3af   :  { %v10107_v4 = vpop.f32.mrb[190].mxu1  ;;  %v12936_v16 = vpop.f32.mrb[191].mxu0 }
 0x3b0   :  { %v10237_v51 = vadd.f32 %v10236_v11, %v10235_v41  ;;  %v12948_v8 = vpop.f32.mrb[191].mxu1 }
 0x3b2   :  { %v10245_v48 = vmul.f32 %v11365_v45, %v10237_v51 }
 0x3b4   :  { %v10253_v9 = vadd.f32 %v11366_v38, %v10245_v48 }
 0x3b5   :  { %v10419_v50 = vpop.f32.mrb[192].mxu1 }
 0x3b6   :  { %13440 = vtanh.f32 %v10253_v9  ;;  %v10420_v24 = vadd.f32 %v15921_v3, %v10419_v50  ;;  %v12970_v35 = vpop.f32.mrb[193].mxu1 }
 0x3b8   :  { %10431 = vrot.lane.b32.xlu0 %v10420_v24, %s13479_s5 }
 0x3c0   :  { %v13441_v2 = vpop.eup %13440 }
 0x3c1   :  { %12958 = vmatmul.mubr.msk.f32.vlgmr.msra.gmra.mrb[192].mxu0 %vm10110_vm4, %v13441_v2 }
 0x3c2   :  { %13029 = vmatpush3.bf16.msra.mxu0 %v15853_v39  ;;  %12979 = vmatprep.mubr.msk.f32.mxu0 %vm13477_vm2, %v13476_v0 }
 0x3c3   :  { %13030 = vmatprep.subr.bf16.mxu0 %v13478_v12 }
 0x3c6   :  { %13032 = vmatpush3.bf16.msra.mxu0 %v15860_v28 }
 0x3c7   :  { %13039 = vmatprep.subr.bf16.mxu0 %v13478_v12 }
 0x42a   :  { %v10432_v10 = vpop.permute.xlu0 %10431 }
 0x494   :  { %v10335_v56 = vpop.f32.mrb[192].mxu0 }
 0x495   :  { %v15935_v31 = vadd.f32 %v11367_v7, %v10335_v56  ;;  %v12959_v17 = vpop.f32.mrb[193].mxu0 }
 0x497   :  { %v10423_v46 = vadd.f32 %v10420_v24, %v15935_v31 }
 0x499   :  { %v11370_v27 = vmul.f32 -1.442695, %v10423_v46 }
 0x49b   :  { %13442 = vpow2.f32 %v11370_v27 }
 0x4a5   :  { %v13443_v25 = vpop.eup %13442 }
 0x4a6   :  { %v10427_v52 = vadd.f32 1.0, %v13443_v25 }
 0x4a8   :  { %13444 = vrcp.f32 %v10427_v52 }
 0x4b2   :  { %v13445_v13 = vpop.eup %13444 }
 0x4b3   :  { %v10434_v15 = vmul.f32 %v13445_v13, %v10432_v10  ;;  %v10441_v42 = vsub.f32 1.0, %v13445_v13  ;;  %v10447_v49 = vmul.f32 0.0, %v13445_v13 }
 0x4b5   :  { %10436 = vrot.lane.b32.xlu0 %v10434_v15, %s13479_s5 }
 0x527   :  { %v10437_v33 = vpop.permute.xlu0 %10436 }
 0x528   :  { %v10439_v1 = vadd.f32 %v10437_v33, %v15935_v31 }
 0x52a   :  { %13446 = vtanh.f32 %v10439_v1 }
 0x534   :  { %v13447_v57 = vpop.eup %13446 }
 0x535   :  { %10443 = vrot.lane.b32.xlu1 %v13447_v57, %s13480_s8 }
 0x5a7   :  { %v10444_v37 = vpop.permute.xlu1 %10443 }
 0x5a8   :  { %v10446_v19 = vmul.f32 %v10444_v37, %v10441_v42 }
 0x5aa   :  { %v10448_v18 = vadd.f32 %v10447_v49, %v10446_v19  ;;  %v10819_v19 = vld [vmem:[%s16006_s11] sm:$0xff] }
 0x5ac   :  { %10450 = vrot.lane.b32.xlu1 %v10448_v18, %s13480_s8  ;;  %v10564_v29 = vrot.slane %v10448_v18, 6  ;;  %v10820_v18 = vld [vmem:[%s16006_s11 + $0x8] sm:$0xff] }
 0x61e   :  { %v10451_v21 = vpop.permute.xlu1 %10450 }
 0x61f   :  { %10454 = vst.msk [vmem:[#allocation2] sm:$0x3] %vm10453_vm5, %v10451_v21  ;;  %12980 = vmatmul.mubr.msk.f32.vlgmr.msra.gmra.mrb[194].mxu0 %vm10110_vm4, %v10451_v21  ;;  %v13046_v21 = vpack.c.bf16 %v10820_v18, %v10819_v19 }
 0x620   :  { %13041 = vmatpush3.bf16.msra.mxu0 %v15853_v39  ;;  %13001 = vmatprep.mubr.msk.f32.mxu0 %vm13477_vm2, %v13476_v0 }
 0x621   :  { %13042 = vmatprep.subr.bf16.mxu0 %v13478_v12 }
 0x624   :  { %13044 = vmatpush3.bf16.msra.mxu0 %v15860_v28 }
 0x6f2   :  { %v10534_v14 = vpop.f32.mrb[194].mxu0 }
 0x6f3   :  { %v10535_v40 = vadd.f32 %v15921_v3, %v10534_v14  ;;  %v12981_v43 = vpop.f32.mrb[195].mxu0  ;;  %v10822_v14 = vld [vmem:[%s16006_s11 + $0x18] sm:$0xff] }
 0x6f5   :  { %v10539_v32 = vrot.slane %v10535_v40, 6 }
 0x6f7   :  { %10548 = vrot.lane.b32.xlu0 %v10539_v32, %s13479_s5  ;;  %v10541_v26 = vadd.f32 %v10539_v32, %v15935_v31 }
 0x6f9   :  { %v11373_v23 = vmul.f32 -1.442695, %v10541_v26 }
 0x6fb   :  { %13448 = vpow2.f32 %v11373_v23 }
 0x705   :  { %v13449_v30 = vpop.eup %13448 }
 0x706   :  { %v10545_v39 = vadd.f32 1.0, %v13449_v30 }
 0x708   :  { %13450 = vrcp.f32 %v10545_v39 }
 0x712   :  { %v13451_v47 = vpop.eup %13450 }
 0x713   :  { %v10558_v53 = vsub.f32 1.0, %v13451_v47  ;;  %v10566_v63 = vmul.f32 %v13451_v47, %v10564_v29 }
 0x769   :  { %v10549_v61 = vpop.permute.xlu0 %10548 }
 0x76a   :  { %v10551_v34 = vmul.f32 %v13451_v47, %v10549_v61 }
 0x76c   :  { %10553 = vrot.lane.b32.xlu1 %v10551_v34, %s13479_s5 }
 0x7de   :  { %v10554_v28 = vpop.permute.xlu1 %10553 }
 0x7df   :  { %v10556_v44 = vadd.f32 %v10554_v28, %v15935_v31 }
 0x7e1   :  { %13452 = vtanh.f32 %v10556_v44 }
 0x7eb   :  { %v13453_v20 = vpop.eup %13452 }
 0x7ec   :  { %10560 = vrot.lane.b32.xlu0 %v13453_v20, %s13480_s8 }
 0x85e   :  { %v10561_v6 = vpop.permute.xlu0 %10560 }
 0x85f   :  { %v10563_v62 = vmul.f32 %v10561_v6, %v10558_v53 }
 0x861   :  { %v10567_v5 = vadd.f32 %v10566_v63, %v10563_v62 }
 0x863   :  { %v10585_v58 = vrot.slane %v10567_v5, 2  ;;  %v10686_v9 = vrot.slane %v10567_v5, 6 }
 0x865   :  { %10586 = vrot.lane.b32.xlu1 %v10585_v58, %s13480_s8 }
 0x8d7   :  { %v10587_v54 = vpop.permute.xlu1 %10586 }
 0x8d8   :  { %12991 = vmatmul.mubr.msk.f32.vlgmr.msra.gmra.mrb[194].mxu1 %vm10110_vm4, %v10587_v54 }
 0x8d9   :  { %13012 = vmatprep.mubr.msk.f32.mxu1 %vm13477_vm2, %v13476_v0  ;;  %13047 = vmatpush3.bf16.msra.mxu1 %v13046_v21 }
 0x8da   :  { %13048 = vmatprep.subr.bf16.mxu1 %v13478_v12  ;;  %v11380_v12 = vld [vmem:[%s16007_s12] ss:$0 sm:$0xff] }
 0x9ab   :  { %v10656_v36 = vpop.f32.mrb[194].mxu1 }
 0x9ac   :  { %v10657_v55 = vadd.f32 %v15921_v3, %v10656_v36  ;;  %v12992_v60 = vpop.f32.mrb[195].mxu1 }
 0x9ae   :  { %v10661_v41 = vrot.slane %v10657_v55, 4 }
 0x9b0   :  { %10670 = vrot.lane.b32.xlu0 %v10661_v41, %s13479_s5  ;;  %v10663_v22 = vadd.f32 %v10661_v41, %v15935_v31 }
 0x9b2   :  { %v11376_v59 = vmul.f32 -1.442695, %v10663_v22 }
 0x9b4   :  { %13454 = vpow2.f32 %v11376_v59 }
 0x9be   :  { %v13455_v11 = vpop.eup %13454 }
 0x9bf   :  { %v10667_v45 = vadd.f32 1.0, %v13455_v11 }
 0x9c1   :  { %13456 = vrcp.f32 %v10667_v45 }
 0x9cb   :  { %v13457_v4 = vpop.eup %13456 }
 0x9cc   :  { %v10680_v48 = vsub.f32 1.0, %v13457_v4  ;;  %v10688_v24 = vmul.f32 %v13457_v4, %v10686_v9 }
 0xa22   :  { %v10671_v16 = vpop.permute.xlu0 %10670 }
 0xa23   :  { %v10673_v51 = vmul.f32 %v13457_v4, %v10671_v16 }
 0xa25   :  { %10675 = vrot.lane.b32.xlu1 %v10673_v51, %s13479_s5 }
 0xa97   :  { %v10676_v0 = vpop.permute.xlu1 %10675 }
 0xa98   :  { %v10678_v8 = vadd.f32 %v10676_v0, %v15935_v31 }
 0xa9a   :  { %13458 = vtanh.f32 %v10678_v8 }
 0xaa4   :  { %v13459_v38 = vpop.eup %13458 }
 0xaa5   :  { %10682 = vrot.lane.b32.xlu0 %v13459_v38, %s13480_s8 }
 0xb17   :  { %v10683_v50 = vpop.permute.xlu0 %10682 }
 0xb18   :  { %v10685_v35 = vmul.f32 %v10683_v50, %v10680_v48 }
 0xb1a   :  { %v10689_v2 = vadd.f32 %v10688_v24, %v10685_v35 }
 0xb1c   :  { %v10707_v7 = vrot.slane %v10689_v2, 4  ;;  %v10808_v32 = vrot.slane %v10689_v2, 6 }
 0xb1e   :  { %10708 = vrot.lane.b32.xlu1 %v10707_v7, %s13480_s8 }
 0xb90   :  { %v10709_v56 = vpop.permute.xlu1 %10708 }
 0xb91   :  { %13002 = vmatmul.mubr.msk.f32.vlgmr.msra.gmra.mrb[196].mxu0 %vm10110_vm4, %v10709_v56 }
 0xc64   :  { %v10778_v17 = vpop.f32.mrb[196].mxu0 }
 0xc65   :  { %v10779_v46 = vadd.f32 %v15921_v3, %v10778_v17  ;;  %v13003_v27 = vpop.f32.mrb[197].mxu0 }
 0xc67   :  { %v10783_v25 = vrot.slane %v10779_v46, 2 }
 0xc69   :  { %10792 = vrot.lane.b32.xlu0 %v10783_v25, %s13479_s5  ;;  %v10785_v52 = vadd.f32 %v10783_v25, %v15935_v31 }
 0xc6b   :  { %v11379_v10 = vmul.f32 -1.442695, %v10785_v52 }
 0xc6d   :  { %13460 = vpow2.f32 %v11379_v10 }
 0xc77   :  { %v13461_v13 = vpop.eup %13460 }
 0xc78   :  { %v10789_v15 = vadd.f32 1.0, %v13461_v13 }
 0xc7a   :  { %13462 = vrcp.f32 %v10789_v15 }
 0xc84   :  { %v13463_v33 = vpop.eup %13462 }
 0xc85   :  { %v10802_v43 = vsub.f32 1.0, %v13463_v33  ;;  %v10810_v23 = vmul.f32 %v13463_v33, %v10808_v32 }
 0xcdb   :  { %v10793_v1 = vpop.permute.xlu0 %10792 }
 0xcdc   :  { %v10795_v57 = vmul.f32 %v13463_v33, %v10793_v1 }
 0xcde   :  { %10797 = vrot.lane.b32.xlu1 %v10795_v57, %s13479_s5 }
 0xce2   :  { %10569 = vrot.lane.b32.xlu1 %v10567_v5, %s13480_s8 }
 0xd50   :  { %v10798_v42 = vpop.permute.xlu1 %10797 }
 0xd51   :  { %v10800_v3 = vadd.f32 %v10798_v42, %v15935_v31  ;;  %v10821_v31 = vld [vmem:[%s16006_s11 + $0x10] sm:$0xff] }
 0xd52   :  { %v13049_v40 = vpack.c.bf16 %v10822_v14, %v10821_v31 }
 0xd53   :  { %13464 = vtanh.f32 %v10800_v3 }
 0xd54   :  { %v10570_v37 = vpop.permute.xlu1 %10569  ;;  %13050 = vmatpush3.bf16.msra.mxu1 %v13049_v40 }
 0xd55   :  { %10573 = vst.msk [vmem:[#allocation2] sm:$0xc] %vm10572_vm6, %v10570_v37 }
 0xd5d   :  { %v13465_v49 = vpop.eup %13464 }
 0xd5e   :  { %10804 = vrot.lane.b32.xlu0 %v13465_v49, %s13480_s8 }
 0xd62   :  { %10691 = vrot.lane.b32.xlu0 %v10689_v2, %s13480_s8 }
 0xdd0   :  { %v10805_v26 = vpop.permute.xlu0 %10804 }
 0xdd1   :  { %v10807_v30 = vmul.f32 %v10805_v26, %v10802_v43 }
 0xdd3   :  { %v10811_v39 = vadd.f32 %v10810_v23, %v10807_v30 }
 0xdd4   :  { %v10692_v47 = vpop.permute.xlu0 %10691 }
 0xdd5   :  { %10695 = vst.msk [vmem:[#allocation2] sm:$0x30] %vm10694_vm7, %v10692_v47  ;;  %10813 = vrot.lane.b32.xlu1 %v10811_v39, %s13480_s8 }
 0xe47   :  { %v10814_v61 = vpop.permute.xlu1 %10813 }
 0xe48   :  { %10817 = vst.msk [vmem:[#allocation2] sm:$0xc0] %vm10816_vm8, %v10814_v61 }
 0xe4f   :  { %v10818_v34 = vld [vmem:[#allocation2] sm:$0xff] }
 0xe50   :  { %13013 = vmatmul.mubr.msk.f32.vlgmr.msra.gmra.mrb[196].mxu1 %vm10110_vm4, %v10818_v34 }
 0xf23   :  { %v10899_v28 = vpop.f32.mrb[196].mxu1 }
 0xf24   :  { %v10900_v44 = vadd.f32 %v11380_v12, %v10899_v28  ;;  %v13014_v20 = vpop.f32.mrb[197].mxu1 }
 0xf26   :  { %v11382_v29 = vmul.f32 -1.442695, %v10900_v44 }
 0xf28   :  { %13466 = vpow2.f32 %v11382_v29 }
 0xf32   :  { %v13467_v53 = vpop.eup %13466 }
 0xf33   :  { %v10906_v6 = vadd.f32 1.0, %v13467_v53 }
 0xf35   :  { %13468 = vrcp.f32 %v10906_v6 }
 0xf3f   :  { %v13469_v63 = vpop.eup %13468 }
 0xf40   :  { %10910 = vst.msk [vmem:[%s16008_s13] sm:$0xff] %vm10909_vm9, %v13469_v63 }

</bundles_post_ra>
